<compile_context>
chip_gen: v6e
topology: v6e:2x2x1
jax: 0.10.0
libtpu: 0.0.40
codegen_flags: <defaults>
</compile_context>

<pallas_src>
import jax
import jax.numpy as jnp
from jax.experimental import pallas as pl
from jax.experimental.pallas import tpu as pltpu

HIDDEN = 1024


def _round_up(v, m):
    return (v + m - 1) // m * m


def mlp_kernel(x_ref, w1_ref, b1_ref, w2_ref, b2_ref, w3_ref, b3_ref, o_ref):
    """Fused 3-layer MLP for one batch tile. Weights are bf16, accum f32."""
    # Layer 1: Linear -> ReLU   (BN1/Dropout folded into layer-2 params)
    x = x_ref[...].astype(jnp.bfloat16)                              # (Tn, Dp)
    h = jnp.dot(x, w1_ref[...], preferred_element_type=jnp.float32)  # (Tn, H)
    h = jnp.maximum(h + b1_ref[...], 0.0)

    # Layer 2: Linear -> ReLU   (BN2/Dropout folded into layer-3 params)
    h = jnp.dot(h.astype(jnp.bfloat16), w2_ref[...],
                preferred_element_type=jnp.float32)                  # (Tn, H)
    h = jnp.maximum(h + b2_ref[...], 0.0)

    # Layer 3: Linear -> Tanh
    y = jnp.dot(h.astype(jnp.bfloat16), w3_ref[...],
                preferred_element_type=jnp.float32)                  # (Tn, Dp)
    o_ref[...] = jnp.tanh(y + b3_ref[...])


def generated_network_forward(x, kp):
    """x: (N, D) float32.  kp: folded / padded / bf16 kernel params."""
    N, D = x.shape
    Dp, H = kp["w1"].shape

    # Batch tiling: big tiles amortize per-step overhead; small N stays 1 step.
    tile_n = min(256, _round_up(N, 8))
    n_pad = _round_up(N, tile_n)
    xp = jnp.zeros((n_pad, Dp), jnp.float32).at[:N, :D].set(x)

    grid = (pl.cdiv(n_pad, tile_n),)
    const = lambda i: (0, 0)          # weights: same block every step (resident)

    out = pl.pallas_call(
        mlp_kernel,
        out_shape=jax.ShapeDtypeStruct((n_pad, Dp), jnp.float32),
        grid=grid,
        in_specs=[
            pl.BlockSpec((tile_n, Dp), lambda i: (i, 0)),   # x tile
            pl.BlockSpec((Dp, H), const),                   # w1 (bf16)
            pl.BlockSpec((1, H), const),                    # b1
            pl.BlockSpec((H, H), const),                    # w2 (bf16, BN1 folded)
            pl.BlockSpec((1, H), const),                    # b2
            pl.BlockSpec((H, Dp), const),                   # w3 (bf16, BN2 folded)
            pl.BlockSpec((1, Dp), const),                   # b3
        ],
        out_specs=pl.BlockSpec((tile_n, Dp), lambda i: (i, 0)),
        compiler_params=pltpu.CompilerParams(
            dimension_semantics=("parallel",),              # megacore on v7x
            vmem_limit_bytes=48 * 1024 * 1024,              # fits v7x 64 MiB VMEM
        ),
    )(xp, kp["w1"], kp["b1"], kp["w2"], kp["b2"], kp["w3"], kp["b3"])

    return out[:N, :D]


def init_params(vector_dim, hidden=HIDDEN, seed=0):
    """PyTorch-style defaults: Linear U(±1/sqrt(fan_in)); BN gamma=1, beta=0,
    running_mean=0, running_var=1, eps=1e-5.  Weights stored as (in, out)."""
    keys = jax.random.split(jax.random.PRNGKey(seed), 6)

    def lin(kw, kb, fan_in, fan_out):
        bound = 1.0 / float(fan_in) ** 0.5
        w = jax.random.uniform(kw, (fan_in, fan_out), jnp.float32, -bound, bound)
        b = jax.random.uniform(kb, (1, fan_out), jnp.float32, -bound, bound)
        return w, b

    w1, b1 = lin(keys[0], keys[1], vector_dim, hidden)
    w2, b2 = lin(keys[2], keys[3], hidden, hidden)
    w3, b3 = lin(keys[4], keys[5], hidden, vector_dim)

    bn = dict(gamma=jnp.ones((1, hidden), jnp.float32),
              beta=jnp.zeros((1, hidden), jnp.float32),
              mean=jnp.zeros((1, hidden), jnp.float32),
              var=jnp.ones((1, hidden), jnp.float32),
              eps=1e-5)
    return {"w1": w1, "b1": b1, "w2": w2, "b2": b2, "w3": w3, "b3": b3,
            "bn1": dict(bn), "bn2": dict(bn)}


def fold_params(p):
    """Fold eval-mode BN into following Linear, pad D->multiple of 128, cast
    weight matrices to bf16 (biases stay f32)."""
    def bn_scale_shift(bn):
        scale = bn["gamma"] / jnp.sqrt(bn["var"] + bn["eps"])
        shift = bn["beta"] - bn["mean"] * scale
        return scale, shift

    s1, t1 = bn_scale_shift(p["bn1"])
    s2, t2 = bn_scale_shift(p["bn2"])

    w2f = p["w2"] * s1.reshape(-1, 1)          # (H, H)
    b2f = p["b2"] + t1 @ p["w2"]               # (1, H)
    w3f = p["w3"] * s2.reshape(-1, 1)          # (H, D)
    b3f = p["b3"] + t2 @ p["w3"]               # (1, D)

    D, H = p["w1"].shape
    Dp = max(128, _round_up(D, 128))
    w1p = jnp.zeros((Dp, H), jnp.float32).at[:D, :].set(p["w1"])
    w3p = jnp.zeros((H, Dp), jnp.float32).at[:, :D].set(w3f)
    b3p = jnp.zeros((1, Dp), jnp.float32).at[:, :D].set(b3f)

    return {
        "w1": w1p.astype(jnp.bfloat16), "b1": p["b1"],
        "w2": w2f.astype(jnp.bfloat16), "b2": b2f,
        "w3": w3p.astype(jnp.bfloat16), "b3": b3p,
    }


def reference_forward_quantized(x, kp, D):
    """Pure-JAX reference mirroring the kernel's bf16/f32 mixed precision."""
    f32 = jnp.float32
    xb = x.astype(jnp.bfloat16).astype(f32)
    h = jnp.maximum(xb @ kp["w1"][:D].astype(f32) + kp["b1"], 0.0)
    hb = h.astype(jnp.bfloat16).astype(f32)
    h = jnp.maximum(hb @ kp["w2"].astype(f32) + kp["b2"], 0.0)
    hb = h.astype(jnp.bfloat16).astype(f32)
    return jnp.tanh(hb @ kp["w3"][:, :D].astype(f32) + kp["b3"][:, :D])


def reference_forward_f32(x, p):
    """Full-precision eval-mode PyTorch semantics."""
    def bn(h, bnp):
        scale = bnp["gamma"] / jnp.sqrt(bnp["var"] + bnp["eps"])
        return h * scale + (bnp["beta"] - bnp["mean"] * scale)
    h = bn(jnp.maximum(x @ p["w1"] + p["b1"], 0.0), p["bn1"])
    h = bn(jnp.maximum(h @ p["w2"] + p["b2"], 0.0), p["bn2"])
    return jnp.tanh(h @ p["w3"] + p["b3"])


if __name__ == "__main__":
    N, D = 8, 32   # batch=8, vector_dim=32
    x = jax.random.normal(jax.random.PRNGKey(0), (N, D), dtype=jnp.float32)

    params = init_params(D, hidden=HIDDEN, seed=0)
    kparams = fold_params(params)

    y = generated_network_forward(x, kparams)
    y = jax.block_until_ready(y)
    assert y.shape == (N, D)

    # Strict check vs reference with identical bf16/f32 mixed precision.
    y_q = reference_forward_quantized(x, kparams, D)
    assert jnp.allclose(y, y_q, atol=1e-2, rtol=1e-2), "mismatch vs bf16 reference"

    # Loose check vs full-f32 eval-mode PyTorch semantics (bf16 weight rounding).
    y_f = reference_forward_f32(x, params)
    assert jnp.allclose(y, y_f, atol=5e-2, rtol=5e-2), "mismatch vs f32 reference"

    print("KERNEL_OK")
</pallas_src>

<mosaic_0001>
module attributes {stable_mosaic.version = 11 : i64} {
  func.func @mlp_kernel(%arg0: i32, %arg1: memref<8x128xf32, #tpu.memory_space<vmem>>, %arg2: memref<128x1024xbf16, #tpu.memory_space<vmem>>, %arg3: memref<1x1024xf32, #tpu.memory_space<vmem>>, %arg4: memref<1024x1024xbf16, #tpu.memory_space<vmem>>, %arg5: memref<1x1024xf32, #tpu.memory_space<vmem>>, %arg6: memref<1024x128xbf16, #tpu.memory_space<vmem>>, %arg7: memref<1x128xf32, #tpu.memory_space<vmem>>, %arg8: memref<8x128xf32, #tpu.memory_space<vmem>>) attributes {dimension_semantics = [#tpu.dimension_semantics<parallel>], iteration_bounds = array<i64: 1>, scalar_prefetch = 0 : i64, scratch_operands = 0 : i64, tpu.core_type = #tpu.core_type<tc>, window_params = [{transform_indices = @transform_0, window_bounds = array<i64: 8, 128>}, {pipeline_mode = #tpu.pipeline_mode<synchronous>, transform_indices = @transform_1, window_bounds = array<i64: 128, 1024>}, {pipeline_mode = #tpu.pipeline_mode<synchronous>, transform_indices = @transform_2, window_bounds = array<i64: 1, 1024>}, {pipeline_mode = #tpu.pipeline_mode<synchronous>, transform_indices = @transform_3, window_bounds = array<i64: 1024, 1024>}, {pipeline_mode = #tpu.pipeline_mode<synchronous>, transform_indices = @transform_4, window_bounds = array<i64: 1, 1024>}, {pipeline_mode = #tpu.pipeline_mode<synchronous>, transform_indices = @transform_5, window_bounds = array<i64: 1024, 128>}, {pipeline_mode = #tpu.pipeline_mode<synchronous>, transform_indices = @transform_6, window_bounds = array<i64: 1, 128>}, {transform_indices = @transform_7, window_bounds = array<i64: 8, 128>}]} {
    %c0 = arith.constant 0 : index
    %c0_0 = arith.constant 0 : index
    %0 = vector.load %arg1[%c0, %c0_0] : memref<8x128xf32, #tpu.memory_space<vmem>>, vector<8x128xf32>
    %1 = arith.truncf %0 : vector<8x128xf32> to vector<8x128xbf16>
    %c0_1 = arith.constant 0 : index
    %c0_2 = arith.constant 0 : index
    %2 = vector.load %arg2[%c0_1, %c0_2] : memref<128x1024xbf16, #tpu.memory_space<vmem>>, vector<128x1024xbf16>
    %cst = arith.constant dense<0.000000e+00> : vector<8x1024xf32>
    %3 = tpu.matmul %1, %2, %cst {dimension_numbers = #tpu.dot_dimension_numbers<[1], [0], [0], [1], [0, 0, 1, 1], [], []>} : vector<8x128xbf16>, vector<128x1024xbf16>, vector<8x1024xf32> -> vector<8x1024xf32>
    %c0_3 = arith.constant 0 : index
    %c0_4 = arith.constant 0 : index
    %4 = vector.load %arg3[%c0_3, %c0_4] : memref<1x1024xf32, #tpu.memory_space<vmem>>, vector<1x1024xf32>
    %5 = vector.broadcast %4 : vector<1x1024xf32> to vector<8x1024xf32>
    %6 = arith.addf %3, %5 : vector<8x1024xf32>
    %cst_5 = arith.constant 0.000000e+00 : f32
    %7 = vector.broadcast %cst_5 : f32 to vector<8x1024xf32>
    %8 = arith.maximumf %6, %7 : vector<8x1024xf32>
    %9 = arith.truncf %8 : vector<8x1024xf32> to vector<8x1024xbf16>
    %c0_6 = arith.constant 0 : index
    %c0_7 = arith.constant 0 : index
    %10 = vector.load %arg4[%c0_6, %c0_7] : memref<1024x1024xbf16, #tpu.memory_space<vmem>>, vector<1024x1024xbf16>
    %cst_8 = arith.constant dense<0.000000e+00> : vector<8x1024xf32>
    %11 = tpu.matmul %9, %10, %cst_8 {dimension_numbers = #tpu.dot_dimension_numbers<[1], [0], [0], [1], [0, 0, 1, 1], [], []>} : vector<8x1024xbf16>, vector<1024x1024xbf16>, vector<8x1024xf32> -> vector<8x1024xf32>
    %c0_9 = arith.constant 0 : index
    %c0_10 = arith.constant 0 : index
    %12 = vector.load %arg5[%c0_9, %c0_10] : memref<1x1024xf32, #tpu.memory_space<vmem>>, vector<1x1024xf32>
    %13 = vector.broadcast %12 : vector<1x1024xf32> to vector<8x1024xf32>
    %14 = arith.addf %11, %13 : vector<8x1024xf32>
    %cst_11 = arith.constant 0.000000e+00 : f32
    %15 = vector.broadcast %cst_11 : f32 to vector<8x1024xf32>
    %16 = arith.maximumf %14, %15 : vector<8x1024xf32>
    %17 = arith.truncf %16 : vector<8x1024xf32> to vector<8x1024xbf16>
    %c0_12 = arith.constant 0 : index
    %c0_13 = arith.constant 0 : index
    %18 = vector.load %arg6[%c0_12, %c0_13] : memref<1024x128xbf16, #tpu.memory_space<vmem>>, vector<1024x128xbf16>
    %cst_14 = arith.constant dense<0.000000e+00> : vector<8x128xf32>
    %19 = tpu.matmul %17, %18, %cst_14 {dimension_numbers = #tpu.dot_dimension_numbers<[1], [0], [0], [1], [0, 0, 1, 1], [], []>} : vector<8x1024xbf16>, vector<1024x128xbf16>, vector<8x128xf32> -> vector<8x128xf32>
    %c0_15 = arith.constant 0 : index
    %c0_16 = arith.constant 0 : index
    %20 = vector.load %arg7[%c0_15, %c0_16] : memref<1x128xf32, #tpu.memory_space<vmem>>, vector<1x128xf32>
    %21 = vector.broadcast %20 : vector<1x128xf32> to vector<8x128xf32>
    %22 = arith.addf %19, %21 : vector<8x128xf32>
    %23 = math.tanh %22 : vector<8x128xf32>
    %c0_17 = arith.constant 0 : index
    %c0_18 = arith.constant 0 : index
    %24 = vector.load %arg8[%c0_17, %c0_18] : memref<8x128xf32, #tpu.memory_space<vmem>>, vector<8x128xf32>
    tpu.vector_store %arg8[%c0_17, %c0_18], %23 {strides = array<i32>} : memref<8x128xf32, #tpu.memory_space<vmem>>, vector<8x128xf32>,
    return
  }
  func.func @transform_0(%arg0: i32) -> (i32, i32) {
    %c0_i32 = arith.constant 0 : i32
    %c0_i32_0 = arith.constant 0 : i32
    return %arg0, %c0_i32 : i32, i32
  }
  func.func @transform_1(%arg0: i32) -> (i32, i32) {
    %c0_i32 = arith.constant 0 : i32
    %c0_i32_0 = arith.constant 0 : i32
    %c0_i32_1 = arith.constant 0 : i32
    return %c0_i32, %c0_i32_0 : i32, i32
  }
  func.func @transform_2(%arg0: i32) -> (i32, i32) {
    %c0_i32 = arith.constant 0 : i32
    %c0_i32_0 = arith.constant 0 : i32
    %c0_i32_1 = arith.constant 0 : i32
    return %c0_i32, %c0_i32_0 : i32, i32
  }
  func.func @transform_3(%arg0: i32) -> (i32, i32) {
    %c0_i32 = arith.constant 0 : i32
    %c0_i32_0 = arith.constant 0 : i32
    %c0_i32_1 = arith.constant 0 : i32
    return %c0_i32, %c0_i32_0 : i32, i32
  }
  func.func @transform_4(%arg0: i32) -> (i32, i32) {
    %c0_i32 = arith.constant 0 : i32
    %c0_i32_0 = arith.constant 0 : i32
    %c0_i32_1 = arith.constant 0 : i32
    return %c0_i32, %c0_i32_0 : i32, i32
  }
  func.func @transform_5(%arg0: i32) -> (i32, i32) {
    %c0_i32 = arith.constant 0 : i32
    %c0_i32_0 = arith.constant 0 : i32
    %c0_i32_1 = arith.constant 0 : i32
    return %c0_i32, %c0_i32_0 : i32, i32
  }
  func.func @transform_6(%arg0: i32) -> (i32, i32) {
    %c0_i32 = arith.constant 0 : i32
    %c0_i32_0 = arith.constant 0 : i32
    %c0_i32_1 = arith.constant 0 : i32
    return %c0_i32, %c0_i32_0 : i32, i32
  }
  func.func @transform_7(%arg0: i32) -> (i32, i32) {
    %c0_i32 = arith.constant 0 : i32
    %c0_i32_0 = arith.constant 0 : i32
    return %arg0, %c0_i32 : i32, i32
  }
}

</mosaic_0001>

<bundles_post_ra>
// kernel: tpu_custom_call.1
= control target key start
LH: loop header
LB: loop body
LE: loop exit
PB: predicated region body
PF: predicated region fallthrough
CT: control target
= control target key end

     0   :  { %12 = vsyncpa [#allocation3], 0  ;;  %s6447_s0 = inlined_call_operand.hbm [shape: f32[8,128], index: 0, kind: input, shape index: {}]   ;;  %s6448_s1 = inlined_call_operand.hbm [shape: bf16[128,1024], index: 1, kind: input, shape index: {}]   ;;  %s6449_s2 = inlined_call_operand.hbm [shape: f32[1,1024], index: 2, kind: input, shape index: {}]   ;;  %s6450_s3 = inlined_call_operand.hbm [shape: bf16[1024,1024], index: 3, kind: input, shape index: {}]   ;;  %s6451_s4 = inlined_call_operand.hbm [shape: f32[1,1024], index: 4, kind: input, shape index: {}]   ;;  %s6452_s5 = inlined_call_operand.hbm [shape: bf16[1024,128], index: 5, kind: input, shape index: {}]   ;;  %s6453_s6 = inlined_call_operand.hbm [shape: f32[1,128], index: 6, kind: input, shape index: {}]   ;;  %s6454_s7 = inlined_call_operand.hbm [shape: f32[8,128], index: 7, kind: output, shape index: {}]  }
   0x1   :  { %13 = vsyncpa [#allocation6], 0 }
   0x2   :  { %14 = vsyncpa [#allocation9], 0 }
   0x3   :  { %15 = vsyncpa [#allocation12], 0 }
   0x4   :  { %16 = vsyncpa [#allocation4], 0  ;;  %s6187_s24 = smov [#allocation5]  }
   0x5   :  { %s32_s25 = sshll.u32 %s6187_s24, 4  ;;  %s33_s25 = int_to_ptr.vmem [resolvable:$true] %s32_s25 }
   0x6   :  { %s6025_s26 = scalar_lea.vmem %s33_s25, 8192  ;;  %p6030_p1 = scmp.lt.s32.totalorder %s33_s25, %s33_s25 }
   0x7   :  { %p6026_p0 = scmp.ne.s32.totalorder %s33_s25, %s6025_s26  ;;  %p6031_p2 = scmp.lt.s32.totalorder %s6025_s26, %s6025_s26 }
   0x9   :  { %p6032_p3 = por %p6031_p2, %p6030_p1 }
   0xb   :  { %p6033_p4 = pnand %p6032_p3, %p6026_p0 }
   0xd   :  { %6036 = shalt.err (!%p6033_p4)
}
   0xe   :  { %s6188_s27 = smov 512   ;;  %s6189_s28 = smov 32  }
   0xf   :  { %38 = dma.hbm_to_vmem [thread:$0]  %s6448_s1, 8192, %s33_s25, [#allocation6], %s6188_s27, %s6188_s27, %s6189_s28  }
  0x10   :  { %s6190_s8 = smov [#allocation8]   ;;  %s6191_s10 = smov [#allocation11]  }
  0x11   :  { %s54_s9 = sshll.u32 %s6190_s8, 4  ;;  %s76_s11 = sshll.u32 %s6191_s10, 4  ;;  %s55_s9 = int_to_ptr.vmem [resolvable:$true] %s54_s9  ;;  %s77_s11 = int_to_ptr.vmem [resolvable:$true] %s76_s11 }
  0x12   :  { %s6045_s12 = scalar_lea.vmem %s55_s9, 65536  ;;  %p6050_p6 = scmp.lt.s32.totalorder %s55_s9, %s55_s9 }
  0x13   :  { %p6046_p5 = scmp.ne.s32.totalorder %s55_s9, %s6045_s12  ;;  %p6051_p7 = scmp.lt.s32.totalorder %s6045_s12, %s6045_s12 }
  0x15   :  { %p6052_p8 = por %p6051_p7, %p6050_p6 }
  0x17   :  { %p6053_p9 = pnand %p6052_p8, %p6046_p5 }
  0x19   :  { %6056 = shalt.err (!%p6053_p9)
}
  0x1a   :  { %60 = dma.hbm_to_vmem [thread:$0]  %s6450_s3, 65536, %s55_s9, [#allocation9], %s6188_s27, %s6188_s27, %s6189_s28  }
  0x1b   :  { %s6065_s15 = scalar_lea.vmem %s77_s11, 8192  ;;  %p6070_p11 = scmp.lt.s32.totalorder %s77_s11, %s77_s11 }
  0x1c   :  { %p6066_p10 = scmp.ne.s32.totalorder %s77_s11, %s6065_s15  ;;  %p6071_p12 = scmp.lt.s32.totalorder %s6065_s15, %s6065_s15 }
  0x1e   :  { %p6072_p13 = por %p6071_p12, %p6070_p11 }
  0x20   :  { %p6073_p0 = pnand %p6072_p13, %p6066_p10 }
  0x22   :  { %6076 = shalt.err (!%p6073_p0)
}
  0x23   :  { %s6192_s1 = smov 64   ;;  %s6193_s16 = smov 4  }
  0x24   :  { %82 = dma.hbm_to_vmem [thread:$0]  %s6452_s5, 8192, %s77_s11, [#allocation12], %s6192_s1, %s6192_s1, %s6193_s16  }
  0x25   :  { %s6194_s19 = smov [#allocation2]   ;;  %s6195_s21 = smov [#allocation7]  }
  0x26   :  { %s23_s20 = sshll.u32 %s6194_s19, 4  ;;  %s45_s22 = sshll.u32 %s6195_s21, 4  ;;  %s24_s20 = int_to_ptr.vmem [resolvable:$true] %s23_s20  ;;  %s46_s22 = int_to_ptr.vmem [resolvable:$true] %s45_s22 }
  0x27   :  { %s6085_s3 = scalar_lea.vmem %s24_s20, 128  ;;  %p6090_p2 = scmp.lt.s32.totalorder %s24_s20, %s24_s20 }
  0x28   :  { %p6086_p1 = scmp.ne.s32.totalorder %s24_s20, %s6085_s3  ;;  %p6091_p3 = scmp.lt.s32.totalorder %s6085_s3, %s6085_s3 }
  0x2a   :  { %p6092_p4 = por %p6091_p3, %p6090_p2 }
  0x2c   :  { %p6093_p5 = pnand %p6092_p4, %p6086_p1 }
  0x2e   :  { %6096 = shalt.err (!%p6093_p5)
}
  0x2f   :  { %26 = dma.hbm_to_vmem [thread:$0]  %s6447_s0, 128, %s24_s20, [#allocation3]  }
  0x30   :  { %s6105_s25 = scalar_lea.vmem %s46_s22, 128  ;;  %p6110_p7 = scmp.lt.s32.totalorder %s46_s22, %s46_s22 }
  0x31   :  { %p6106_p6 = scmp.ne.s32.totalorder %s46_s22, %s6105_s25  ;;  %p6111_p8 = scmp.lt.s32.totalorder %s6105_s25, %s6105_s25 }
  0x33   :  { %p6112_p9 = por %p6111_p8, %p6110_p7 }
  0x35   :  { %p6113_p10 = pnand %p6112_p9, %p6106_p6 }
  0x37   :  { %6116 = shalt.err (!%p6113_p10)
}
  0x38   :  { %48 = dma.hbm_to_vmem [thread:$0]  %s6449_s2, 128, %s46_s22, [#allocation6]  }
  0x39   :  { %s6196_s27 = smov [#allocation10]   ;;  %s6197_s29 = smov [#allocation13]  }
  0x3a   :  { %s67_s28 = sshll.u32 %s6196_s27, 4  ;;  %s89_s30 = sshll.u32 %s6197_s29, 4  ;;  %s68_s28 = int_to_ptr.vmem [resolvable:$true] %s67_s28  ;;  %s90_s30 = int_to_ptr.vmem [resolvable:$true] %s89_s30 }
  0x3b   :  { %s6125_s8 = scalar_lea.vmem %s68_s28, 128  ;;  %p6130_p12 = scmp.lt.s32.totalorder %s68_s28, %s68_s28 }
  0x3c   :  { %p6126_p11 = scmp.ne.s32.totalorder %s68_s28, %s6125_s8  ;;  %p6131_p13 = scmp.lt.s32.totalorder %s6125_s8, %s6125_s8 }
  0x3e   :  { %p6132_p0 = por %p6131_p13, %p6130_p12 }
  0x40   :  { %p6133_p1 = pnand %p6132_p0, %p6126_p11 }
  0x42   :  { %6136 = shalt.err (!%p6133_p1)
}
  0x43   :  { %70 = dma.hbm_to_vmem [thread:$0]  %s6451_s4, 128, %s68_s28, [#allocation9]  }
  0x44   :  { %s6145_s10 = scalar_lea.vmem %s90_s30, 16  ;;  %s6149_s2 = scalar_lea.vmem %s90_s30, 32 }
  0x45   :  { %p6146_p2 = scmp.ne.s32.totalorder %s90_s30, %s6145_s10  ;;  %p6150_p3 = scmp.lt.s32.totalorder %s90_s30, %s90_s30 }
  0x46   :  { %p6151_p4 = scmp.lt.s32.totalorder %s6149_s2, %s6145_s10 }
  0x48   :  { %p6152_p5 = por %p6151_p4, %p6150_p3 }
  0x4a   :  { %p6153_p6 = pnand %p6152_p5, %p6146_p2 }
  0x4c   :  { %6156 = shalt.err (!%p6153_p6)
}
  0x4d   :  { %92 = dma.hbm_to_vmem [thread:$0]  %s6453_s6, 16, %s90_s30, [#allocation12]  }
  0x4e   :  { %6177 = dma.done.wait [#allocation3], 128  }
  0x4f   :  { %6178 = vsyncadd [#allocation3], 4294967168 }
  0x50   :  { %6179 = dma.done.wait [#allocation6], 8320  }
  0x51   :  { %6180 = vsyncadd [#allocation6], 4294958976 }
  0x52   :  { %6181 = dma.done.wait [#allocation9], 65664  }
  0x53   :  { %6182 = vsyncadd [#allocation9], 4294901632 }
  0x54   :  { %6183 = dma.done.wait [#allocation12], 8208  }
  0x55   :  { %6184 = vsyncadd [#allocation12], 4294959088  ;;  %v6198_v0 = vmov 0   ;;  %v173_v1 = vld [vmem:[#allocation5 + $0x1c0] sm:$0xff]  ;;  %v174_v3 = vld [vmem:[#allocation5 + $0x1c8] sm:$0xff]  ;;  %s6199_s4 = smov [#allocation14]  }
  0x56   :  { %575 = vmatprep.mubr.bf16.mxu0 %v6198_v0  ;;  %616 = vmatprep.mubr.bf16.mxu1 %v6198_v0  ;;  %v177_v2 = vld [vmem:[#allocation5 + $0x1e0] sm:$0xff]  ;;  %v178_v5 = vld [vmem:[#allocation5 + $0x1e8] sm:$0xff]  ;;  %v175_v63 = vld [vmem:[#allocation5 + $0x1d0] sm:$0xff]  ;;  %s5196_s6 = sshll.u32 %s6199_s4, 4  ;;  %s5197_s6 = int_to_ptr.vmem [resolvable:$true] %s5196_s6 }
  0x57   :  { %v5265_v4 = vcombine.high %v173_v1, %v177_v2  ;;  %v5264_v6 = vcombine.low %v173_v1, %v177_v2  ;;  %v165_v7 = vld [vmem:[#allocation5 + $0x180] sm:$0xff]  ;;  %v5267_v9 = vcombine.high %v174_v3, %v178_v5  ;;  %v5266_v10 = vcombine.low %v174_v3, %v178_v5  ;;  %v166_v12 = vld [vmem:[#allocation5 + $0x188] sm:$0xff]  ;;  %v179_v1 = vld [vmem:[#allocation5 + $0x1f0] sm:$0xff]  ;;  %s6157_s13 = scalar_lea.vmem %s5197_s6, 128  ;;  %p6162_p8 = scmp.lt.s32.totalorder %s5197_s6, %s5197_s6 }
  0x58   :  { %v169_v8 = vld [vmem:[#allocation5 + $0x1a0] sm:$0xff]  ;;  %v170_v13 = vld [vmem:[#allocation5 + $0x1a8] sm:$0xff]  ;;  %v176_v2 = vld [vmem:[#allocation5 + $0x1d8] sm:$0xff]  ;;  %p6158_p7 = scmp.ne.s32.totalorder %s5197_s6, %s6157_s13  ;;  %p6163_p9 = scmp.lt.s32.totalorder %s6157_s13, %s6157_s13 }
  0x59   :  { %v5257_v11 = vcombine.high %v165_v7, %v169_v8  ;;  %v157_v14 = vld [vmem:[#allocation5 + $0x140] sm:$0xff]  ;;  %543 = vmatprep.subr.bf16.mxu0 %v5265_v4  ;;  %v5259_v15 = vcombine.high %v166_v12, %v170_v13  ;;  %v158_v17 = vld [vmem:[#allocation5 + $0x148] sm:$0xff]  ;;  %584 = vmatprep.subr.bf16.mxu1 %v5267_v9  ;;  %v5256_v19 = vcombine.low %v165_v7, %v169_v8  ;;  %v180_v3 = vld [vmem:[#allocation5 + $0x1f8] sm:$0xff] }
  0x5a   :  { %v161_v16 = vld [vmem:[#allocation5 + $0x160] sm:$0xff]  ;;  %v162_v18 = vld [vmem:[#allocation5 + $0x168] sm:$0xff]  ;;  %544 = vmatpush1.bf16.msra.mxu0 %v5264_v6  ;;  %585 = vmatpush1.bf16.msra.mxu1 %v5266_v10  ;;  %v5258_v20 = vcombine.low %v166_v12, %v170_v13  ;;  %v115_v5 = vld [vmem:[#allocation2] sm:$0xff]  ;;  %v5269_v7 = vcombine.high %v175_v63, %v179_v1  ;;  %v5271_v8 = vcombine.high %v176_v2, %v180_v3  ;;  %p6164_p10 = por %p6163_p9, %p6162_p8 }
  0x5b   :  { %545 = vmatprep.subr.bf16.mxu0 %v5257_v11  ;;  %v5249_v21 = vcombine.high %v157_v14, %v161_v16  ;;  %586 = vmatprep.subr.bf16.mxu1 %v5259_v15  ;;  %v5251_v22 = vcombine.high %v158_v17, %v162_v18  ;;  %v149_v23 = vld [vmem:[#allocation5 + $0x100] sm:$0xff]  ;;  %v150_v25 = vld [vmem:[#allocation5 + $0x108] sm:$0xff]  ;;  %v5248_v27 = vcombine.low %v157_v14, %v161_v16  ;;  %v167_v9 = vld [vmem:[#allocation5 + $0x190] sm:$0xff] }
  0x5c   :  { %v153_v24 = vld [vmem:[#allocation5 + $0x120] sm:$0xff]  ;;  %v154_v26 = vld [vmem:[#allocation5 + $0x128] sm:$0xff]  ;;  %v5250_v28 = vcombine.low %v158_v17, %v162_v18  ;;  %v171_v10 = vld [vmem:[#allocation5 + $0x1b0] sm:$0xff]  ;;  %v6263_v11 = vpack.c.bf16 %v115_v5, %v115_v5  ;;  %v5268_v14 = vcombine.low %v175_v63, %v179_v1  ;;  %v5270_v15 = vcombine.low %v176_v2, %v180_v3  ;;  %p6165_p11 = pnand %p6164_p10, %p6158_p7 }
  0x5d   :  { %v5241_v29 = vcombine.high %v149_v23, %v153_v24  ;;  %v5243_v30 = vcombine.high %v150_v25, %v154_v26  ;;  %v141_v31 = vld [vmem:[#allocation5 + $0xc0] sm:$0xff]  ;;  %v142_v33 = vld [vmem:[#allocation5 + $0xc8] sm:$0xff]  ;;  %v5240_v35 = vcombine.low %v149_v23, %v153_v24  ;;  %v5242_v36 = vcombine.low %v150_v25, %v154_v26  ;;  %v168_v12 = vld [vmem:[#allocation5 + $0x198] sm:$0xff] }
  0x5e   :  { %546 = vmatpush1.bf16.msra.mxu0 %v5256_v19  ;;  %587 = vmatpush1.bf16.msra.mxu1 %v5258_v20  ;;  %v145_v32 = vld [vmem:[#allocation5 + $0xe0] sm:$0xff]  ;;  %v146_v34 = vld [vmem:[#allocation5 + $0xe8] sm:$0xff]  ;;  %v172_v13 = vld [vmem:[#allocation5 + $0x1b8] sm:$0xff]  ;;  %v5261_v16 = vcombine.high %v167_v9, %v171_v10 }
  0x5f   :  { %547 = vmatprep.subr.bf16.mxu0 %v5249_v21  ;;  %588 = vmatprep.subr.bf16.mxu1 %v5251_v22  ;;  %v5233_v37 = vcombine.high %v141_v31, %v145_v32  ;;  %v5235_v38 = vcombine.high %v142_v33, %v146_v34  ;;  %v133_v39 = vld [vmem:[#allocation5 + $0x80] sm:$0xff]  ;;  %v134_v41 = vld [vmem:[#allocation5 + $0x88] sm:$0xff]  ;;  %v5232_v43 = vcombine.low %v141_v31, %v145_v32  ;;  %v159_v18 = vld [vmem:[#allocation5 + $0x150] sm:$0xff] }
  0x60   :  { %v137_v40 = vld [vmem:[#allocation5 + $0xa0] sm:$0xff]  ;;  %v138_v42 = vld [vmem:[#allocation5 + $0xa8] sm:$0xff]  ;;  %v5234_v44 = vcombine.low %v142_v33, %v146_v34  ;;  %v5263_v17 = vcombine.high %v168_v12, %v172_v13  ;;  %v163_v19 = vld [vmem:[#allocation5 + $0x170] sm:$0xff]  ;;  %v5260_v22 = vcombine.low %v167_v9, %v171_v10  ;;  %v5262_v23 = vcombine.low %v168_v12, %v172_v13 }
  0x61   :  { %v5225_v45 = vcombine.high %v133_v39, %v137_v40  ;;  %v5227_v46 = vcombine.high %v134_v41, %v138_v42  ;;  %v125_v47 = vld [vmem:[#allocation5 + $0x40] sm:$0xff]  ;;  %v126_v49 = vld [vmem:[#allocation5 + $0x48] sm:$0xff]  ;;  %v5224_v51 = vcombine.low %v133_v39, %v137_v40  ;;  %v5226_v52 = vcombine.low %v134_v41, %v138_v42  ;;  %v160_v20 = vld [vmem:[#allocation5 + $0x158] sm:$0xff] }
  0x62   :  { %548 = vmatpush1.bf16.msra.mxu0 %v5248_v27  ;;  %589 = vmatpush1.bf16.msra.mxu1 %v5250_v28  ;;  %v129_v48 = vld [vmem:[#allocation5 + $0x60] sm:$0xff]  ;;  %v130_v50 = vld [vmem:[#allocation5 + $0x68] sm:$0xff]  ;;  %v164_v21 = vld [vmem:[#allocation5 + $0x178] sm:$0xff]  ;;  %v5253_v24 = vcombine.high %v159_v18, %v163_v19 }
  0x63   :  { %549 = vmatprep.subr.bf16.mxu0 %v5241_v29  ;;  %590 = vmatprep.subr.bf16.mxu1 %v5243_v30  ;;  %v5217_v53 = vcombine.high %v125_v47, %v129_v48  ;;  %v5219_v54 = vcombine.high %v126_v49, %v130_v50  ;;  %v117_v55 = vld [vmem:[#allocation5] sm:$0xff]  ;;  %v118_v57 = vld [vmem:[#allocation5 + $0x8] sm:$0xff]  ;;  %v5216_v59 = vcombine.low %v125_v47, %v129_v48  ;;  %v151_v26 = vld [vmem:[#allocation5 + $0x110] sm:$0xff] }
  0x64   :  { %v121_v56 = vld [vmem:[#allocation5 + $0x20] sm:$0xff]  ;;  %v122_v58 = vld [vmem:[#allocation5 + $0x28] sm:$0xff]  ;;  %v5218_v60 = vcombine.low %v126_v49, %v130_v50  ;;  %v5255_v25 = vcombine.high %v160_v20, %v164_v21  ;;  %v155_v27 = vld [vmem:[#allocation5 + $0x130] sm:$0xff]  ;;  %v5252_v30 = vcombine.low %v159_v18, %v163_v19  ;;  %v5254_v33 = vcombine.low %v160_v20, %v164_v21 }
  0x65   :  { %v5209_v61 = vcombine.high %v117_v55, %v121_v56  ;;  %v5211_v62 = vcombine.high %v118_v57, %v122_v58  ;;  %v5208_v4 = vcombine.low %v117_v55, %v121_v56  ;;  %v5210_v6 = vcombine.low %v118_v57, %v122_v58  ;;  %v152_v28 = vld [vmem:[#allocation5 + $0x118] sm:$0xff]  ;;  %v143_v31 = vld [vmem:[#allocation5 + $0xd0] sm:$0xff]  ;;  %v783_v63 = vld [vmem:[#allocation8 + $0x1e0] sm:$0xff] }
  0x66   :  { %550 = vmatpush1.bf16.msra.mxu0 %v5240_v35  ;;  %591 = vmatpush1.bf16.msra.mxu1 %v5242_v36  ;;  %v156_v29 = vld [vmem:[#allocation5 + $0x138] sm:$0xff]  ;;  %v147_v32 = vld [vmem:[#allocation5 + $0xf0] sm:$0xff]  ;;  %v5245_v34 = vcombine.high %v151_v26, %v155_v27  ;;  %v907_v3 = vld [vmem:[#allocation8 + $0x5c0] sm:$0xff] }
  0x67   :  { %551 = vmatprep.subr.bf16.mxu0 %v5233_v37  ;;  %592 = vmatprep.subr.bf16.mxu1 %v5235_v38  ;;  %v144_v35 = vld [vmem:[#allocation5 + $0xd8] sm:$0xff]  ;;  %v5247_v37 = vcombine.high %v152_v28, %v156_v29  ;;  %v5244_v38 = vcombine.low %v151_v26, %v155_v27  ;;  %v135_v39 = vld [vmem:[#allocation5 + $0x90] sm:$0xff]  ;;  %v5246_v41 = vcombine.low %v152_v28, %v156_v29  ;;  %v899_v12 = vld [vmem:[#allocation8 + $0x580] sm:$0xff] }
  0x68   :  { %v148_v36 = vld [vmem:[#allocation5 + $0xf8] sm:$0xff]  ;;  %v139_v40 = vld [vmem:[#allocation5 + $0xb0] sm:$0xff]  ;;  %v903_v13 = vld [vmem:[#allocation8 + $0x5a0] sm:$0xff] }
  0x69   :  { %v136_v42 = vld [vmem:[#allocation5 + $0x98] sm:$0xff]  ;;  %v131_v47 = vld [vmem:[#allocation5 + $0x70] sm:$0xff]  ;;  %v5238_v48 = vcombine.low %v144_v35, %v148_v36  ;;  %v5229_v49 = vcombine.high %v135_v39, %v139_v40  ;;  %v891_v20 = vld [vmem:[#allocation8 + $0x540] sm:$0xff]  ;;  %v5448_v26 = vcombine.low %v899_v12, %v903_v13 }
  0x6a   :  { %552 = vmatpush1.bf16.msra.mxu0 %v5232_v43  ;;  %593 = vmatpush1.bf16.msra.mxu1 %v5234_v44  ;;  %v140_v43 = vld [vmem:[#allocation5 + $0xb8] sm:$0xff]  ;;  %v5239_v44 = vcombine.high %v144_v35, %v148_v36  ;;  %v123_v55 = vld [vmem:[#allocation5 + $0x30] sm:$0xff]  ;;  %v895_v21 = vld [vmem:[#allocation8 + $0x560] sm:$0xff] }
  0x6b   :  { %553 = vmatprep.subr.bf16.mxu0 %v5225_v45  ;;  %594 = vmatprep.subr.bf16.mxu1 %v5227_v46  ;;  %v5236_v45 = vcombine.low %v143_v31, %v147_v32  ;;  %v127_v46 = vld [vmem:[#allocation5 + $0x50] sm:$0xff]  ;;  %v128_v50 = vld [vmem:[#allocation5 + $0x58] sm:$0xff]  ;;  %v5230_v56 = vcombine.low %v136_v42, %v140_v43  ;;  %v883_v28 = vld [vmem:[#allocation8 + $0x500] sm:$0xff] }
  0x6c   :  { %v5221_v57 = vcombine.high %v127_v46, %v131_v47  ;;  %v120_v58 = vld [vmem:[#allocation5 + $0x18] sm:$0xff]  ;;  %v887_v29 = vld [vmem:[#allocation8 + $0x520] sm:$0xff] }
  0x6d   :  { %v875_v35 = vld [vmem:[#allocation8 + $0x4c0] sm:$0xff] }
  0x6e   :  { %554 = vmatpush1.bf16.msra.mxu0 %v5224_v51  ;;  %595 = vmatpush1.bf16.msra.mxu1 %v5226_v52  ;;  %v132_v51 = vld [vmem:[#allocation5 + $0x78] sm:$0xff]  ;;  %v5231_v52 = vcombine.high %v136_v42, %v140_v43  ;;  %v879_v36 = vld [vmem:[#allocation8 + $0x4e0] sm:$0xff] }
  0x6f   :  { %555 = vmatprep.subr.bf16.mxu0 %v5217_v53  ;;  %596 = vmatprep.subr.bf16.mxu1 %v5219_v54  ;;  %v5228_v53 = vcombine.low %v135_v39, %v139_v40  ;;  %v119_v54 = vld [vmem:[#allocation5 + $0x10] sm:$0xff]  ;;  %v5222_v1 = vcombine.low %v128_v50, %v132_v51  ;;  %v739_v39 = vld [vmem:[#allocation8 + $0x80] sm:$0xff] }
  0x70   :  { %v5213_v2 = vcombine.high %v119_v54, %v123_v55  ;;  %v743_v40 = vld [vmem:[#allocation8 + $0xa0] sm:$0xff] }
  0x71   :  { %v867_v42 = vld [vmem:[#allocation8 + $0x480] sm:$0xff] }
  0x72   :  { %556 = vmatpush1.bf16.msra.mxu0 %v5216_v59  ;;  %597 = vmatpush1.bf16.msra.mxu1 %v5218_v60  ;;  %v124_v59 = vld [vmem:[#allocation5 + $0x38] sm:$0xff]  ;;  %v5223_v60 = vcombine.high %v128_v50, %v132_v51  ;;  %v871_v43 = vld [vmem:[#allocation8 + $0x4a0] sm:$0xff] }
  0x73   :  { %557 = vmatprep.subr.bf16.mxu0 %v5209_v61  ;;  %598 = vmatprep.subr.bf16.mxu1 %v5211_v62  ;;  %v5220_v61 = vcombine.low %v127_v46, %v131_v47  ;;  %v779_v62 = vld [vmem:[#allocation8 + $0x1c0] sm:$0xff]  ;;  %v5215_v5 = vcombine.high %v120_v58, %v124_v59  ;;  %v5214_v9 = vcombine.low %v120_v58, %v124_v59 }
  0x74   :  { %v5329_v10 = vcombine.high %v779_v62, %v783_v63  ;;  %v731_v46 = vld [vmem:[#allocation8 + $0x40] sm:$0xff]  ;;  %v5417_v50 = vcombine.high %v867_v42, %v871_v43 }
  0x75   :  { %v735_v47 = vld [vmem:[#allocation8 + $0x60] sm:$0xff] }
  0x76   :  { %558 = vmatpush1.bf16.msra.mxu0 %v5208_v4  ;;  %599 = vmatpush1.bf16.msra.mxu1 %v5210_v6  ;;  %v911_v4 = vld [vmem:[#allocation8 + $0x5e0] sm:$0xff]  ;;  %v5212_v6 = vcombine.low %v119_v54, %v123_v55  ;;  %v5416_v54 = vcombine.low %v867_v42, %v871_v43  ;;  %v5281_v55 = vcombine.high %v731_v46, %v735_v47 }
  0x77   :  { %625 = vmatprep.subr.bf16.mxu0 %v5269_v7  ;;  %666 = vmatprep.subr.bf16.mxu1 %v5271_v8  ;;  %v771_v7 = vld [vmem:[#allocation8 + $0x180] sm:$0xff]  ;;  %v5456_v18 = vcombine.low %v907_v3, %v911_v4 }
  0x78   :  { %v775_v8 = vld [vmem:[#allocation8 + $0x1a0] sm:$0xff] }
  0x79   :  { %576 = vmatmul.mubr.bf16.vlgmr.msra.gmra.mxu0 %v6263_v11  ;;  %617 = vmatmul.mubr.bf16.vlgmr.msra.gmra.mxu1 %v6263_v11  ;;  %v5321_v19 = vcombine.high %v771_v7, %v775_v8  ;;  %v859_v51 = vld [vmem:[#allocation8 + $0x440] sm:$0xff] }
  0x7a   :  { %626 = vmatpush1.bf16.msra.mxu0 %v5268_v14  ;;  %667 = vmatpush1.bf16.msra.mxu1 %v5270_v15  ;;  %v5457_v14 = vcombine.high %v907_v3, %v911_v4  ;;  %v5328_v15 = vcombine.low %v779_v62, %v783_v63  ;;  %v727_v58 = vld [vmem:[#allocation8 + $0x20] sm:$0xff] }
  0x7b   :  { %627 = vmatprep.subr.bf16.mxu0 %v5261_v16  ;;  %668 = vmatprep.subr.bf16.mxu1 %v5263_v17  ;;  %v763_v16 = vld [vmem:[#allocation8 + $0x140] sm:$0xff] }
  0x7c   :  { %657 = vmatprep.mubr.bf16.mxu0 %v6198_v0  ;;  %698 = vmatprep.mubr.bf16.mxu1 %v6198_v0  ;;  %v5237_v0 = vcombine.high %v143_v31, %v147_v32  ;;  %v767_v17 = vld [vmem:[#allocation8 + $0x160] sm:$0xff] }
  0x7d   :  { %v5313_v27 = vcombine.high %v763_v16, %v767_v17  ;;  %v5312_v31 = vcombine.low %v763_v16, %v767_v17  ;;  %v747_v32 = vld [vmem:[#allocation8 + $0xc0] sm:$0xff] }
  0x7e   :  { %628 = vmatpush1.bf16.msra.mxu0 %v5260_v22  ;;  %669 = vmatpush1.bf16.msra.mxu1 %v5262_v23  ;;  %v5449_v22 = vcombine.high %v899_v12, %v903_v13  ;;  %v5320_v23 = vcombine.low %v771_v7, %v775_v8  ;;  %v851_v59 = vld [vmem:[#allocation8 + $0x400] sm:$0xff] }
  0x7f   :  { %629 = vmatprep.subr.bf16.mxu0 %v5253_v24  ;;  %670 = vmatprep.subr.bf16.mxu1 %v5255_v25  ;;  %v755_v24 = vld [vmem:[#allocation8 + $0x100] sm:$0xff] }
  0x80   :  { %v759_v25 = vld [vmem:[#allocation8 + $0x120] sm:$0xff] }
  0x81   :  { %v847_v3 = vld [vmem:[#allocation8 + $0x3e0] sm:$0xff] }
  0x82   :  { %630 = vmatpush1.bf16.msra.mxu0 %v5252_v30  ;;  %671 = vmatpush1.bf16.msra.mxu1 %v5254_v33  ;;  %v5441_v30 = vcombine.high %v891_v20, %v895_v21  ;;  %v751_v33 = vld [vmem:[#allocation8 + $0xe0] sm:$0xff] }
  0x83   :  { %631 = vmatprep.subr.bf16.mxu0 %v5245_v34  ;;  %672 = vmatprep.subr.bf16.mxu1 %v5247_v37  ;;  %v5440_v34 = vcombine.low %v891_v20, %v895_v21  ;;  %v5433_v37 = vcombine.high %v883_v28, %v887_v29  ;;  %v971_v4 = vld [vmem:[#allocation8 + $0x7c0] sm:$0xff] }
  0x84   :  { %v839_v12 = vld [vmem:[#allocation8 + $0x3a0] sm:$0xff] }
  0x85   :  { %v963_v13 = vld [vmem:[#allocation8 + $0x780] sm:$0xff] }
  0x86   :  { %632 = vmatpush1.bf16.msra.mxu0 %v5244_v38  ;;  %673 = vmatpush1.bf16.msra.mxu1 %v5246_v41  ;;  %v5304_v38 = vcombine.low %v755_v24, %v759_v25  ;;  %v5432_v41 = vcombine.low %v883_v28, %v887_v29  ;;  %v831_v20 = vld [vmem:[#allocation8 + $0x360] sm:$0xff] }
  0x87   :  { %633 = vmatprep.subr.bf16.mxu0 %v5237_v0  ;;  %674 = vmatprep.subr.bf16.mxu1 %v5239_v44  ;;  %v5297_v0 = vcombine.high %v747_v32, %v751_v33  ;;  %v5425_v44 = vcombine.high %v875_v35, %v879_v36  ;;  %v955_v21 = vld [vmem:[#allocation8 + $0x740] sm:$0xff] }
  0x88   :  { %v823_v28 = vld [vmem:[#allocation8 + $0x320] sm:$0xff] }
  0x89   :  { %v947_v29 = vld [vmem:[#allocation8 + $0x700] sm:$0xff] }
  0x8a   :  { %634 = vmatpush1.bf16.msra.mxu0 %v5236_v45  ;;  %675 = vmatpush1.bf16.msra.mxu1 %v5238_v48  ;;  %v5296_v45 = vcombine.low %v747_v32, %v751_v33  ;;  %v5424_v48 = vcombine.low %v875_v35, %v879_v36  ;;  %v6271_v36 = vld [vmem:[#allocation8 + $0x9c0] sm:$0xff] }
  0x8b   :  { %635 = vmatprep.subr.bf16.mxu0 %v5229_v49  ;;  %676 = vmatprep.subr.bf16.mxu1 %v5231_v52  ;;  %v5289_v49 = vcombine.high %v739_v39, %v743_v40  ;;  %v863_v52 = vld [vmem:[#allocation8 + $0x460] sm:$0xff] }
  0x8c   :  { %v5408_v62 = vcombine.low %v859_v51, %v863_v52 }
  0x8e   :  { %636 = vmatpush1.bf16.msra.mxu0 %v5228_v53  ;;  %677 = vmatpush1.bf16.msra.mxu1 %v5230_v56  ;;  %v5288_v53 = vcombine.low %v739_v39, %v743_v40  ;;  %v5409_v56 = vcombine.high %v859_v51, %v863_v52  ;;  %v939_v39 = vld [vmem:[#allocation8 + $0x6c0] sm:$0xff] }
  0x8f   :  { %637 = vmatprep.subr.bf16.mxu0 %v5221_v57  ;;  %678 = vmatprep.subr.bf16.mxu1 %v5223_v60  ;;  %v723_v57 = vld [vmem:[#allocation8] sm:$0xff] }
  0x90   :  { %v855_v60 = vld [vmem:[#allocation8 + $0x420] sm:$0xff]  ;;  %v5273_v63 = vcombine.high %v723_v57, %v727_v58 }
  0x91   :  { %v5400_v7 = vcombine.low %v851_v59, %v855_v60  ;;  %v943_v40 = vld [vmem:[#allocation8 + $0x6e0] sm:$0xff] }
  0x92   :  { %638 = vmatpush1.bf16.msra.mxu0 %v5220_v61  ;;  %679 = vmatpush1.bf16.msra.mxu1 %v5222_v1  ;;  %v5280_v61 = vcombine.low %v731_v46, %v735_v47  ;;  %v5401_v1 = vcombine.high %v851_v59, %v855_v60  ;;  %v5489_v46 = vcombine.high %v939_v39, %v943_v40  ;;  %v803_v47 = vld [vmem:[#allocation8 + $0x280] sm:$0xff] }
  0x93   :  { %639 = vmatprep.subr.bf16.mxu0 %v5213_v2  ;;  %680 = vmatprep.subr.bf16.mxu1 %v5215_v5  ;;  %v843_v2 = vld [vmem:[#allocation8 + $0x3c0] sm:$0xff]  ;;  %v5488_v52 = vcombine.low %v939_v39, %v943_v40 }
  0x94   :  { %v975_v5 = vld [vmem:[#allocation8 + $0x7e0] sm:$0xff]  ;;  %v5393_v8 = vcombine.high %v843_v2, %v847_v3 }
  0x95   :  { %v5520_v16 = vcombine.low %v971_v4, %v975_v5  ;;  %v1027_v39 = vld [vmem:[#allocation8 + $0x980] sm:$0xff] }
  0x96   :  { %640 = vmatpush1.bf16.msra.mxu0 %v5212_v6  ;;  %681 = vmatpush1.bf16.msra.mxu1 %v5214_v9  ;;  %v5272_v6 = vcombine.low %v723_v57, %v727_v58  ;;  %v5521_v9 = vcombine.high %v971_v4, %v975_v5  ;;  %v923_v57 = vld [vmem:[#allocation8 + $0x640] sm:$0xff] }
  0x97   :  { %3837 = vmatprep.subr.bf16.mxu0 %v5329_v10  ;;  %3878 = vmatprep.subr.bf16.mxu1 %v5457_v14  ;;  %v835_v10 = vld [vmem:[#allocation8 + $0x380] sm:$0xff] }
  0x98   :  { %v967_v14 = vld [vmem:[#allocation8 + $0x7a0] sm:$0xff]  ;;  %v5385_v17 = vcombine.high %v835_v10, %v839_v12 }
  0x99   :  { %658 = vmatmul.mubr.bf16.vlgmr.msra.gmra.mxu0 %v6263_v11  ;;  %699 = vmatmul.mubr.bf16.vlgmr.msra.gmra.mxu1 %v6263_v11  ;;  %v5305_v11 = vcombine.high %v755_v24, %v759_v25  ;;  %v5512_v24 = vcombine.low %v963_v13, %v967_v14  ;;  %v927_v58 = vld [vmem:[#allocation8 + $0x660] sm:$0xff] }
  0x9a   :  { %3838 = vmatpush1.bf16.msra.mxu0 %v5328_v15  ;;  %3879 = vmatpush1.bf16.msra.mxu1 %v5456_v18  ;;  %v5392_v15 = vcombine.low %v843_v2, %v847_v3  ;;  %v5513_v18 = vcombine.high %v963_v13, %v967_v14  ;;  %v915_v2 = vld [vmem:[#allocation8 + $0x600] sm:$0xff]  ;;  %v5472_v5 = vcombine.low %v923_v57, %v927_v58  ;;  %v183_v13 = vlaneseq }
  0x9b   :  { %3839 = vmatprep.subr.bf16.mxu0 %v5321_v19  ;;  %3880 = vmatprep.subr.bf16.mxu1 %v5449_v22  ;;  %v827_v19 = vld [vmem:[#allocation8 + $0x340] sm:$0xff] }
  0x9c   :  { %v959_v22 = vld [vmem:[#allocation8 + $0x760] sm:$0xff]  ;;  %v5377_v25 = vcombine.high %v827_v19, %v831_v20  ;;  %v6287_v14 = vshrl.u32 %v183_v13, 7 }
  0x9d   :  { %v5504_v32 = vcombine.low %v955_v21, %v959_v22  ;;  %v919_v3 = vld [vmem:[#allocation8 + $0x620] sm:$0xff] }
  0x9e   :  { %3840 = vmatpush1.bf16.msra.mxu0 %v5320_v23  ;;  %3881 = vmatpush1.bf16.msra.mxu1 %v5448_v26  ;;  %v5384_v23 = vcombine.low %v835_v10, %v839_v12  ;;  %v5505_v26 = vcombine.high %v955_v21, %v959_v22  ;;  %v1031_v40 = vld [vmem:[#allocation8 + $0x9a0] sm:$0xff] }
  0x9f   :  { %3841 = vmatprep.subr.bf16.mxu0 %v5313_v27  ;;  %3882 = vmatprep.subr.bf16.mxu1 %v5441_v30  ;;  %v819_v27 = vld [vmem:[#allocation8 + $0x300] sm:$0xff] }
  0xa0   :  { %v951_v30 = vld [vmem:[#allocation8 + $0x720] sm:$0xff]  ;;  %v5369_v33 = vcombine.high %v819_v27, %v823_v28 }
  0xa1   :  { %v5497_v35 = vcombine.high %v947_v29, %v951_v30  ;;  %v1127_v13 = vld [vmem:[#allocation8 + $0xca0] sm:$0xff] }
  0xa2   :  { %3842 = vmatpush1.bf16.msra.mxu0 %v5312_v31  ;;  %3883 = vmatpush1.bf16.msra.mxu1 %v5440_v34  ;;  %v5376_v31 = vcombine.low %v827_v19, %v831_v20  ;;  %v811_v34 = vld [vmem:[#allocation8 + $0x2c0] sm:$0xff]  ;;  %v197_v19 = vsub.s32 3, %v6287_v14 }
  0xa3   :  { %3843 = vmatprep.subr.bf16.mxu0 %v5305_v11  ;;  %3884 = vmatprep.subr.bf16.mxu1 %v5433_v37  ;;  %v815_v11 = vld [vmem:[#allocation8 + $0x2e0] sm:$0xff] }
  0xa4   :  { %v6273_v37 = vld [vmem:[#allocation8 + $0x9e0] sm:$0xff]  ;;  %v5360_v51 = vcombine.low %v811_v34, %v815_v11 }
  0xa5   :  { %v5584_v42 = vcombine.low %v6271_v36, %v6273_v37  ;;  %v5585_v10 = vcombine.high %v6271_v36, %v6273_v37 }
  0xa6   :  { %3844 = vmatpush1.bf16.msra.mxu0 %v5304_v38  ;;  %3885 = vmatpush1.bf16.msra.mxu1 %v5432_v41  ;;  %v6275_v38 = vld [vmem:[#allocation8 + $0xdc0] sm:$0xff] }
  0xa7   :  { %3845 = vmatprep.subr.bf16.mxu0 %v5297_v0  ;;  %3886 = vmatprep.subr.bf16.mxu1 %v5425_v44  ;;  %v6277_v41 = vld [vmem:[#allocation8 + $0xde0] sm:$0xff]  ;;  %v5368_v0 = vcombine.low %v819_v27, %v823_v28  ;;  %v5496_v44 = vcombine.low %v947_v29, %v951_v30 }
  0xa8   :  { %v5712_v43 = vcombine.low %v6275_v38, %v6277_v41  ;;  %v5713_v12 = vcombine.high %v6275_v38, %v6277_v41  ;;  %v1007_v38 = vld [vmem:[#allocation8 + $0x8e0] sm:$0xff] }
  0xa9   :  { %v1131_v41 = vld [vmem:[#allocation8 + $0xcc0] sm:$0xff] }
  0xaa   :  { %3846 = vmatpush1.bf16.msra.mxu0 %v5296_v45  ;;  %3887 = vmatpush1.bf16.msra.mxu1 %v5424_v48  ;;  %v5361_v45 = vcombine.high %v811_v34, %v815_v11  ;;  %v807_v48 = vld [vmem:[#allocation8 + $0x2a0] sm:$0xff] }
  0xab   :  { %3847 = vmatprep.subr.bf16.mxu0 %v5289_v49  ;;  %3888 = vmatprep.subr.bf16.mxu1 %v5417_v50  ;;  %v931_v49 = vld [vmem:[#allocation8 + $0x680] sm:$0xff]  ;;  %v5352_v59 = vcombine.low %v803_v47, %v807_v48 }
  0xac   :  { %v935_v50 = vld [vmem:[#allocation8 + $0x6a0] sm:$0xff] }
  0xad   :  { %v5480_v60 = vcombine.low %v931_v49, %v935_v50 }
  0xae   :  { %3848 = vmatpush1.bf16.msra.mxu0 %v5288_v53  ;;  %3889 = vmatpush1.bf16.msra.mxu1 %v5416_v54  ;;  %v5353_v53 = vcombine.high %v803_v47, %v807_v48  ;;  %v5481_v54 = vcombine.high %v931_v49, %v935_v50 }
  0xaf   :  { %3849 = vmatprep.subr.bf16.mxu0 %v5281_v55  ;;  %3890 = vmatprep.subr.bf16.mxu1 %v5409_v56  ;;  %v795_v55 = vld [vmem:[#allocation8 + $0x240] sm:$0xff] }
  0xb0   :  { %v799_v56 = vld [vmem:[#allocation8 + $0x260] sm:$0xff] }
  0xb1   :  { %v5344_v4 = vcombine.low %v795_v55, %v799_v56 }
  0xb2   :  { %3850 = vmatpush1.bf16.msra.mxu0 %v5280_v61  ;;  %3891 = vmatpush1.bf16.msra.mxu1 %v5408_v62  ;;  %v5345_v61 = vcombine.high %v795_v55, %v799_v56  ;;  %v5473_v62 = vcombine.high %v923_v57, %v927_v58  ;;  %v1023_v55 = vld [vmem:[#allocation8 + $0x960] sm:$0xff]  ;;  %v5576_v58 = vcombine.low %v1027_v39, %v1031_v40 }
  0xb3   :  { %3851 = vmatprep.subr.bf16.mxu0 %v5273_v63  ;;  %3892 = vmatprep.subr.bf16.mxu1 %v5401_v1  ;;  %v787_v63 = vld [vmem:[#allocation8 + $0x200] sm:$0xff] }
  0xb4   :  { %v791_v1 = vld [vmem:[#allocation8 + $0x220] sm:$0xff] }
  0xb5   :  { %v1147_v56 = vld [vmem:[#allocation8 + $0xd40] sm:$0xff] }
  0xb6   :  { %3852 = vmatpush1.bf16.msra.mxu0 %v5272_v6  ;;  %3893 = vmatpush1.bf16.msra.mxu1 %v5400_v7  ;;  %v5337_v6 = vcombine.high %v787_v63, %v791_v1  ;;  %v5465_v7 = vcombine.high %v915_v2, %v919_v3  ;;  %v1151_v57 = vld [vmem:[#allocation8 + $0xd60] sm:$0xff] }
  0xb7   :  { %3853 = vmatprep.subr.bf16.mxu0 %v5393_v8  ;;  %3894 = vmatprep.subr.bf16.mxu1 %v5521_v9  ;;  %v5336_v8 = vcombine.low %v787_v63, %v791_v1  ;;  %v5464_v9 = vcombine.low %v915_v2, %v919_v3  ;;  %v1015_v63 = vld [vmem:[#allocation8 + $0x920] sm:$0xff]  ;;  %v5696_v36 = vcombine.low %v1147_v56, %v1151_v57 }
  0xb8   :  { %v1139_v1 = vld [vmem:[#allocation8 + $0xd00] sm:$0xff] }
  0xb9   :  { %v1143_v2 = vld [vmem:[#allocation8 + $0xd20] sm:$0xff] }
  0xba   :  { %3854 = vmatpush2.bf16.msra.mxu0 %v5392_v15  ;;  %3895 = vmatpush2.bf16.msra.mxu1 %v5520_v16  ;;  %v185_v15 = vsub.s32 0, %v6287_v14  ;;  %v6290_v16 = vld [vmem:[#allocation7] sm:$0xff] }
  0xbb   :  { %3855 = vmatprep.subr.bf16.mxu0 %v5385_v17  ;;  %3896 = vmatprep.subr.bf16.mxu1 %v5513_v18  ;;  %v193_v17 = vsub.s32 2, %v6287_v14  ;;  %v189_v18 = vsub.s32 1, %v6287_v14 }
  0xbc   :  { %v186_v20 = vrot.slane %v6290_v16, %v185_v15 }
  0xbd   :  { %v194_v21 = vrot.slane %v6290_v16, %v193_v17  ;;  %v190_v22 = vrot.slane %v6290_v16, %v189_v18 }
  0xbe   :  { %3856 = vmatpush2.bf16.msra.mxu0 %v5384_v23  ;;  %3897 = vmatpush2.bf16.msra.mxu1 %v5512_v24  ;;  %v198_v24 = vrot.slane %v6290_v16, %v197_v19 }
  0xbf   :  { %3857 = vmatprep.subr.bf16.mxu0 %v5377_v25  ;;  %3898 = vmatprep.subr.bf16.mxu1 %v5505_v26 }
  0xc2   :  { %3858 = vmatpush2.bf16.msra.mxu0 %v5376_v31  ;;  %3899 = vmatpush2.bf16.msra.mxu1 %v5504_v32 }
  0xc3   :  { %3859 = vmatprep.subr.bf16.mxu0 %v5369_v33  ;;  %3900 = vmatprep.subr.bf16.mxu1 %v5497_v35 }
  0xc6   :  { %3860 = vmatpush2.bf16.msra.mxu0 %v5368_v0  ;;  %3901 = vmatpush2.bf16.msra.mxu1 %v5496_v44 }
  0xc7   :  { %3861 = vmatprep.subr.bf16.mxu0 %v5361_v45  ;;  %3902 = vmatprep.subr.bf16.mxu1 %v5489_v46  ;;  %v1155_v45 = vld [vmem:[#allocation8 + $0xd80] sm:$0xff] }
  0xc8   :  { %v1159_v46 = vld [vmem:[#allocation8 + $0xda0] sm:$0xff] }
  0xca   :  { %3862 = vmatpush2.bf16.msra.mxu0 %v5360_v51  ;;  %3903 = vmatpush2.bf16.msra.mxu1 %v5488_v52  ;;  %v5577_v52 = vcombine.high %v1027_v39, %v1031_v40  ;;  %v1111_v39 = vld [vmem:[#allocation8 + $0xc20] sm:$0xff] }
  0xcb   :  { %3863 = vmatprep.subr.bf16.mxu0 %v5353_v53  ;;  %3904 = vmatprep.subr.bf16.mxu1 %v5481_v54  ;;  %v5705_v53 = vcombine.high %v1155_v45, %v1159_v46  ;;  %v1019_v54 = vld [vmem:[#allocation8 + $0x940] sm:$0xff] }
  0xcc   :  { %v5568_v3 = vcombine.low %v1019_v54, %v1023_v55 }
  0xce   :  { %3864 = vmatpush2.bf16.msra.mxu0 %v5352_v59  ;;  %3905 = vmatpush2.bf16.msra.mxu1 %v5480_v60  ;;  %v5704_v59 = vcombine.low %v1155_v45, %v1159_v46  ;;  %v5569_v60 = vcombine.high %v1019_v54, %v1023_v55  ;;  %v1103_v54 = vld [vmem:[#allocation8 + $0xbe0] sm:$0xff] }
  0xcf   :  { %3865 = vmatprep.subr.bf16.mxu0 %v5345_v61  ;;  %3906 = vmatprep.subr.bf16.mxu1 %v5473_v62  ;;  %v5697_v61 = vcombine.high %v1147_v56, %v1151_v57  ;;  %v1011_v62 = vld [vmem:[#allocation8 + $0x900] sm:$0xff] }
  0xd0   :  { %v5561_v37 = vcombine.high %v1011_v62, %v1015_v63  ;;  %v1227_v56 = vld [vmem:[#allocation8 + $0xfc0] sm:$0xff] }
  0xd1   :  { %v1231_v57 = vld [vmem:[#allocation8 + $0xfe0] sm:$0xff] }
  0xd2   :  { %3866 = vmatpush2.bf16.msra.mxu0 %v5344_v4  ;;  %3907 = vmatpush2.bf16.msra.mxu1 %v5472_v5  ;;  %v1003_v4 = vld [vmem:[#allocation8 + $0x8c0] sm:$0xff]  ;;  %v5560_v5 = vcombine.low %v1011_v62, %v1015_v63 }
  0xd3   :  { %3867 = vmatprep.subr.bf16.mxu0 %v5337_v6  ;;  %3908 = vmatprep.subr.bf16.mxu1 %v5465_v7  ;;  %v5688_v6 = vcombine.low %v1139_v1, %v1143_v2  ;;  %v5553_v7 = vcombine.high %v1003_v4, %v1007_v38 }
  0xd6   :  { %3868 = vmatpush2.bf16.msra.mxu0 %v5336_v8  ;;  %3909 = vmatpush2.bf16.msra.mxu1 %v5464_v9  ;;  %v995_v9 = vld [vmem:[#allocation8 + $0x880] sm:$0xff] }
  0xd7   :  { %3919 = vmatprep.subr.bf16.mxu0 %v5585_v10  ;;  %3960 = vmatprep.subr.bf16.mxu1 %v5713_v12  ;;  %v999_v10 = vld [vmem:[#allocation8 + $0x8a0] sm:$0xff] }
  0xd8   :  { %v1123_v12 = vld [vmem:[#allocation8 + $0xc80] sm:$0xff] }
 0x139   :  { %v577_v23 = vpop.f32.mrf.mxu0  ;;  %v618_v26 = vpop.f32.mrf.mxu1 }
 0x13a   :  { %v578_v25 = vadd.f32 %v577_v23, %v186_v20  ;;  %v619_v27 = vadd.f32 %v618_v26, %v194_v21  ;;  %v5552_v20 = vcombine.low %v1003_v4, %v1007_v38  ;;  %v5673_v23 = vcombine.high %v1123_v12, %v1127_v13  ;;  %v1115_v26 = vld [vmem:[#allocation8 + $0xc40] sm:$0xff] }
 0x13b   :  { %v579_v28 = vpop.f32.mrf.mxu0  ;;  %v620_v30 = vpop.f32.mrf.mxu1  ;;  %v1219_v38 = vld [vmem:[#allocation8 + $0xf80] sm:$0xff] }
 0x13c   :  { %v580_v29 = vadd.f32 %v579_v28, %v190_v22  ;;  %v707_v31 = vmax.f32 %v578_v25, 0.0  ;;  %v709_v32 = vmax.f32 %v619_v27, 0.0  ;;  %v621_v33 = vadd.f32 %v620_v30, %v198_v24  ;;  %v987_v24 = vld [vmem:[#allocation8 + $0x840] sm:$0xff] }
 0x13d   :  { %v581_v34 = vpop.f32.mrf.mxu0  ;;  %v622_v35 = vpop.f32.mrf.mxu1  ;;  %v5545_v22 = vcombine.high %v995_v9, %v999_v10  ;;  %v991_v25 = vld [vmem:[#allocation8 + $0x860] sm:$0xff]  ;;  %v5544_v28 = vcombine.low %v995_v9, %v999_v10  ;;  %v5672_v30 = vcombine.low %v1123_v12, %v1127_v13  ;;  %v5776_v9 = vcombine.low %v1227_v56, %v1231_v57 }
 0x13e   :  { %v708_v11 = vmax.f32 %v580_v29, 0.0  ;;  %v710_v0 = vmax.f32 %v621_v33, 0.0  ;;  %v6307_v47 = vpack.c.bf16 %v709_v32, %v709_v32  ;;  %v6311_v50 = vpack.c.bf16 %v707_v31, %v707_v31  ;;  %v1119_v27 = vld [vmem:[#allocation8 + $0xc60] sm:$0xff] }
 0x13f   :  { %v582_v44 = vpop.f32.mrf.mxu0  ;;  %v623_v49 = vpop.f32.mrf.mxu1  ;;  %v205_v29 = vsub.s32 5, %v6287_v14  ;;  %v5537_v31 = vcombine.high %v987_v24, %v991_v25  ;;  %v213_v32 = vsub.s32 7, %v6287_v14  ;;  %v5665_v33 = vcombine.high %v1115_v26, %v1119_v27  ;;  %v979_v34 = vld [vmem:[#allocation8 + $0x800] sm:$0xff] }
 0x140   :  { %v6309_v48 = vpack.c.bf16 %v708_v11, %v708_v11  ;;  %v6313_v51 = vpack.c.bf16 %v710_v0, %v710_v0  ;;  %v983_v11 = vld [vmem:[#allocation8 + $0x820] sm:$0xff]  ;;  %v5536_v40 = vcombine.low %v987_v24, %v991_v25  ;;  %v5664_v44 = vcombine.low %v1115_v26, %v1119_v27 }
 0x141   :  { %v1107_v35 = vld [vmem:[#allocation8 + $0xc00] sm:$0xff]  ;;  %v206_v0 = vrot.slane %v6290_v16, %v205_v29  ;;  %v5529_v45 = vcombine.high %v979_v34, %v983_v11  ;;  %v214_v49 = vrot.slane %v6290_v16, %v213_v32 }
 0x142   :  { %3869 = vmatprep.mubr.bf16.mxu0 %v6309_v48  ;;  %3910 = vmatprep.mubr.bf16.mxu1 %v6313_v51  ;;  %v5656_v62 = vcombine.low %v1107_v35, %v1111_v39 }
 0x143   :  { %3870 = vmatmul.mubr.bf16.vlgmr.msra.gmra.mxu0 %v6311_v50  ;;  %3911 = vmatmul.mubr.bf16.vlgmr.msra.gmra.mxu1 %v6307_v47 }
 0x144   :  { %3920 = vmatpush1.bf16.msra.mxu0 %v5584_v42  ;;  %3961 = vmatpush1.bf16.msra.mxu1 %v5712_v43  ;;  %v5689_v42 = vcombine.high %v1139_v1, %v1143_v2  ;;  %v1135_v43 = vld [vmem:[#allocation8 + $0xce0] sm:$0xff] }
 0x145   :  { %3921 = vmatprep.subr.bf16.mxu0 %v5577_v52  ;;  %3962 = vmatprep.subr.bf16.mxu1 %v5705_v53  ;;  %v5681_v8 = vcombine.high %v1131_v41, %v1135_v43  ;;  %v5680_v21 = vcombine.low %v1131_v41, %v1135_v43  ;;  %v5657_v52 = vcombine.high %v1107_v35, %v1111_v39  ;;  %v1099_v53 = vld [vmem:[#allocation8 + $0xbc0] sm:$0xff] }
 0x146   :  { %v5649_v63 = vcombine.high %v1099_v53, %v1103_v54  ;;  %v1223_v41 = vld [vmem:[#allocation8 + $0xfa0] sm:$0xff] }
 0x147   :  { %v5769_v13 = vcombine.high %v1219_v38, %v1223_v41  ;;  %v5768_v25 = vcombine.low %v1219_v38, %v1223_v41 }
 0x148   :  { %3922 = vmatpush1.bf16.msra.mxu0 %v5576_v58  ;;  %3963 = vmatpush1.bf16.msra.mxu1 %v5704_v59  ;;  %v5528_v59 = vcombine.low %v979_v34, %v983_v11 }
 0x149   :  { %3923 = vmatprep.subr.bf16.mxu0 %v5569_v60  ;;  %3964 = vmatprep.subr.bf16.mxu1 %v5697_v61 }
 0x14c   :  { %3924 = vmatpush1.bf16.msra.mxu0 %v5568_v3  ;;  %3965 = vmatpush1.bf16.msra.mxu1 %v5696_v36  ;;  %v5777_v3 = vcombine.high %v1227_v56, %v1231_v57  ;;  %v1091_v36 = vld [vmem:[#allocation8 + $0xb80] sm:$0xff] }
 0x14d   :  { %3925 = vmatprep.subr.bf16.mxu0 %v5561_v37  ;;  %3966 = vmatprep.subr.bf16.mxu1 %v5689_v42  ;;  %v1095_v37 = vld [vmem:[#allocation8 + $0xba0] sm:$0xff] }
 0x14e   :  { %v5641_v10 = vcombine.high %v1091_v36, %v1095_v37  ;;  %v5640_v24 = vcombine.low %v1091_v36, %v1095_v37  ;;  %v1059_v56 = vld [vmem:[#allocation8 + $0xa80] sm:$0xff] }
 0x14f   :  { %v1063_v57 = vld [vmem:[#allocation8 + $0xaa0] sm:$0xff] }
 0x150   :  { %3926 = vmatpush1.bf16.msra.mxu0 %v5560_v5  ;;  %3967 = vmatpush1.bf16.msra.mxu1 %v5688_v6  ;;  %v5648_v6 = vcombine.low %v1099_v53, %v1103_v54  ;;  %v1055_v36 = vld [vmem:[#allocation8 + $0xa60] sm:$0xff]  ;;  %v5608_v38 = vcombine.low %v1059_v56, %v1063_v57 }
 0x151   :  { %3927 = vmatprep.subr.bf16.mxu0 %v5553_v7  ;;  %3968 = vmatprep.subr.bf16.mxu1 %v5681_v8  ;;  %v1179_v37 = vld [vmem:[#allocation8 + $0xe40] sm:$0xff] }
 0x154   :  { %3928 = vmatpush1.bf16.msra.mxu0 %v5552_v20  ;;  %3969 = vmatpush1.bf16.msra.mxu1 %v5680_v21  ;;  %v1083_v20 = vld [vmem:[#allocation8 + $0xb40] sm:$0xff] }
 0x155   :  { %3929 = vmatprep.subr.bf16.mxu0 %v5545_v22  ;;  %3970 = vmatprep.subr.bf16.mxu1 %v5673_v23  ;;  %v1087_v21 = vld [vmem:[#allocation8 + $0xb60] sm:$0xff] }
 0x156   :  { %v1211_v22 = vld [vmem:[#allocation8 + $0xf40] sm:$0xff]  ;;  %v5633_v26 = vcombine.high %v1083_v20, %v1087_v21  ;;  %v5632_v34 = vcombine.low %v1083_v20, %v1087_v21 }
 0x157   :  { %v1215_v23 = vld [vmem:[#allocation8 + $0xf60] sm:$0xff] }
 0x158   :  { %3930 = vmatpush1.bf16.msra.mxu0 %v5544_v28  ;;  %3971 = vmatpush1.bf16.msra.mxu1 %v5672_v30  ;;  %v5761_v27 = vcombine.high %v1211_v22, %v1215_v23  ;;  %v1075_v28 = vld [vmem:[#allocation8 + $0xb00] sm:$0xff]  ;;  %v5760_v11 = vcombine.low %v1211_v22, %v1215_v23 }
 0x159   :  { %3931 = vmatprep.subr.bf16.mxu0 %v5537_v31  ;;  %v6330_v46 = vpop.f32.mrf.mxu0  ;;  %3972 = vmatprep.subr.bf16.mxu1 %v5665_v33  ;;  %v6335_v55 = vpop.f32.mrf.mxu1  ;;  %v1079_v30 = vld [vmem:[#allocation8 + $0xb20] sm:$0xff] }
 0x15a   :  { %v1203_v31 = vld [vmem:[#allocation8 + $0xf00] sm:$0xff]  ;;  %v5625_v35 = vcombine.high %v1075_v28, %v1079_v30 }
 0x15b   :  { %v661_v58 = vpop.f32.mrf.mxu0  ;;  %v702_v61 = vpop.f32.mrf.mxu1  ;;  %v1207_v33 = vld [vmem:[#allocation8 + $0xf20] sm:$0xff] }
 0x15c   :  { %3932 = vmatpush1.bf16.msra.mxu0 %v5536_v40  ;;  %v662_v60 = vadd.f32 %v661_v58, %v206_v0  ;;  %3973 = vmatpush1.bf16.msra.mxu1 %v5664_v44  ;;  %v703_v2 = vadd.f32 %v702_v61, %v214_v49  ;;  %v5753_v39 = vcombine.high %v1203_v31, %v1207_v33  ;;  %v1067_v40 = vld [vmem:[#allocation8 + $0xac0] sm:$0xff]  ;;  %v209_v61 = vsub.s32 6, %v6287_v14 }
 0x15d   :  { %3933 = vmatprep.subr.bf16.mxu0 %v5529_v45  ;;  %v663_v1 = vpop.f32.mrf.mxu0  ;;  %3974 = vmatprep.subr.bf16.mxu1 %v5657_v52  ;;  %v704_v4 = vpop.f32.mrf.mxu1  ;;  %v1071_v0 = vld [vmem:[#allocation8 + $0xae0] sm:$0xff]  ;;  %v5624_v49 = vcombine.low %v1075_v28, %v1079_v30  ;;  %v5752_v52 = vcombine.low %v1203_v31, %v1207_v33  ;;  %v912_v28 = vld [vmem:[#allocation8 + $0x5e8] sm:$0xff] }
 0x15e   :  { %v712_v42 = vmax.f32 %v662_v60, 0.0  ;;  %v714_v43 = vmax.f32 %v703_v2, 0.0  ;;  %v1195_v44 = vld [vmem:[#allocation8 + $0xec0] sm:$0xff]  ;;  %v5617_v53 = vcombine.high %v1067_v40, %v1071_v0  ;;  %v5616_v60 = vcombine.low %v1067_v40, %v1071_v0  ;;  %v900_v0 = vld [vmem:[#allocation8 + $0x588] sm:$0xff] }
 0x15f   :  { %v664_v5 = vpop.f32.mrf.mxu0  ;;  %v705_v8 = vpop.f32.mrf.mxu1  ;;  %v1199_v45 = vld [vmem:[#allocation8 + $0xee0] sm:$0xff]  ;;  %v5609_v1 = vcombine.high %v1059_v56, %v1063_v57  ;;  %v210_v4 = vrot.slane %v6290_v16, %v209_v61  ;;  %v892_v57 = vld [vmem:[#allocation8 + $0x548] sm:$0xff] }
 0x160   :  { %3934 = vmatpush1.bf16.msra.mxu0 %v5528_v59  ;;  %v6337_v7 = vpack.c.bf16 %v712_v42, %v712_v42  ;;  %3975 = vmatpush1.bf16.msra.mxu1 %v5656_v62  ;;  %v6339_v12 = vpack.c.bf16 %v714_v43, %v714_v43  ;;  %v5745_v54 = vcombine.high %v1195_v44, %v1199_v45  ;;  %v1187_v58 = vld [vmem:[#allocation8 + $0xe80] sm:$0xff] }
 0x161   :  { %3935 = vmatprep.subr.bf16.mxu0 %v5649_v63  ;;  %3976 = vmatprep.subr.bf16.mxu1 %v5777_v3  ;;  %v1191_v59 = vld [vmem:[#allocation8 + $0xea0] sm:$0xff]  ;;  %v5744_v62 = vcombine.low %v1195_v44, %v1199_v45  ;;  %v201_v63 = vsub.s32 4, %v6287_v14  ;;  %v701_v20 = vadd.f32 %v6335_v55, %v210_v4  ;;  %v904_v44 = vld [vmem:[#allocation8 + $0x5a8] sm:$0xff] }
 0x162   :  { %3951 = vmatprep.mubr.bf16.mxu0 %v6337_v7  ;;  %3992 = vmatprep.mubr.bf16.mxu1 %v6339_v12  ;;  %v5737_v2 = vcombine.high %v1187_v58, %v1191_v59  ;;  %v1051_v3 = vld [vmem:[#allocation8 + $0xa40] sm:$0xff]  ;;  %v5736_v43 = vcombine.low %v1187_v58, %v1191_v59  ;;  %v5451_v56 = vcombine.high %v900_v0, %v904_v44  ;;  %v896_v58 = vld [vmem:[#allocation8 + $0x568] sm:$0xff] }
 0x163   :  { %v1183_v42 = vld [vmem:[#allocation8 + $0xe60] sm:$0xff]  ;;  %v202_v41 = vrot.slane %v6290_v16, %v201_v63  ;;  %v5601_v5 = vcombine.high %v1051_v3, %v1055_v36  ;;  %v5600_v21 = vcombine.low %v1051_v3, %v1055_v36  ;;  %v713_v30 = vmax.f32 %v701_v20, 0.0  ;;  %v760_v3 = vld [vmem:[#allocation8 + $0x128] sm:$0xff] }
 0x164   :  { %3936 = vmatpush2.bf16.msra.mxu0 %v5648_v6  ;;  %3977 = vmatpush2.bf16.msra.mxu1 %v5776_v9  ;;  %v5729_v6 = vcombine.high %v1179_v37, %v1183_v42  ;;  %v1043_v8 = vld [vmem:[#allocation8 + $0xa00] sm:$0xff]  ;;  %v5728_v23 = vcombine.low %v1179_v37, %v1183_v42  ;;  %v884_v36 = vld [vmem:[#allocation8 + $0x508] sm:$0xff]  ;;  %v5442_v4 = vcombine.low %v892_v57, %v896_v58 }
 0x165   :  { %3937 = vmatprep.subr.bf16.mxu0 %v5641_v10  ;;  %3978 = vmatprep.subr.bf16.mxu1 %v5769_v13  ;;  %v1047_v9 = vld [vmem:[#allocation8 + $0xa20] sm:$0xff]  ;;  %v660_v22 = vadd.f32 %v6330_v46, %v202_v41  ;;  %v888_v37 = vld [vmem:[#allocation8 + $0x528] sm:$0xff] }
 0x166   :  { %v1171_v10 = vld [vmem:[#allocation8 + $0xe00] sm:$0xff]  ;;  %v5593_v16 = vcombine.high %v1043_v8, %v1047_v9  ;;  %v5592_v31 = vcombine.low %v1043_v8, %v1047_v9  ;;  %v5435_v41 = vcombine.high %v884_v36, %v888_v37  ;;  %v880_v8 = vld [vmem:[#allocation8 + $0x4e8] sm:$0xff] }
 0x167   :  { %v1175_v13 = vld [vmem:[#allocation8 + $0xe20] sm:$0xff]  ;;  %v711_v33 = vmax.f32 %v660_v22, 0.0  ;;  %v744_v22 = vld [vmem:[#allocation8 + $0xa8] sm:$0xff] }
 0x168   :  { %3938 = vmatpush2.bf16.msra.mxu0 %v5640_v24  ;;  %3979 = vmatpush2.bf16.msra.mxu1 %v5768_v25  ;;  %v5721_v24 = vcombine.high %v1171_v10, %v1175_v13  ;;  %v780_v25 = vld [vmem:[#allocation8 + $0x1c8] sm:$0xff]  ;;  %v5720_v55 = vcombine.low %v1171_v10, %v1175_v13  ;;  %v5434_v10 = vcombine.low %v884_v36, %v888_v37 }
 0x169   :  { %3939 = vmatprep.subr.bf16.mxu0 %v5633_v26  ;;  %3980 = vmatprep.subr.bf16.mxu1 %v5761_v27  ;;  %v784_v26 = vld [vmem:[#allocation8 + $0x1e8] sm:$0xff]  ;;  %v6355_v45 = vpack.c.bf16 %v711_v33, %v711_v33 }
 0x16a   :  { %v908_v27 = vld [vmem:[#allocation8 + $0x5c8] sm:$0xff]  ;;  %v5330_v40 = vcombine.low %v780_v25, %v784_v26 }
 0x16b   :  { %v5459_v46 = vcombine.high %v908_v27, %v912_v28  ;;  %v864_v33 = vld [vmem:[#allocation8 + $0x468] sm:$0xff] }
 0x16c   :  { %3940 = vmatpush2.bf16.msra.mxu0 %v5632_v34  ;;  %3981 = vmatpush2.bf16.msra.mxu1 %v5760_v11  ;;  %v5331_v34 = vcombine.high %v780_v25, %v784_v26  ;;  %v772_v11 = vld [vmem:[#allocation8 + $0x188] sm:$0xff] }
 0x16d   :  { %3941 = vmatprep.subr.bf16.mxu0 %v5625_v35  ;;  %3982 = vmatprep.subr.bf16.mxu1 %v5753_v39  ;;  %v776_v35 = vld [vmem:[#allocation8 + $0x1a8] sm:$0xff]  ;;  %v6353_v39 = vpack.c.bf16 %v713_v30, %v713_v30 }
 0x16e   :  { %v5322_v59 = vcombine.low %v772_v11, %v776_v35  ;;  %v736_v30 = vld [vmem:[#allocation8 + $0x68] sm:$0xff] }
 0x16f   :  { %v840_v36 = vld [vmem:[#allocation8 + $0x3a8] sm:$0xff] }
 0x170   :  { %3942 = vmatpush2.bf16.msra.mxu0 %v5624_v49  ;;  %3983 = vmatpush2.bf16.msra.mxu1 %v5752_v52  ;;  %v5458_v49 = vcombine.low %v908_v27, %v912_v28  ;;  %v5323_v52 = vcombine.high %v772_v11, %v776_v35  ;;  %v732_v28 = vld [vmem:[#allocation8 + $0x48] sm:$0xff] }
 0x171   :  { %3943 = vmatprep.subr.bf16.mxu0 %v5617_v53  ;;  %3984 = vmatprep.subr.bf16.mxu1 %v5745_v54  ;;  %v764_v53 = vld [vmem:[#allocation8 + $0x148] sm:$0xff] }
 0x172   :  { %v768_v54 = vld [vmem:[#allocation8 + $0x168] sm:$0xff] }
 0x173   :  { %v5314_v42 = vcombine.low %v764_v53, %v768_v54  ;;  %v724_v35 = vld [vmem:[#allocation8 + $0x8] sm:$0xff] }
 0x174   :  { %3944 = vmatpush2.bf16.msra.mxu0 %v5616_v60  ;;  %3985 = vmatpush2.bf16.msra.mxu1 %v5744_v62  ;;  %v5450_v60 = vcombine.low %v900_v0, %v904_v44  ;;  %v5315_v62 = vcombine.high %v764_v53, %v768_v54  ;;  %v852_v0 = vld [vmem:[#allocation8 + $0x408] sm:$0xff] }
 0x175   :  { %3945 = vmatprep.subr.bf16.mxu0 %v5609_v1  ;;  %3986 = vmatprep.subr.bf16.mxu1 %v5737_v2  ;;  %v5443_v1 = vcombine.high %v892_v57, %v896_v58  ;;  %v756_v2 = vld [vmem:[#allocation8 + $0x108] sm:$0xff] }
 0x176   :  { %v5306_v9 = vcombine.low %v756_v2, %v760_v3  ;;  %v856_v44 = vld [vmem:[#allocation8 + $0x428] sm:$0xff] }
 0x177   :  { %v5403_v54 = vcombine.high %v852_v0, %v856_v44  ;;  %v848_v57 = vld [vmem:[#allocation8 + $0x3e8] sm:$0xff] }
 0x178   :  { %3946 = vmatpush2.bf16.msra.mxu0 %v5608_v38  ;;  %3987 = vmatpush2.bf16.msra.mxu1 %v5736_v43  ;;  %v5307_v38 = vcombine.high %v756_v2, %v760_v3  ;;  %v748_v43 = vld [vmem:[#allocation8 + $0xc8] sm:$0xff] }
 0x179   :  { %3947 = vmatprep.subr.bf16.mxu0 %v5601_v5  ;;  %3988 = vmatprep.subr.bf16.mxu1 %v5729_v6  ;;  %v752_v5 = vld [vmem:[#allocation8 + $0xe8] sm:$0xff] }
 0x17a   :  { %v876_v6 = vld [vmem:[#allocation8 + $0x4c8] sm:$0xff]  ;;  %v5299_v13 = vcombine.high %v748_v43, %v752_v5 }
 0x17b   :  { %v5427_v20 = vcombine.high %v876_v6, %v880_v8  ;;  %v5426_v25 = vcombine.low %v876_v6, %v880_v8  ;;  %v972_v58 = vld [vmem:[#allocation8 + $0x7c8] sm:$0xff] }
 0x17c   :  { %3948 = vmatpush2.bf16.msra.mxu0 %v5600_v21  ;;  %3989 = vmatpush2.bf16.msra.mxu1 %v5728_v23  ;;  %v740_v21 = vld [vmem:[#allocation8 + $0x88] sm:$0xff] }
 0x17d   :  { %3949 = vmatprep.subr.bf16.mxu0 %v5593_v16  ;;  %3990 = vmatprep.subr.bf16.mxu1 %v5721_v24  ;;  %v868_v23 = vld [vmem:[#allocation8 + $0x488] sm:$0xff]  ;;  %v5298_v24 = vcombine.low %v748_v43, %v752_v5  ;;  %v5291_v26 = vcombine.high %v740_v21, %v744_v22 }
 0x17e   :  { %v872_v16 = vld [vmem:[#allocation8 + $0x4a8] sm:$0xff] }
 0x17f   :  { %v5419_v27 = vcombine.high %v868_v23, %v872_v16  ;;  %v836_v3 = vld [vmem:[#allocation8 + $0x388] sm:$0xff] }
 0x180   :  { %3950 = vmatpush2.bf16.msra.mxu0 %v5592_v31  ;;  %3991 = vmatpush2.bf16.msra.mxu1 %v5720_v55  ;;  %v860_v31 = vld [vmem:[#allocation8 + $0x448] sm:$0xff]  ;;  %v5290_v55 = vcombine.low %v740_v21, %v744_v22 }
 0x181   :  { %4001 = vmatprep.subr.bf16.mxu0 %v5331_v34  ;;  %4042 = vmatprep.subr.bf16.mxu1 %v5459_v46  ;;  %v5418_v34 = vcombine.low %v868_v23, %v872_v16  ;;  %v5283_v46 = vcombine.high %v732_v28, %v736_v30  ;;  %v5411_v11 = vcombine.high %v860_v31, %v864_v33  ;;  %v964_v37 = vld [vmem:[#allocation8 + $0x788] sm:$0xff] }
 0x182   :  { %v828_v5 = vld [vmem:[#allocation8 + $0x348] sm:$0xff] }
 0x183   :  { %3952 = vmatmul.mubr.bf16.vlgmr.msra.gmra.mxu0 %v6355_v45  ;;  %3993 = vmatmul.mubr.bf16.vlgmr.msra.gmra.mxu1 %v6353_v39  ;;  %v832_v6 = vld [vmem:[#allocation8 + $0x368] sm:$0xff] }
 0x184   :  { %4002 = vmatpush1.bf16.msra.mxu0 %v5330_v40  ;;  %4033 = vmatprep.mubr.bf16.mxu0 %v6309_v48  ;;  %v728_v40 = vld [vmem:[#allocation8 + $0x28] sm:$0xff] }
 0x185   :  { %4043 = vmatpush1.bf16.msra.mxu1 %v5458_v49  ;;  %4074 = vmatprep.mubr.bf16.mxu1 %v6313_v51  ;;  %v5282_v49 = vcombine.low %v732_v28, %v736_v30  ;;  %v5275_v53 = vcombine.high %v724_v35, %v728_v40  ;;  %v956_v8 = vld [vmem:[#allocation8 + $0x748] sm:$0xff] }
 0x186   :  { %4003 = vmatprep.subr.bf16.mxu0 %v5323_v52  ;;  %4044 = vmatprep.subr.bf16.mxu1 %v5451_v56  ;;  %v5410_v52 = vcombine.low %v860_v31, %v864_v33  ;;  %v844_v56 = vld [vmem:[#allocation8 + $0x3c8] sm:$0xff] }
 0x187   :  { %v820_v22 = vld [vmem:[#allocation8 + $0x308] sm:$0xff] }
 0x188   :  { %4004 = vmatpush1.bf16.msra.mxu0 %v5322_v59  ;;  %v976_v59 = vld [vmem:[#allocation8 + $0x7e8] sm:$0xff] }
 0x189   :  { %4045 = vmatpush1.bf16.msra.mxu1 %v5450_v60  ;;  %4005 = vmatprep.subr.bf16.mxu0 %v5315_v62  ;;  %v5274_v60 = vcombine.low %v724_v35, %v728_v40  ;;  %v5402_v62 = vcombine.low %v852_v0, %v856_v44  ;;  %v5523_v2 = vcombine.high %v972_v58, %v976_v59  ;;  %v824_v23 = vld [vmem:[#allocation8 + $0x328] sm:$0xff] }
 0x18a   :  { %4046 = vmatprep.subr.bf16.mxu1 %v5443_v1  ;;  %v5395_v1 = vcombine.high %v844_v56, %v848_v57  ;;  %v948_v16 = vld [vmem:[#allocation8 + $0x708] sm:$0xff] }
 0x18b   :  { %v812_v30 = vld [vmem:[#allocation8 + $0x2c8] sm:$0xff] }
 0x18c   :  { %4006 = vmatpush1.bf16.msra.mxu0 %v5314_v42  ;;  %v968_v42 = vld [vmem:[#allocation8 + $0x7a8] sm:$0xff] }
 0x18d   :  { %4047 = vmatpush1.bf16.msra.mxu1 %v5442_v4  ;;  %4007 = vmatprep.subr.bf16.mxu0 %v5307_v38  ;;  %v5394_v4 = vcombine.low %v844_v56, %v848_v57  ;;  %v5522_v38 = vcombine.low %v972_v58, %v976_v59  ;;  %v5515_v43 = vcombine.high %v964_v37, %v968_v42  ;;  %v816_v31 = vld [vmem:[#allocation8 + $0x2e8] sm:$0xff] }
 0x18e   :  { %4048 = vmatprep.subr.bf16.mxu1 %v5435_v41  ;;  %v5387_v41 = vcombine.high %v836_v3, %v840_v36  ;;  %v940_v33 = vld [vmem:[#allocation8 + $0x6c8] sm:$0xff] }
 0x18f   :  { %v804_v40 = vld [vmem:[#allocation8 + $0x288] sm:$0xff] }
 0x190   :  { %4008 = vmatpush1.bf16.msra.mxu0 %v5306_v9  ;;  %v960_v9 = vld [vmem:[#allocation8 + $0x768] sm:$0xff] }
 0x191   :  { %4049 = vmatpush1.bf16.msra.mxu1 %v5434_v10  ;;  %4009 = vmatprep.subr.bf16.mxu0 %v5299_v13  ;;  %v5386_v10 = vcombine.low %v836_v3, %v840_v36  ;;  %v5514_v13 = vcombine.low %v964_v37, %v968_v42  ;;  %v5507_v21 = vcombine.high %v956_v8, %v960_v9  ;;  %v808_v0 = vld [vmem:[#allocation8 + $0x2a8] sm:$0xff] }
 0x192   :  { %4050 = vmatprep.subr.bf16.mxu1 %v5427_v20  ;;  %v5379_v20 = vcombine.high %v828_v5, %v832_v6  ;;  %v932_v44 = vld [vmem:[#allocation8 + $0x688] sm:$0xff] }
 0x193   :  { %v796_v57 = vld [vmem:[#allocation8 + $0x248] sm:$0xff] }
 0x194   :  { %4010 = vmatpush1.bf16.msra.mxu0 %v5298_v24  ;;  %v952_v24 = vld [vmem:[#allocation8 + $0x728] sm:$0xff] }
 0x195   :  { %4051 = vmatpush1.bf16.msra.mxu1 %v5426_v25  ;;  %4011 = vmatprep.subr.bf16.mxu0 %v5291_v26  ;;  %v5378_v25 = vcombine.low %v828_v5, %v832_v6  ;;  %v5506_v26 = vcombine.low %v956_v8, %v960_v9  ;;  %v5499_v28 = vcombine.high %v948_v16, %v952_v24  ;;  %v800_v58 = vld [vmem:[#allocation8 + $0x268] sm:$0xff] }
 0x196   :  { %4052 = vmatprep.subr.bf16.mxu1 %v5419_v27  ;;  %v5371_v27 = vcombine.high %v820_v22, %v824_v23  ;;  %v924_v59 = vld [vmem:[#allocation8 + $0x648] sm:$0xff] }
 0x197   :  { %v788_v36 = vld [vmem:[#allocation8 + $0x208] sm:$0xff] }
 0x198   :  { %4012 = vmatpush1.bf16.msra.mxu0 %v5290_v55  ;;  %v944_v55 = vld [vmem:[#allocation8 + $0x6e8] sm:$0xff] }
 0x199   :  { %4053 = vmatpush1.bf16.msra.mxu1 %v5418_v34  ;;  %4013 = vmatprep.subr.bf16.mxu0 %v5283_v46  ;;  %v5370_v34 = vcombine.low %v820_v22, %v824_v23  ;;  %v5498_v46 = vcombine.low %v948_v16, %v952_v24  ;;  %v5491_v35 = vcombine.high %v940_v33, %v944_v55  ;;  %v792_v37 = vld [vmem:[#allocation8 + $0x228] sm:$0xff] }
 0x19a   :  { %4054 = vmatprep.subr.bf16.mxu1 %v5411_v11  ;;  %v5363_v11 = vcombine.high %v812_v30, %v816_v31  ;;  %v916_v42 = vld [vmem:[#allocation8 + $0x608] sm:$0xff] }
 0x19b   :  { %v1036_v6 = vld [vmem:[#allocation8 + $0x9c8] sm:$0xff] }
 0x19c   :  { %4014 = vmatpush1.bf16.msra.mxu0 %v5282_v49  ;;  %v936_v49 = vld [vmem:[#allocation8 + $0x6a8] sm:$0xff] }
 0x19d   :  { %4055 = vmatpush1.bf16.msra.mxu1 %v5410_v52  ;;  %4015 = vmatprep.subr.bf16.mxu0 %v5275_v53  ;;  %v5362_v52 = vcombine.low %v812_v30, %v816_v31  ;;  %v5490_v53 = vcombine.low %v940_v33, %v944_v55  ;;  %v5483_v56 = vcombine.high %v932_v44, %v936_v49  ;;  %v1040_v8 = vld [vmem:[#allocation8 + $0x9e8] sm:$0xff] }
 0x19e   :  { %4056 = vmatprep.subr.bf16.mxu1 %v5403_v54  ;;  %v5355_v54 = vcombine.high %v804_v40, %v808_v0  ;;  %v1164_v9 = vld [vmem:[#allocation8 + $0xdc8] sm:$0xff]  ;;  %v5586_v24 = vcombine.low %v1036_v6, %v1040_v8 }
 0x19f   :  { %v1028_v23 = vld [vmem:[#allocation8 + $0x988] sm:$0xff] }
 0x1a0   :  { %4016 = vmatpush1.bf16.msra.mxu0 %v5274_v60  ;;  %v928_v60 = vld [vmem:[#allocation8 + $0x668] sm:$0xff] }
 0x1a1   :  { %4057 = vmatpush1.bf16.msra.mxu1 %v5402_v62  ;;  %4017 = vmatprep.subr.bf16.mxu0 %v5395_v1  ;;  %v5354_v62 = vcombine.low %v804_v40, %v808_v0  ;;  %v5482_v1 = vcombine.low %v932_v44, %v936_v49  ;;  %v5475_v3 = vcombine.high %v924_v59, %v928_v60  ;;  %v1032_v16 = vld [vmem:[#allocation8 + $0x9a8] sm:$0xff] }
 0x1a2   :  { %4058 = vmatprep.subr.bf16.mxu1 %v5523_v2  ;;  %v5347_v2 = vcombine.high %v796_v57, %v800_v58  ;;  %v1020_v30 = vld [vmem:[#allocation8 + $0x948] sm:$0xff] }
 0x1a3   :  { %v1024_v31 = vld [vmem:[#allocation8 + $0x968] sm:$0xff] }
 0x1a4   :  { %4018 = vmatpush2.bf16.msra.mxu0 %v5394_v4  ;;  %v920_v4 = vld [vmem:[#allocation8 + $0x628] sm:$0xff] }
 0x1a5   :  { %4059 = vmatpush2.bf16.msra.mxu1 %v5522_v38  ;;  %4019 = vmatprep.subr.bf16.mxu0 %v5387_v41  ;;  %v5346_v38 = vcombine.low %v796_v57, %v800_v58  ;;  %v5474_v41 = vcombine.low %v924_v59, %v928_v60  ;;  %v5467_v5 = vcombine.high %v916_v42, %v920_v4  ;;  %v1148_v55 = vld [vmem:[#allocation8 + $0xd48] sm:$0xff] }
 0x1a6   :  { %4060 = vmatprep.subr.bf16.mxu1 %v5515_v43  ;;  %v5339_v43 = vcombine.high %v788_v36, %v792_v37  ;;  %v1012_v0 = vld [vmem:[#allocation8 + $0x908] sm:$0xff] }
 0x1a7   :  { %v1016_v44 = vld [vmem:[#allocation8 + $0x928] sm:$0xff] }
 0x1a8   :  { %4020 = vmatpush2.bf16.msra.mxu0 %v5386_v10  ;;  %v1168_v10 = vld [vmem:[#allocation8 + $0xde8] sm:$0xff] }
 0x1a9   :  { %4061 = vmatpush2.bf16.msra.mxu1 %v5514_v13  ;;  %4021 = vmatprep.subr.bf16.mxu0 %v5379_v20  ;;  %v5338_v13 = vcombine.low %v788_v36, %v792_v37  ;;  %v5466_v20 = vcombine.low %v916_v42, %v920_v4  ;;  %v5715_v22 = vcombine.high %v1164_v9, %v1168_v10  ;;  %v1140_v49 = vld [vmem:[#allocation8 + $0xd08] sm:$0xff] }
 0x1aa   :  { %4062 = vmatprep.subr.bf16.mxu1 %v5507_v21  ;;  %v5587_v21 = vcombine.high %v1036_v6, %v1040_v8  ;;  %v1004_v58 = vld [vmem:[#allocation8 + $0x8c8] sm:$0xff] }
 0x1ab   :  { %v1008_v59 = vld [vmem:[#allocation8 + $0x8e8] sm:$0xff] }
 0x1ac   :  { %4022 = vmatpush2.bf16.msra.mxu0 %v5378_v25  ;;  %v1156_v25 = vld [vmem:[#allocation8 + $0xd88] sm:$0xff] }
 0x1ad   :  { %4063 = vmatpush2.bf16.msra.mxu1 %v5506_v26  ;;  %4023 = vmatprep.subr.bf16.mxu0 %v5371_v27  ;;  %v1160_v26 = vld [vmem:[#allocation8 + $0xda8] sm:$0xff]  ;;  %v5714_v27 = vcombine.low %v1164_v9, %v1168_v10 }
 0x1ae   :  { %4064 = vmatprep.subr.bf16.mxu1 %v5499_v28  ;;  %v5579_v28 = vcombine.high %v1028_v23, %v1032_v16  ;;  %v5707_v33 = vcombine.high %v1156_v25, %v1160_v26  ;;  %v1132_v60 = vld [vmem:[#allocation8 + $0xcc8] sm:$0xff] }
 0x1af   :  { %v996_v37 = vld [vmem:[#allocation8 + $0x888] sm:$0xff] }
 0x1b0   :  { %4024 = vmatpush2.bf16.msra.mxu0 %v5370_v34  ;;  %v1152_v34 = vld [vmem:[#allocation8 + $0xd68] sm:$0xff] }
 0x1b1   :  { %4065 = vmatpush2.bf16.msra.mxu1 %v5498_v46  ;;  %4025 = vmatprep.subr.bf16.mxu0 %v5363_v11  ;;  %v5578_v46 = vcombine.low %v1028_v23, %v1032_v16  ;;  %v5706_v11 = vcombine.low %v1156_v25, %v1160_v26  ;;  %v5699_v40 = vcombine.high %v1148_v55, %v1152_v34  ;;  %v1000_v42 = vld [vmem:[#allocation8 + $0x8a8] sm:$0xff] }
 0x1b2   :  { %4066 = vmatprep.subr.bf16.mxu1 %v5491_v35  ;;  %v5571_v35 = vcombine.high %v1020_v30, %v1024_v31  ;;  %v1124_v4 = vld [vmem:[#allocation8 + $0xc88] sm:$0xff] }
 0x1b3   :  { %v988_v8 = vld [vmem:[#allocation8 + $0x848] sm:$0xff] }
 0x1b4   :  { %4026 = vmatpush2.bf16.msra.mxu0 %v5362_v52  ;;  %v1144_v52 = vld [vmem:[#allocation8 + $0xd28] sm:$0xff] }
 0x1b5   :  { %4067 = vmatpush2.bf16.msra.mxu1 %v5490_v53  ;;  %4027 = vmatprep.subr.bf16.mxu0 %v5355_v54  ;;  %v5570_v53 = vcombine.low %v1020_v30, %v1024_v31  ;;  %v5698_v54 = vcombine.low %v1148_v55, %v1152_v34  ;;  %v5691_v57 = vcombine.high %v1140_v49, %v1144_v52  ;;  %v992_v9 = vld [vmem:[#allocation8 + $0x868] sm:$0xff] }
 0x1b6   :  { %4068 = vmatprep.subr.bf16.mxu1 %v5483_v56  ;;  %v5563_v56 = vcombine.high %v1012_v0, %v1016_v44  ;;  %v1116_v10 = vld [vmem:[#allocation8 + $0xc48] sm:$0xff] }
 0x1b7   :  { %v980_v16 = vld [vmem:[#allocation8 + $0x808] sm:$0xff] }
 0x1b8   :  { %4028 = vmatpush2.bf16.msra.mxu0 %v5354_v62  ;;  %v1136_v62 = vld [vmem:[#allocation8 + $0xce8] sm:$0xff] }
 0x1b9   :  { %4069 = vmatpush2.bf16.msra.mxu1 %v5482_v1  ;;  %4029 = vmatprep.subr.bf16.mxu0 %v5347_v2  ;;  %v5562_v1 = vcombine.low %v1012_v0, %v1016_v44  ;;  %v5690_v2 = vcombine.low %v1140_v49, %v1144_v52  ;;  %v5683_v36 = vcombine.high %v1132_v60, %v1136_v62  ;;  %v1108_v25 = vld [vmem:[#allocation8 + $0xc08] sm:$0xff] }
 0x1ba   :  { %4070 = vmatprep.subr.bf16.mxu1 %v5475_v3  ;;  %v5555_v3 = vcombine.high %v1004_v58, %v1008_v59  ;;  %v1112_v26 = vld [vmem:[#allocation8 + $0xc28] sm:$0xff] }
 0x1bb   :  { %v5659_v31 = vcombine.high %v1108_v25, %v1112_v26  ;;  %v1104_v55 = vld [vmem:[#allocation8 + $0xbe8] sm:$0xff] }
 0x1bc   :  { %4030 = vmatpush2.bf16.msra.mxu0 %v5346_v38  ;;  %v1128_v38 = vld [vmem:[#allocation8 + $0xca8] sm:$0xff] }
 0x1bd   :  { %4071 = vmatpush2.bf16.msra.mxu1 %v5474_v41  ;;  %4031 = vmatprep.subr.bf16.mxu0 %v5339_v43  ;;  %v5554_v41 = vcombine.low %v1004_v58, %v1008_v59  ;;  %v5682_v43 = vcombine.low %v1132_v60, %v1136_v62  ;;  %v5675_v6 = vcombine.high %v1124_v4, %v1128_v38  ;;  %v1228_v34 = vld [vmem:[#allocation8 + $0xfc8] sm:$0xff] }
 0x1be   :  { %4072 = vmatprep.subr.bf16.mxu1 %v5467_v5  ;;  %v5547_v5 = vcombine.high %v996_v37, %v1000_v42  ;;  %v1092_v44 = vld [vmem:[#allocation8 + $0xb88] sm:$0xff] }
 0x1bf   :  { %v1096_v49 = vld [vmem:[#allocation8 + $0xba8] sm:$0xff] }
 0x1c0   :  { %4032 = vmatpush2.bf16.msra.mxu0 %v5338_v13  ;;  %v1120_v13 = vld [vmem:[#allocation8 + $0xc68] sm:$0xff] }
 0x1c1   :  { %4073 = vmatpush2.bf16.msra.mxu1 %v5466_v20  ;;  %4083 = vmatprep.subr.bf16.mxu0 %v5587_v21  ;;  %v5546_v20 = vcombine.low %v996_v37, %v1000_v42  ;;  %v5674_v21 = vcombine.low %v1124_v4, %v1128_v38  ;;  %v5667_v23 = vcombine.high %v1116_v10, %v1120_v13  ;;  %v1220_v52 = vld [vmem:[#allocation8 + $0xf88] sm:$0xff] }
 0x1c2   :  { %4124 = vmatprep.subr.bf16.mxu1 %v5715_v22  ;;  %v5539_v22 = vcombine.high %v988_v8, %v992_v9  ;;  %v1084_v59 = vld [vmem:[#allocation8 + $0xb48] sm:$0xff] }
 0x1c3   :  { %4034 = vmatmul.mubr.bf16.vlgmr.msra.gmra.mxu0 %v6311_v50  ;;  %v1088_v60 = vld [vmem:[#allocation8 + $0xb68] sm:$0xff] }
 0x1c4   :  { %4075 = vmatmul.mubr.bf16.vlgmr.msra.gmra.mxu1 %v6307_v47  ;;  %4084 = vmatpush1.bf16.msra.mxu0 %v5586_v24  ;;  %v984_v24 = vld [vmem:[#allocation8 + $0x828] sm:$0xff] }
 0x1c5   :  { %4115 = vmatprep.mubr.bf16.mxu0 %v6337_v7  ;;  %4125 = vmatpush1.bf16.msra.mxu1 %v5714_v27  ;;  %v5538_v27 = vcombine.low %v988_v8, %v992_v9  ;;  %v5531_v30 = vcombine.high %v980_v16, %v984_v24  ;;  %v1212_v62 = vld [vmem:[#allocation8 + $0xf48] sm:$0xff] }
 0x1c6   :  { %4156 = vmatprep.mubr.bf16.mxu1 %v6339_v12  ;;  %4085 = vmatprep.subr.bf16.mxu0 %v5579_v28  ;;  %v5666_v28 = vcombine.low %v1116_v10, %v1120_v13  ;;  %v1076_v42 = vld [vmem:[#allocation8 + $0xb08] sm:$0xff] }
 0x1c7   :  { %4126 = vmatprep.subr.bf16.mxu1 %v5707_v33  ;;  %v1100_v33 = vld [vmem:[#allocation8 + $0xbc8] sm:$0xff] }
 0x1c8   :  { %4086 = vmatpush1.bf16.msra.mxu0 %v5578_v46  ;;  %v1232_v46 = vld [vmem:[#allocation8 + $0xfe8] sm:$0xff] }
 0x1c9   :  { %4127 = vmatpush1.bf16.msra.mxu1 %v5706_v11  ;;  %4087 = vmatprep.subr.bf16.mxu0 %v5571_v35  ;;  %v5530_v11 = vcombine.low %v980_v16, %v984_v24  ;;  %v5658_v35 = vcombine.low %v1108_v25, %v1112_v26  ;;  %v5779_v0 = vcombine.high %v1228_v34, %v1232_v46  ;;  %v1080_v4 = vld [vmem:[#allocation8 + $0xb28] sm:$0xff] }
 0x1ca   :  { %4128 = vmatprep.subr.bf16.mxu1 %v5699_v40  ;;  %v5651_v40 = vcombine.high %v1100_v33, %v1104_v55  ;;  %v1204_v38 = vld [vmem:[#allocation8 + $0xf08] sm:$0xff] }
 0x1cb   :  { %v1068_v9 = vld [vmem:[#allocation8 + $0xac8] sm:$0xff] }
 0x1cc   :  { %4088 = vmatpush1.bf16.msra.mxu0 %v5570_v53  ;;  %v1224_v53 = vld [vmem:[#allocation8 + $0xfa8] sm:$0xff] }
 0x1cd   :  { %4129 = vmatpush1.bf16.msra.mxu1 %v5698_v54  ;;  %4089 = vmatprep.subr.bf16.mxu0 %v5563_v56  ;;  %v5650_v54 = vcombine.low %v1100_v33, %v1104_v55  ;;  %v5778_v56 = vcombine.low %v1228_v34, %v1232_v46  ;;  %v5771_v58 = vcombine.high %v1220_v52, %v1224_v53  ;;  %v1072_v10 = vld [vmem:[#allocation8 + $0xae8] sm:$0xff] }
 0x1ce   :  { %4130 = vmatprep.subr.bf16.mxu1 %v5691_v57  ;;  %v5643_v57 = vcombine.high %v1092_v44, %v1096_v49  ;;  %v1196_v13 = vld [vmem:[#allocation8 + $0xec8] sm:$0xff] }
 0x1cf   :  { %v1060_v24 = vld [vmem:[#allocation8 + $0xa88] sm:$0xff] }
 0x1d0   :  { %4090 = vmatpush1.bf16.msra.mxu0 %v5562_v1  ;;  %v1216_v1 = vld [vmem:[#allocation8 + $0xf68] sm:$0xff] }
 0x1d1   :  { %4131 = vmatpush1.bf16.msra.mxu1 %v5690_v2  ;;  %4091 = vmatprep.subr.bf16.mxu0 %v5555_v3  ;;  %v5642_v2 = vcombine.low %v1092_v44, %v1096_v49  ;;  %v5770_v3 = vcombine.low %v1220_v52, %v1224_v53  ;;  %v5763_v37 = vcombine.high %v1212_v62, %v1216_v1  ;;  %v1064_v25 = vld [vmem:[#allocation8 + $0xaa8] sm:$0xff] }
 0x1d2   :  { %4132 = vmatprep.subr.bf16.mxu1 %v5683_v36  ;;  %v5635_v36 = vcombine.high %v1084_v59, %v1088_v60  ;;  %v1188_v26 = vld [vmem:[#allocation8 + $0xe88] sm:$0xff] }
 0x1d3   :  { %v1052_v55 = vld [vmem:[#allocation8 + $0xa48] sm:$0xff] }
 0x1d4   :  { %4092 = vmatpush1.bf16.msra.mxu0 %v5554_v41  ;;  %v1208_v41 = vld [vmem:[#allocation8 + $0xf28] sm:$0xff] }
 0x1d5   :  { %4133 = vmatpush1.bf16.msra.mxu1 %v5682_v43  ;;  %4093 = vmatprep.subr.bf16.mxu0 %v5547_v5  ;;  %v5634_v43 = vcombine.low %v1084_v59, %v1088_v60  ;;  %v5762_v5 = vcombine.low %v1212_v62, %v1216_v1  ;;  %v5755_v8 = vcombine.high %v1204_v38, %v1208_v41  ;;  %v1056_v34 = vld [vmem:[#allocation8 + $0xa68] sm:$0xff]  ;;  %v781_v60 = vld [vmem:[#allocation8 + $0x1d0] sm:$0xff] }
 0x1d6   :  { %4134 = vmatprep.subr.bf16.mxu1 %v5675_v6  ;;  %v5627_v6 = vcombine.high %v1076_v42, %v1080_v4  ;;  %v1180_v46 = vld [vmem:[#allocation8 + $0xe48] sm:$0xff]  ;;  %v785_v62 = vld [vmem:[#allocation8 + $0x1f0] sm:$0xff] }
 0x1d7   :  { %v1044_v49 = vld [vmem:[#allocation8 + $0xa08] sm:$0xff]  ;;  %v909_v1 = vld [vmem:[#allocation8 + $0x5d0] sm:$0xff] }
 0x1d8   :  { %4094 = vmatpush1.bf16.msra.mxu0 %v5546_v20  ;;  %v1200_v20 = vld [vmem:[#allocation8 + $0xee8] sm:$0xff] }
 0x1d9   :  { %4135 = vmatpush1.bf16.msra.mxu1 %v5674_v21  ;;  %4095 = vmatprep.subr.bf16.mxu0 %v5539_v22  ;;  %v5626_v21 = vcombine.low %v1076_v42, %v1080_v4  ;;  %v5754_v22 = vcombine.low %v1204_v38, %v1208_v41  ;;  %v5747_v16 = vcombine.high %v1196_v13, %v1200_v20  ;;  %v1048_v52 = vld [vmem:[#allocation8 + $0xa28] sm:$0xff]  ;;  %v6365_v42 = vld [vmem:[#allocation10] sm:$0xff]  ;;  %v773_v38 = vld [vmem:[#allocation8 + $0x190] sm:$0xff] }
 0x1da   :  { %4136 = vmatprep.subr.bf16.mxu1 %v5667_v23  ;;  %v5619_v23 = vcombine.high %v1068_v9, %v1072_v10  ;;  %v1172_v53 = vld [vmem:[#allocation8 + $0xe08] sm:$0xff]  ;;  %v777_v41 = vld [vmem:[#allocation8 + $0x1b0] sm:$0xff] }
 0x1dc   :  { %4096 = vmatpush1.bf16.msra.mxu0 %v5538_v27  ;;  %v1192_v27 = vld [vmem:[#allocation8 + $0xea8] sm:$0xff] }
 0x1dd   :  { %4137 = vmatpush1.bf16.msra.mxu1 %v5666_v28  ;;  %4097 = vmatprep.subr.bf16.mxu0 %v5531_v30  ;;  %v5618_v28 = vcombine.low %v1068_v9, %v1072_v10  ;;  %v5746_v30 = vcombine.low %v1196_v13, %v1200_v20  ;;  %v5739_v33 = vcombine.high %v1188_v26, %v1192_v27  ;;  %v765_v20 = vld [vmem:[#allocation8 + $0x150] sm:$0xff] }
 0x1de   :  { %4138 = vmatprep.subr.bf16.mxu1 %v5659_v31  ;;  %v5611_v31 = vcombine.high %v1060_v24, %v1064_v25  ;;  %v1244_v10 = vrot.slane %v6365_v42, %v189_v18  ;;  %v5325_v13 = vcombine.high %v773_v38, %v777_v41 }
 0x1e0   :  { %4098 = vmatpush1.bf16.msra.mxu0 %v5530_v11  ;;  %v1184_v11 = vld [vmem:[#allocation8 + $0xe68] sm:$0xff] }
 0x1e1   :  { %4139 = vmatpush1.bf16.msra.mxu1 %v5658_v35  ;;  %4099 = vmatprep.subr.bf16.mxu0 %v5651_v40  ;;  %v5610_v35 = vcombine.low %v1060_v24, %v1064_v25  ;;  %v5738_v40 = vcombine.low %v1188_v26, %v1192_v27  ;;  %v5731_v44 = vcombine.high %v1180_v46, %v1184_v11  ;;  %v897_v24 = vld [vmem:[#allocation8 + $0x570] sm:$0xff] }
 0x1e2   :  { %4140 = vmatprep.subr.bf16.mxu1 %v5779_v0  ;;  %v5603_v0 = vcombine.high %v1052_v55, %v1056_v34  ;;  %v5324_v26 = vcombine.low %v773_v38, %v777_v41  ;;  %v869_v38 = vld [vmem:[#allocation8 + $0x490] sm:$0xff] }
 0x1e3   :  { %v873_v41 = vld [vmem:[#allocation8 + $0x4b0] sm:$0xff] }
 0x1e4   :  { %4100 = vmatpush2.bf16.msra.mxu0 %v5650_v54  ;;  %v1176_v54 = vld [vmem:[#allocation8 + $0xe28] sm:$0xff] }
 0x1e5   :  { %4141 = vmatpush2.bf16.msra.mxu1 %v5778_v56  ;;  %4101 = vmatprep.subr.bf16.mxu0 %v5643_v57  ;;  %v5602_v56 = vcombine.low %v1052_v55, %v1056_v34  ;;  %v5730_v57 = vcombine.low %v1180_v46, %v1184_v11  ;;  %v5723_v59 = vcombine.high %v1172_v53, %v1176_v54  ;;  %v757_v34 = vld [vmem:[#allocation8 + $0x110] sm:$0xff] }
 0x1e6   :  { %4142 = vmatprep.subr.bf16.mxu1 %v5771_v58  ;;  %v5595_v58 = vcombine.high %v1044_v49, %v1048_v52  ;;  %v761_v46 = vld [vmem:[#allocation8 + $0x130] sm:$0xff] }
 0x1e8   :  { %4102 = vmatpush2.bf16.msra.mxu0 %v5642_v2  ;;  %v913_v2 = vld [vmem:[#allocation8 + $0x5f0] sm:$0xff] }
 0x1e9   :  { %4143 = vmatpush2.bf16.msra.mxu1 %v5770_v3  ;;  %4103 = vmatprep.subr.bf16.mxu0 %v5635_v36  ;;  %v5594_v3 = vcombine.low %v1044_v49, %v1048_v52  ;;  %v5722_v36 = vcombine.low %v1172_v53, %v1176_v54  ;;  %v5461_v4 = vcombine.high %v909_v1, %v913_v2 }
 0x1ea   :  { %4144 = vmatprep.subr.bf16.mxu1 %v5763_v37  ;;  %v5333_v37 = vcombine.high %v781_v60, %v785_v62  ;;  %v5460_v9 = vcombine.low %v909_v1, %v913_v2  ;;  %v5309_v54 = vcombine.high %v757_v34, %v761_v46  ;;  %v5308_v1 = vcombine.low %v757_v34, %v761_v46  ;;  %v973_v34 = vld [vmem:[#allocation8 + $0x7d0] sm:$0xff] }
 0x1eb   :  { %v977_v46 = vld [vmem:[#allocation8 + $0x7f0] sm:$0xff] }
 0x1ec   :  { %4104 = vmatpush2.bf16.msra.mxu0 %v5634_v43  ;;  %v5332_v43 = vcombine.low %v781_v60, %v785_v62  ;;  %v877_v60 = vld [vmem:[#allocation8 + $0x4d0] sm:$0xff] }
 0x1ed   :  { %4145 = vmatpush2.bf16.msra.mxu1 %v5762_v5  ;;  %4105 = vmatprep.subr.bf16.mxu0 %v5627_v6  ;;  %v1240_v5 = vrot.slane %v6365_v42, %v185_v15  ;;  %v901_v6 = vld [vmem:[#allocation8 + $0x590] sm:$0xff] }
 0x1ee   :  { %4146 = vmatprep.subr.bf16.mxu1 %v5755_v8  ;;  %v905_v8 = vld [vmem:[#allocation8 + $0x5b0] sm:$0xff] }
 0x1ef   :  { %v5452_v18 = vcombine.low %v901_v6, %v905_v8  ;;  %v881_v62 = vld [vmem:[#allocation8 + $0x4f0] sm:$0xff] }
 0x1f0   :  { %4106 = vmatpush2.bf16.msra.mxu0 %v5626_v21  ;;  %v769_v21 = vld [vmem:[#allocation8 + $0x170] sm:$0xff] }
 0x1f1   :  { %4147 = vmatpush2.bf16.msra.mxu1 %v5754_v22  ;;  %4107 = vmatprep.subr.bf16.mxu0 %v5619_v23  ;;  %v5453_v23 = vcombine.high %v901_v6, %v905_v8  ;;  %v5316_v49 = vcombine.low %v765_v20, %v769_v21  ;;  %v5421_v8 = vcombine.high %v869_v38, %v873_v41 }
 0x1f2   :  { %4148 = vmatprep.subr.bf16.mxu1 %v5747_v16  ;;  %v893_v16 = vld [vmem:[#allocation8 + $0x550] sm:$0xff] }
 0x1f3   :  { %v5445_v55 = vcombine.high %v893_v16, %v897_v24  ;;  %v5444_v53 = vcombine.low %v893_v16, %v897_v24  ;;  %v725_v24 = vld [vmem:[#allocation8 + $0x10] sm:$0xff] }
 0x1f4   :  { %4108 = vmatpush2.bf16.msra.mxu0 %v5618_v28  ;;  %v5317_v28 = vcombine.high %v765_v20, %v769_v21  ;;  %v865_v20 = vld [vmem:[#allocation8 + $0x470] sm:$0xff] }
 0x1f5   :  { %4149 = vmatpush2.bf16.msra.mxu1 %v5746_v30  ;;  %4109 = vmatprep.subr.bf16.mxu0 %v5611_v31 }
 0x1f6   :  { %4150 = vmatprep.subr.bf16.mxu1 %v5739_v33 }
 0x1f8   :  { %4110 = vmatpush2.bf16.msra.mxu0 %v5610_v35  ;;  %v885_v35 = vld [vmem:[#allocation8 + $0x510] sm:$0xff] }
 0x1f9   :  { %4151 = vmatpush2.bf16.msra.mxu1 %v5738_v40  ;;  %4111 = vmatprep.subr.bf16.mxu0 %v5603_v0  ;;  %v889_v40 = vld [vmem:[#allocation8 + $0x530] sm:$0xff] }
 0x1fa   :  { %4152 = vmatprep.subr.bf16.mxu1 %v5731_v44  ;;  %v5436_v2 = vcombine.low %v885_v35, %v889_v40 }
 0x1fc   :  { %4112 = vmatpush2.bf16.msra.mxu0 %v5602_v56 }
 0x1fd   :  { %4153 = vmatpush2.bf16.msra.mxu1 %v5730_v57  ;;  %4113 = vmatprep.subr.bf16.mxu0 %v5595_v58  ;;  %v5437_v57 = vcombine.high %v885_v35, %v889_v40  ;;  %v749_v58 = vld [vmem:[#allocation8 + $0xd0] sm:$0xff] }
 0x1fe   :  { %4154 = vmatprep.subr.bf16.mxu1 %v5723_v59  ;;  %v753_v59 = vld [vmem:[#allocation8 + $0xf0] sm:$0xff] }
 0x200   :  { %4114 = vmatpush2.bf16.msra.mxu0 %v5594_v3  ;;  %v5301_v3 = vcombine.high %v749_v58, %v753_v59 }
 0x201   :  { %4155 = vmatpush2.bf16.msra.mxu1 %v5722_v36  ;;  %4165 = vmatprep.subr.bf16.mxu0 %v5333_v37  ;;  %v5429_v36 = vcombine.high %v877_v60, %v881_v62  ;;  %v741_v37 = vld [vmem:[#allocation8 + $0x90] sm:$0xff] }
 0x202   :  { %4206 = vmatprep.subr.bf16.mxu1 %v5461_v4  ;;  %v745_v4 = vld [vmem:[#allocation8 + $0xb0] sm:$0xff] }
 0x203   :  { %4116 = vmatmul.mubr.bf16.vlgmr.msra.gmra.mxu0 %v6355_v45  ;;  %v3871_v22 = vpop.f32.mrf.mxu0  ;;  %v3912_v25 = vpop.f32.mrf.mxu1  ;;  %v5293_v6 = vcombine.high %v741_v37, %v745_v4  ;;  %v5292_v21 = vcombine.low %v741_v37, %v745_v4 }
 0x204   :  { %4157 = vmatmul.mubr.bf16.vlgmr.msra.gmra.mxu1 %v6353_v39  ;;  %v3872_v15 = vadd.f32 %v3871_v22, %v1240_v5  ;;  %4166 = vmatpush1.bf16.msra.mxu0 %v5332_v43  ;;  %v5300_v43 = vcombine.low %v749_v58, %v753_v59  ;;  %v5428_v5 = vcombine.low %v877_v60, %v881_v62  ;;  %v829_v60 = vld [vmem:[#allocation8 + $0x350] sm:$0xff] }
 0x205   :  { %4197 = vmatprep.mubr.bf16.mxu0 %v6309_v48  ;;  %4207 = vmatpush1.bf16.msra.mxu1 %v5460_v9  ;;  %v3873_v27 = vpop.f32.mrf.mxu0  ;;  %v3914_v33 = vpop.f32.mrf.mxu1  ;;  %v733_v9 = vld [vmem:[#allocation8 + $0x50] sm:$0xff]  ;;  %v5420_v22 = vcombine.low %v869_v38, %v873_v41 }
 0x206   :  { %v6376_v30 = vadd.f32 %v3912_v25, %v3872_v15  ;;  %4238 = vmatprep.mubr.bf16.mxu1 %v6313_v51  ;;  %v3874_v31 = vadd.f32 %v3873_v27, %v1244_v10  ;;  %4167 = vmatprep.subr.bf16.mxu0 %v5325_v13  ;;  %v737_v10 = vld [vmem:[#allocation8 + $0x70] sm:$0xff] }
 0x207   :  { %4208 = vmatprep.subr.bf16.mxu1 %v5453_v23  ;;  %v3875_v11 = vpop.f32.mrf.mxu0  ;;  %v3916_v44 = vpop.f32.mrf.mxu1  ;;  %v861_v13 = vld [vmem:[#allocation8 + $0x450] sm:$0xff]  ;;  %v5285_v23 = vcombine.high %v733_v9, %v737_v10  ;;  %v5284_v27 = vcombine.low %v733_v9, %v737_v10 }
 0x208   :  { %v6379_v0 = vadd.f32 %v3914_v33, %v3874_v31  ;;  %4168 = vmatpush1.bf16.msra.mxu0 %v5324_v26  ;;  %v5413_v16 = vcombine.high %v861_v13, %v865_v20  ;;  %v729_v15 = vld [vmem:[#allocation8 + $0x30] sm:$0xff]  ;;  %v5525_v44 = vcombine.high %v973_v34, %v977_v46 }
 0x209   :  { %4209 = vmatpush1.bf16.msra.mxu1 %v5452_v18  ;;  %v3876_v52 = vpop.f32.mrf.mxu0  ;;  %4169 = vmatprep.subr.bf16.mxu0 %v5317_v28  ;;  %v3917_v56 = vpop.f32.mrf.mxu1  ;;  %v853_v25 = vld [vmem:[#allocation8 + $0x410] sm:$0xff]  ;;  %v5412_v18 = vcombine.low %v861_v13, %v865_v20  ;;  %v5277_v28 = vcombine.high %v725_v24, %v729_v15  ;;  %v5276_v11 = vcombine.low %v725_v24, %v729_v15 }
 0x20a   :  { %4210 = vmatprep.subr.bf16.mxu1 %v5445_v55  ;;  %v857_v26 = vld [vmem:[#allocation8 + $0x430] sm:$0xff] }
 0x20b   :  { %v5405_v31 = vcombine.high %v853_v25, %v857_v26  ;;  %v845_v33 = vld [vmem:[#allocation8 + $0x3d0] sm:$0xff]  ;;  %v5404_v35 = vcombine.low %v853_v25, %v857_v26 }
 0x20c   :  { %4170 = vmatpush1.bf16.msra.mxu0 %v5316_v49  ;;  %v849_v55 = vld [vmem:[#allocation8 + $0x3f0] sm:$0xff] }
 0x20d   :  { %4211 = vmatpush1.bf16.msra.mxu1 %v5444_v53  ;;  %4171 = vmatprep.subr.bf16.mxu0 %v5309_v54  ;;  %v5397_v40 = vcombine.high %v845_v33, %v849_v55  ;;  %v837_v49 = vld [vmem:[#allocation8 + $0x390] sm:$0xff]  ;;  %v5396_v56 = vcombine.low %v845_v33, %v849_v55 }
 0x20e   :  { %4212 = vmatprep.subr.bf16.mxu1 %v5437_v57  ;;  %v841_v52 = vld [vmem:[#allocation8 + $0x3b0] sm:$0xff]  ;;  %v5524_v57 = vcombine.low %v973_v34, %v977_v46 }
 0x20f   :  { %v965_v53 = vld [vmem:[#allocation8 + $0x790] sm:$0xff]  ;;  %v5389_v58 = vcombine.high %v837_v49, %v841_v52 }
 0x210   :  { %4172 = vmatpush1.bf16.msra.mxu0 %v5308_v1  ;;  %v969_v54 = vld [vmem:[#allocation8 + $0x7b0] sm:$0xff] }
 0x211   :  { %4213 = vmatpush1.bf16.msra.mxu1 %v5436_v2  ;;  %4173 = vmatprep.subr.bf16.mxu0 %v5301_v3  ;;  %v5517_v59 = vcombine.high %v965_v53, %v969_v54  ;;  %v833_v62 = vld [vmem:[#allocation8 + $0x370] sm:$0xff]  ;;  %v5388_v3 = vcombine.low %v837_v49, %v841_v52 }
 0x212   :  { %4214 = vmatprep.subr.bf16.mxu1 %v5429_v36  ;;  %v957_v1 = vld [vmem:[#allocation8 + $0x750] sm:$0xff]  ;;  %v5516_v36 = vcombine.low %v965_v53, %v969_v54  ;;  %v5381_v37 = vcombine.high %v829_v60, %v833_v62 }
 0x213   :  { %v961_v2 = vld [vmem:[#allocation8 + $0x770] sm:$0xff] }
 0x214   :  { %4174 = vmatpush1.bf16.msra.mxu0 %v5300_v43  ;;  %v5509_v4 = vcombine.high %v957_v1, %v961_v2  ;;  %v821_v38 = vld [vmem:[#allocation8 + $0x310] sm:$0xff] }
 0x215   :  { %4215 = vmatpush1.bf16.msra.mxu1 %v5428_v5  ;;  %4175 = vmatprep.subr.bf16.mxu0 %v5293_v6  ;;  %v825_v41 = vld [vmem:[#allocation8 + $0x330] sm:$0xff]  ;;  %v5380_v6 = vcombine.low %v829_v60, %v833_v62 }
 0x216   :  { %4216 = vmatprep.subr.bf16.mxu1 %v5421_v8  ;;  %v949_v43 = vld [vmem:[#allocation8 + $0x710] sm:$0xff]  ;;  %v5508_v8 = vcombine.low %v957_v1, %v961_v2  ;;  %v5373_v9 = vcombine.high %v821_v38, %v825_v41 }
 0x217   :  { %v953_v5 = vld [vmem:[#allocation8 + $0x730] sm:$0xff] }
 0x218   :  { %4176 = vmatpush1.bf16.msra.mxu0 %v5292_v21  ;;  %v5501_v10 = vcombine.high %v949_v43, %v953_v5  ;;  %v813_v13 = vld [vmem:[#allocation8 + $0x2d0] sm:$0xff] }
 0x219   :  { %4217 = vmatpush1.bf16.msra.mxu1 %v5420_v22  ;;  %4177 = vmatprep.subr.bf16.mxu0 %v5285_v23  ;;  %v817_v20 = vld [vmem:[#allocation8 + $0x2f0] sm:$0xff]  ;;  %v5372_v23 = vcombine.low %v821_v38, %v825_v41 }
 0x21a   :  { %4218 = vmatprep.subr.bf16.mxu1 %v5413_v16  ;;  %v941_v21 = vld [vmem:[#allocation8 + $0x6d0] sm:$0xff]  ;;  %v5500_v16 = vcombine.low %v949_v43, %v953_v5  ;;  %v5365_v24 = vcombine.high %v813_v13, %v817_v20 }
 0x21b   :  { %v945_v22 = vld [vmem:[#allocation8 + $0x6f0] sm:$0xff] }
 0x21c   :  { %4178 = vmatpush1.bf16.msra.mxu0 %v5284_v27  ;;  %v5493_v15 = vcombine.high %v941_v21, %v945_v22  ;;  %v805_v25 = vld [vmem:[#allocation8 + $0x290] sm:$0xff] }
 0x21d   :  { %4219 = vmatpush1.bf16.msra.mxu1 %v5412_v18  ;;  %4179 = vmatprep.subr.bf16.mxu0 %v5277_v28  ;;  %v809_v26 = vld [vmem:[#allocation8 + $0x2b0] sm:$0xff]  ;;  %v5364_v28 = vcombine.low %v813_v13, %v817_v20 }
 0x21e   :  { %4220 = vmatprep.subr.bf16.mxu1 %v5405_v31  ;;  %v933_v27 = vld [vmem:[#allocation8 + $0x690] sm:$0xff]  ;;  %v5492_v31 = vcombine.low %v941_v21, %v945_v22  ;;  %v5357_v33 = vcombine.high %v805_v25, %v809_v26 }
 0x21f   :  { %v937_v18 = vld [vmem:[#allocation8 + $0x6b0] sm:$0xff] }
 0x220   :  { %4180 = vmatpush1.bf16.msra.mxu0 %v5276_v11  ;;  %v5485_v55 = vcombine.high %v933_v27, %v937_v18  ;;  %v797_v34 = vld [vmem:[#allocation8 + $0x250] sm:$0xff] }
 0x221   :  { %4221 = vmatpush1.bf16.msra.mxu1 %v5404_v35  ;;  %4181 = vmatprep.subr.bf16.mxu0 %v5397_v40  ;;  %v801_v46 = vld [vmem:[#allocation8 + $0x270] sm:$0xff]  ;;  %v5356_v40 = vcombine.low %v805_v25, %v809_v26 }
 0x222   :  { %4222 = vmatprep.subr.bf16.mxu1 %v5525_v44  ;;  %v925_v11 = vld [vmem:[#allocation8 + $0x650] sm:$0xff]  ;;  %v5484_v44 = vcombine.low %v933_v27, %v937_v18  ;;  %v5349_v49 = vcombine.high %v797_v34, %v801_v46 }
 0x223   :  { %v929_v35 = vld [vmem:[#allocation8 + $0x670] sm:$0xff] }
 0x224   :  { %4182 = vmatpush2.bf16.msra.mxu0 %v5396_v56  ;;  %v5477_v52 = vcombine.high %v925_v11, %v929_v35  ;;  %v789_v53 = vld [vmem:[#allocation8 + $0x210] sm:$0xff] }
 0x225   :  { %4223 = vmatpush2.bf16.msra.mxu1 %v5524_v57  ;;  %4183 = vmatprep.subr.bf16.mxu0 %v5389_v58  ;;  %v793_v54 = vld [vmem:[#allocation8 + $0x230] sm:$0xff]  ;;  %v5348_v58 = vcombine.low %v797_v34, %v801_v46 }
 0x226   :  { %4224 = vmatprep.subr.bf16.mxu1 %v5517_v59  ;;  %v917_v56 = vld [vmem:[#allocation8 + $0x610] sm:$0xff]  ;;  %v5476_v59 = vcombine.low %v925_v11, %v929_v35  ;;  %v5341_v60 = vcombine.high %v789_v53, %v793_v54 }
 0x227   :  { %v921_v57 = vld [vmem:[#allocation8 + $0x630] sm:$0xff] }
 0x228   :  { %4184 = vmatpush2.bf16.msra.mxu0 %v5388_v3  ;;  %v5469_v62 = vcombine.high %v917_v56, %v921_v57  ;;  %v1037_v1 = vld [vmem:[#allocation8 + $0x9d0] sm:$0xff] }
 0x229   :  { %4225 = vmatpush2.bf16.msra.mxu1 %v5516_v36  ;;  %4185 = vmatprep.subr.bf16.mxu0 %v5381_v37  ;;  %v1041_v2 = vld [vmem:[#allocation8 + $0x9f0] sm:$0xff]  ;;  %v5340_v37 = vcombine.low %v789_v53, %v793_v54 }
 0x22a   :  { %4226 = vmatprep.subr.bf16.mxu1 %v5509_v4  ;;  %v1165_v3 = vld [vmem:[#allocation8 + $0xdd0] sm:$0xff]  ;;  %v5468_v4 = vcombine.low %v917_v56, %v921_v57  ;;  %v5589_v38 = vcombine.high %v1037_v1, %v1041_v2 }
 0x22b   :  { %v1169_v36 = vld [vmem:[#allocation8 + $0xdf0] sm:$0xff] }
 0x22c   :  { %4186 = vmatpush2.bf16.msra.mxu0 %v5380_v6  ;;  %v5717_v41 = vcombine.high %v1165_v3, %v1169_v36  ;;  %v1029_v43 = vld [vmem:[#allocation8 + $0x990] sm:$0xff]  ;;  %v5588_v6 = vcombine.low %v1037_v1, %v1041_v2 }
 0x22d   :  { %4227 = vmatpush2.bf16.msra.mxu1 %v5508_v8  ;;  %4187 = vmatprep.subr.bf16.mxu0 %v5373_v9  ;;  %v1033_v5 = vld [vmem:[#allocation8 + $0x9b0] sm:$0xff] }
 0x22e   :  { %4228 = vmatprep.subr.bf16.mxu1 %v5501_v10  ;;  %v1157_v8 = vld [vmem:[#allocation8 + $0xd90] sm:$0xff]  ;;  %v5716_v10 = vcombine.low %v1165_v3, %v1169_v36  ;;  %v5581_v13 = vcombine.high %v1029_v43, %v1033_v5  ;;  %v5580_v26 = vcombine.low %v1029_v43, %v1033_v5 }
 0x22f   :  { %v1161_v9 = vld [vmem:[#allocation8 + $0xdb0] sm:$0xff] }
 0x230   :  { %4188 = vmatpush2.bf16.msra.mxu0 %v5372_v23  ;;  %v1021_v20 = vld [vmem:[#allocation8 + $0x950] sm:$0xff]  ;;  %v5709_v23 = vcombine.high %v1157_v8, %v1161_v9  ;;  %v5708_v18 = vcombine.low %v1157_v8, %v1161_v9 }
 0x231   :  { %4229 = vmatpush2.bf16.msra.mxu1 %v5500_v16  ;;  %4189 = vmatprep.subr.bf16.mxu0 %v5365_v24  ;;  %v1025_v21 = vld [vmem:[#allocation8 + $0x970] sm:$0xff] }
 0x232   :  { %4230 = vmatprep.subr.bf16.mxu1 %v5493_v15  ;;  %v1149_v16 = vld [vmem:[#allocation8 + $0xd50] sm:$0xff] }
 0x233   :  { %v1153_v24 = vld [vmem:[#allocation8 + $0xd70] sm:$0xff] }
 0x234   :  { %4190 = vmatpush2.bf16.msra.mxu0 %v5364_v28  ;;  %v5573_v28 = vcombine.high %v1021_v20, %v1025_v21  ;;  %v1013_v34 = vld [vmem:[#allocation8 + $0x910] sm:$0xff]  ;;  %v5700_v54 = vcombine.low %v1149_v16, %v1153_v24 }
 0x235   :  { %4231 = vmatpush2.bf16.msra.mxu1 %v5492_v31  ;;  %4191 = vmatprep.subr.bf16.mxu0 %v5357_v33  ;;  %v1017_v46 = vld [vmem:[#allocation8 + $0x930] sm:$0xff] }
 0x236   :  { %4232 = vmatprep.subr.bf16.mxu1 %v5485_v55  ;;  %v1141_v35 = vld [vmem:[#allocation8 + $0xd10] sm:$0xff]  ;;  %v5565_v56 = vcombine.high %v1013_v34, %v1017_v46  ;;  %v5564_v1 = vcombine.low %v1013_v34, %v1017_v46 }
 0x237   :  { %v989_v9 = vld [vmem:[#allocation8 + $0x850] sm:$0xff] }
 0x238   :  { %4192 = vmatpush2.bf16.msra.mxu0 %v5356_v40  ;;  %v1145_v40 = vld [vmem:[#allocation8 + $0xd30] sm:$0xff] }
 0x239   :  { %4233 = vmatpush2.bf16.msra.mxu1 %v5484_v44  ;;  %4193 = vmatprep.subr.bf16.mxu0 %v5349_v49  ;;  %v5693_v57 = vcombine.high %v1141_v35, %v1145_v40  ;;  %v5692_v2 = vcombine.low %v1141_v35, %v1145_v40  ;;  %v1229_v34 = vld [vmem:[#allocation8 + $0xfd0] sm:$0xff] }
 0x23a   :  { %4234 = vmatprep.subr.bf16.mxu1 %v5477_v52  ;;  %v5572_v52 = vcombine.low %v1021_v20, %v1025_v21  ;;  %v1121_v20 = vld [vmem:[#allocation8 + $0xc70] sm:$0xff] }
 0x23b   :  { %v1233_v46 = vld [vmem:[#allocation8 + $0xff0] sm:$0xff] }
 0x23c   :  { %4194 = vmatpush2.bf16.msra.mxu0 %v5348_v58  ;;  %v1005_v58 = vld [vmem:[#allocation8 + $0x8d0] sm:$0xff] }
 0x23d   :  { %4235 = vmatpush2.bf16.msra.mxu1 %v5476_v59  ;;  %4195 = vmatprep.subr.bf16.mxu0 %v5341_v60  ;;  %v1009_v59 = vld [vmem:[#allocation8 + $0x8f0] sm:$0xff] }
 0x23e   :  { %4236 = vmatprep.subr.bf16.mxu1 %v5469_v62  ;;  %v1133_v60 = vld [vmem:[#allocation8 + $0xcd0] sm:$0xff]  ;;  %v5557_v3 = vcombine.high %v1005_v58, %v1009_v59  ;;  %v5556_v43 = vcombine.low %v1005_v58, %v1009_v59 }
 0x23f   :  { %v1137_v62 = vld [vmem:[#allocation8 + $0xcf0] sm:$0xff] }
 0x240   :  { %4196 = vmatpush2.bf16.msra.mxu0 %v5340_v37  ;;  %v5685_v36 = vcombine.high %v1133_v60, %v1137_v62  ;;  %v997_v37 = vld [vmem:[#allocation8 + $0x890] sm:$0xff]  ;;  %v5684_v5 = vcombine.low %v1133_v60, %v1137_v62 }
 0x241   :  { %4237 = vmatpush2.bf16.msra.mxu1 %v5468_v4  ;;  %4247 = vmatprep.subr.bf16.mxu0 %v5589_v38  ;;  %v1001_v4 = vld [vmem:[#allocation8 + $0x8b0] sm:$0xff] }
 0x242   :  { %4288 = vmatprep.subr.bf16.mxu1 %v5717_v41  ;;  %v1125_v38 = vld [vmem:[#allocation8 + $0xc90] sm:$0xff]  ;;  %v5548_v21 = vcombine.low %v997_v37, %v1001_v4 }
 0x243   :  { %v3953_v22 = vpop.f32.mrf.mxu0  ;;  %4198 = vmatmul.mubr.bf16.vlgmr.msra.gmra.mxu0 %v6311_v50  ;;  %v3994_v25 = vpop.f32.mrf.mxu1  ;;  %v1129_v41 = vld [vmem:[#allocation8 + $0xcb0] sm:$0xff] }
 0x244   :  { %v3954_v15 = vadd.f32 %v3953_v22, %v6376_v30  ;;  %4239 = vmatmul.mubr.bf16.vlgmr.msra.gmra.mxu1 %v6307_v47  ;;  %4248 = vmatpush1.bf16.msra.mxu0 %v5588_v6  ;;  %v5701_v30 = vcombine.high %v1149_v16, %v1153_v24  ;;  %v5549_v6 = vcombine.high %v997_v37, %v1001_v4  ;;  %v981_v24 = vld [vmem:[#allocation8 + $0x810] sm:$0xff] }
 0x245   :  { %4279 = vmatprep.mubr.bf16.mxu0 %v6337_v7  ;;  %4289 = vmatpush1.bf16.msra.mxu1 %v5716_v10  ;;  %v3955_v27 = vpop.f32.mrf.mxu0  ;;  %v3996_v55 = vpop.f32.mrf.mxu1  ;;  %v5677_v8 = vcombine.high %v1125_v38, %v1129_v41  ;;  %v993_v10 = vld [vmem:[#allocation8 + $0x870] sm:$0xff]  ;;  %v5676_v22 = vcombine.low %v1125_v38, %v1129_v41 }
 0x246   :  { %v6385_v31 = vadd.f32 %v3994_v25, %v3954_v15  ;;  %4320 = vmatprep.mubr.bf16.mxu1 %v6339_v12  ;;  %v3956_v33 = vadd.f32 %v3955_v27, %v6379_v0  ;;  %4249 = vmatprep.subr.bf16.mxu0 %v5581_v13  ;;  %v1117_v13 = vld [vmem:[#allocation8 + $0xc50] sm:$0xff]  ;;  %v5540_v27 = vcombine.low %v989_v9, %v993_v10 }
 0x247   :  { %v3957_v11 = vpop.f32.mrf.mxu0  ;;  %4290 = vmatprep.subr.bf16.mxu1 %v5709_v23  ;;  %v3998_v49 = vpop.f32.mrf.mxu1  ;;  %v5541_v23 = vcombine.high %v989_v9, %v993_v10  ;;  %v5669_v16 = vcombine.high %v1117_v13, %v1121_v20  ;;  %v985_v15 = vld [vmem:[#allocation8 + $0x830] sm:$0xff] }
 0x248   :  { %v6389_v44 = vadd.f32 %v3996_v55, %v3956_v33  ;;  %4250 = vmatpush1.bf16.msra.mxu0 %v5580_v26  ;;  %v1109_v25 = vld [vmem:[#allocation8 + $0xc10] sm:$0xff]  ;;  %v5532_v11 = vcombine.low %v981_v24, %v985_v15  ;;  %v5781_v49 = vcombine.high %v1229_v34, %v1233_v46 }
 0x249   :  { %4291 = vmatpush1.bf16.msra.mxu1 %v5708_v18  ;;  %v3958_v53 = vpop.f32.mrf.mxu0  ;;  %4251 = vmatprep.subr.bf16.mxu0 %v5573_v28  ;;  %v3999_v0 = vpop.f32.mrf.mxu1  ;;  %v1113_v26 = vld [vmem:[#allocation8 + $0xc30] sm:$0xff]  ;;  %v5668_v18 = vcombine.low %v1117_v13, %v1121_v20  ;;  %v5533_v28 = vcombine.high %v981_v24, %v985_v15 }
 0x24a   :  { %4292 = vmatprep.subr.bf16.mxu1 %v5701_v30  ;;  %v5661_v33 = vcombine.high %v1109_v25, %v1113_v26  ;;  %v1101_v55 = vld [vmem:[#allocation8 + $0xbd0] sm:$0xff]  ;;  %v5660_v35 = vcombine.low %v1109_v25, %v1113_v26 }
 0x24b   :  { %v1105_v30 = vld [vmem:[#allocation8 + $0xbf0] sm:$0xff] }
 0x24c   :  { %4252 = vmatpush1.bf16.msra.mxu0 %v5572_v52  ;;  %v5653_v40 = vcombine.high %v1101_v55, %v1105_v30  ;;  %v1093_v52 = vld [vmem:[#allocation8 + $0xb90] sm:$0xff]  ;;  %v5652_v0 = vcombine.low %v1101_v55, %v1105_v30 }
 0x24d   :  { %4293 = vmatpush1.bf16.msra.mxu1 %v5700_v54  ;;  %4253 = vmatprep.subr.bf16.mxu0 %v5565_v56  ;;  %v1097_v53 = vld [vmem:[#allocation8 + $0xbb0] sm:$0xff] }
 0x24e   :  { %4294 = vmatprep.subr.bf16.mxu1 %v5693_v57  ;;  %v1221_v54 = vld [vmem:[#allocation8 + $0xf90] sm:$0xff]  ;;  %v5780_v57 = vcombine.low %v1229_v34, %v1233_v46  ;;  %v5645_v58 = vcombine.high %v1093_v52, %v1097_v53 }
 0x24f   :  { %v1225_v56 = vld [vmem:[#allocation8 + $0xfb0] sm:$0xff] }
 0x250   :  { %4254 = vmatpush1.bf16.msra.mxu0 %v5564_v1  ;;  %v5773_v59 = vcombine.high %v1221_v54, %v1225_v56  ;;  %v1085_v60 = vld [vmem:[#allocation8 + $0xb50] sm:$0xff] }
 0x251   :  { %4295 = vmatpush1.bf16.msra.mxu1 %v5692_v2  ;;  %4255 = vmatprep.subr.bf16.mxu0 %v5557_v3  ;;  %v1089_v62 = vld [vmem:[#allocation8 + $0xb70] sm:$0xff]  ;;  %v5644_v3 = vcombine.low %v1093_v52, %v1097_v53 }
 0x252   :  { %4296 = vmatprep.subr.bf16.mxu1 %v5685_v36  ;;  %v1213_v1 = vld [vmem:[#allocation8 + $0xf50] sm:$0xff]  ;;  %v5772_v36 = vcombine.low %v1221_v54, %v1225_v56  ;;  %v5637_v37 = vcombine.high %v1085_v60, %v1089_v62 }
 0x253   :  { %v1217_v2 = vld [vmem:[#allocation8 + $0xf70] sm:$0xff] }
 0x254   :  { %4256 = vmatpush1.bf16.msra.mxu0 %v5556_v43  ;;  %v5765_v4 = vcombine.high %v1213_v1, %v1217_v2  ;;  %v1077_v38 = vld [vmem:[#allocation8 + $0xb10] sm:$0xff] }
 0x255   :  { %4297 = vmatpush1.bf16.msra.mxu1 %v5684_v5  ;;  %4257 = vmatprep.subr.bf16.mxu0 %v5549_v6  ;;  %v1081_v41 = vld [vmem:[#allocation8 + $0xb30] sm:$0xff]  ;;  %v5636_v6 = vcombine.low %v1085_v60, %v1089_v62 }
 0x256   :  { %4298 = vmatprep.subr.bf16.mxu1 %v5677_v8  ;;  %v1205_v43 = vld [vmem:[#allocation8 + $0xf10] sm:$0xff]  ;;  %v5764_v8 = vcombine.low %v1213_v1, %v1217_v2  ;;  %v5629_v9 = vcombine.high %v1077_v38, %v1081_v41  ;;  %v782_v1 = vld [vmem:[#allocation8 + $0x1d8] sm:$0xff] }
 0x257   :  { %v1209_v5 = vld [vmem:[#allocation8 + $0xf30] sm:$0xff]  ;;  %v786_v2 = vld [vmem:[#allocation8 + $0x1f8] sm:$0xff] }
 0x258   :  { %4258 = vmatpush1.bf16.msra.mxu0 %v5548_v21  ;;  %v5757_v10 = vcombine.high %v1205_v43, %v1209_v5  ;;  %v1069_v13 = vld [vmem:[#allocation8 + $0xad0] sm:$0xff] }
 0x259   :  { %4299 = vmatpush1.bf16.msra.mxu1 %v5676_v22  ;;  %4259 = vmatprep.subr.bf16.mxu0 %v5541_v23  ;;  %v1073_v20 = vld [vmem:[#allocation8 + $0xaf0] sm:$0xff]  ;;  %v5628_v23 = vcombine.low %v1077_v38, %v1081_v41  ;;  %v5335_v38 = vcombine.high %v782_v1, %v786_v2 }
 0x25a   :  { %4300 = vmatprep.subr.bf16.mxu1 %v5669_v16  ;;  %v1197_v21 = vld [vmem:[#allocation8 + $0xed0] sm:$0xff]  ;;  %v5756_v16 = vcombine.low %v1205_v43, %v1209_v5  ;;  %v5621_v24 = vcombine.high %v1069_v13, %v1073_v20  ;;  %v774_v43 = vld [vmem:[#allocation8 + $0x198] sm:$0xff] }
 0x25b   :  { %v1201_v22 = vld [vmem:[#allocation8 + $0xef0] sm:$0xff]  ;;  %v778_v5 = vld [vmem:[#allocation8 + $0x1b8] sm:$0xff] }
 0x25c   :  { %4260 = vmatpush1.bf16.msra.mxu0 %v5540_v27  ;;  %v5749_v15 = vcombine.high %v1197_v21, %v1201_v22  ;;  %v1061_v25 = vld [vmem:[#allocation8 + $0xa90] sm:$0xff] }
 0x25d   :  { %4301 = vmatpush1.bf16.msra.mxu1 %v5668_v18  ;;  %4261 = vmatprep.subr.bf16.mxu0 %v5533_v28  ;;  %v1065_v26 = vld [vmem:[#allocation8 + $0xab0] sm:$0xff]  ;;  %v5620_v28 = vcombine.low %v1069_v13, %v1073_v20  ;;  %v1252_v20 = vrot.slane %v6365_v42, %v197_v19 }
 0x25e   :  { %4302 = vmatprep.subr.bf16.mxu1 %v5661_v33  ;;  %v1189_v27 = vld [vmem:[#allocation8 + $0xe90] sm:$0xff]  ;;  %v5748_v33 = vcombine.low %v1197_v21, %v1201_v22  ;;  %v5613_v55 = vcombine.high %v1061_v25, %v1065_v26  ;;  %v5327_v21 = vcombine.high %v774_v43, %v778_v5  ;;  %v766_v22 = vld [vmem:[#allocation8 + $0x158] sm:$0xff] }
 0x25f   :  { %v1193_v18 = vld [vmem:[#allocation8 + $0xeb0] sm:$0xff] }
 0x260   :  { %4262 = vmatpush1.bf16.msra.mxu0 %v5532_v11  ;;  %v5741_v30 = vcombine.high %v1189_v27, %v1193_v18  ;;  %v1053_v34 = vld [vmem:[#allocation8 + $0xa50] sm:$0xff] }
 0x261   :  { %4303 = vmatpush1.bf16.msra.mxu1 %v5660_v35  ;;  %4263 = vmatprep.subr.bf16.mxu0 %v5653_v40  ;;  %v1057_v46 = vld [vmem:[#allocation8 + $0xa70] sm:$0xff]  ;;  %v5612_v40 = vcombine.low %v1061_v25, %v1065_v26 }
 0x262   :  { %4304 = vmatprep.subr.bf16.mxu1 %v5781_v49  ;;  %v1181_v11 = vld [vmem:[#allocation8 + $0xe50] sm:$0xff]  ;;  %v5740_v49 = vcombine.low %v1189_v27, %v1193_v18  ;;  %v5605_v52 = vcombine.high %v1053_v34, %v1057_v46  ;;  %v5326_v27 = vcombine.low %v774_v43, %v778_v5 }
 0x263   :  { %v1185_v35 = vld [vmem:[#allocation8 + $0xe70] sm:$0xff] }
 0x264   :  { %4264 = vmatpush2.bf16.msra.mxu0 %v5652_v0  ;;  %v5733_v53 = vcombine.high %v1181_v11, %v1185_v35  ;;  %v1045_v54 = vld [vmem:[#allocation8 + $0xa10] sm:$0xff] }
 0x265   :  { %4305 = vmatpush2.bf16.msra.mxu1 %v5780_v57  ;;  %4265 = vmatprep.subr.bf16.mxu0 %v5645_v58  ;;  %v1049_v56 = vld [vmem:[#allocation8 + $0xa30] sm:$0xff]  ;;  %v5604_v58 = vcombine.low %v1053_v34, %v1057_v46  ;;  %v758_v34 = vld [vmem:[#allocation8 + $0x118] sm:$0xff] }
 0x266   :  { %4306 = vmatprep.subr.bf16.mxu1 %v5773_v59  ;;  %v1173_v0 = vld [vmem:[#allocation8 + $0xe10] sm:$0xff]  ;;  %v5732_v59 = vcombine.low %v1181_v11, %v1185_v35  ;;  %v5597_v60 = vcombine.high %v1045_v54, %v1049_v56  ;;  %v762_v46 = vld [vmem:[#allocation8 + $0x138] sm:$0xff] }
 0x267   :  { %v1177_v57 = vld [vmem:[#allocation8 + $0xe30] sm:$0xff]  ;;  %v886_v35 = vld [vmem:[#allocation8 + $0x518] sm:$0xff] }
 0x268   :  { %4266 = vmatpush2.bf16.msra.mxu0 %v5644_v3  ;;  %v5725_v62 = vcombine.high %v1173_v0, %v1177_v57  ;;  %v910_v3 = vld [vmem:[#allocation8 + $0x5d8] sm:$0xff] }
 0x269   :  { %4307 = vmatpush2.bf16.msra.mxu1 %v5772_v36  ;;  %4267 = vmatprep.subr.bf16.mxu0 %v5637_v37  ;;  %v914_v36 = vld [vmem:[#allocation8 + $0x5f8] sm:$0xff]  ;;  %v5596_v37 = vcombine.low %v1045_v54, %v1049_v56 }
 0x26a   :  { %4308 = vmatprep.subr.bf16.mxu1 %v5765_v4  ;;  %v5724_v4 = vcombine.low %v1173_v0, %v1177_v57  ;;  %v5463_v41 = vcombine.high %v910_v3, %v914_v36  ;;  %v5462_v13 = vcombine.low %v910_v3, %v914_v36  ;;  %v750_v57 = vld [vmem:[#allocation8 + $0xd8] sm:$0xff] }
 0x26b   :  { %v742_v36 = vld [vmem:[#allocation8 + $0x98] sm:$0xff] }
 0x26c   :  { %4268 = vmatpush2.bf16.msra.mxu0 %v5636_v6  ;;  %v1248_v6 = vrot.slane %v6365_v42, %v193_v17  ;;  %v898_v17 = vld [vmem:[#allocation8 + $0x578] sm:$0xff] }
 0x26d   :  { %4309 = vmatpush2.bf16.msra.mxu1 %v5764_v8  ;;  %4269 = vmatprep.subr.bf16.mxu0 %v5629_v9  ;;  %v5334_v8 = vcombine.low %v782_v1, %v786_v2  ;;  %v902_v9 = vld [vmem:[#allocation8 + $0x598] sm:$0xff] }
 0x26e   :  { %4310 = vmatprep.subr.bf16.mxu1 %v5757_v10  ;;  %v906_v10 = vld [vmem:[#allocation8 + $0x5b8] sm:$0xff] }
 0x26f   :  { %v5454_v19 = vcombine.low %v902_v9, %v906_v10 }
 0x270   :  { %4270 = vmatpush2.bf16.msra.mxu0 %v5628_v23  ;;  %v770_v23 = vld [vmem:[#allocation8 + $0x178] sm:$0xff] }
 0x271   :  { %4311 = vmatpush2.bf16.msra.mxu1 %v5756_v16  ;;  %4271 = vmatprep.subr.bf16.mxu0 %v5621_v24  ;;  %v5455_v24 = vcombine.high %v902_v9, %v906_v10  ;;  %v5319_v42 = vcombine.high %v766_v22, %v770_v23  ;;  %v738_v9 = vld [vmem:[#allocation8 + $0x78] sm:$0xff] }
 0x272   :  { %4312 = vmatprep.subr.bf16.mxu1 %v5749_v15  ;;  %v894_v15 = vld [vmem:[#allocation8 + $0x558] sm:$0xff] }
 0x273   :  { %v5446_v54 = vcombine.low %v894_v15, %v898_v17  ;;  %v862_v10 = vld [vmem:[#allocation8 + $0x458] sm:$0xff] }
 0x274   :  { %4272 = vmatpush2.bf16.msra.mxu0 %v5620_v28 }
 0x275   :  { %4313 = vmatpush2.bf16.msra.mxu1 %v5748_v33  ;;  %4273 = vmatprep.subr.bf16.mxu0 %v5613_v55 }
 0x276   :  { %4314 = vmatprep.subr.bf16.mxu1 %v5741_v30  ;;  %v5447_v30 = vcombine.high %v894_v15, %v898_v17  ;;  %v854_v15 = vld [vmem:[#allocation8 + $0x418] sm:$0xff] }
 0x277   :  { %v858_v17 = vld [vmem:[#allocation8 + $0x438] sm:$0xff] }
 0x278   :  { %4274 = vmatpush2.bf16.msra.mxu0 %v5612_v40  ;;  %v890_v40 = vld [vmem:[#allocation8 + $0x538] sm:$0xff] }
 0x279   :  { %4315 = vmatpush2.bf16.msra.mxu1 %v5740_v49  ;;  %4275 = vmatprep.subr.bf16.mxu0 %v5605_v52  ;;  %v5318_v52 = vcombine.low %v766_v22, %v770_v23  ;;  %v5439_v0 = vcombine.high %v886_v35, %v890_v40  ;;  %v5438_v1 = vcombine.low %v886_v35, %v890_v40  ;;  %v838_v35 = vld [vmem:[#allocation8 + $0x398] sm:$0xff] }
 0x27a   :  { %4316 = vmatprep.subr.bf16.mxu1 %v5733_v53  ;;  %v842_v40 = vld [vmem:[#allocation8 + $0x3b8] sm:$0xff] }
 0x27c   :  { %4276 = vmatpush2.bf16.msra.mxu0 %v5604_v58  ;;  %v754_v58 = vld [vmem:[#allocation8 + $0xf8] sm:$0xff] }
 0x27d   :  { %4317 = vmatpush2.bf16.msra.mxu1 %v5732_v59  ;;  %4277 = vmatprep.subr.bf16.mxu0 %v5597_v60  ;;  %v878_v59 = vld [vmem:[#allocation8 + $0x4d8] sm:$0xff]  ;;  %v5303_v2 = vcombine.high %v750_v57, %v754_v58 }
 0x27e   :  { %4318 = vmatprep.subr.bf16.mxu1 %v5725_v62  ;;  %v882_v60 = vld [vmem:[#allocation8 + $0x4f8] sm:$0xff]  ;;  %v5310_v62 = vcombine.low %v758_v34, %v762_v46 }
 0x27f   :  { %v5431_v3 = vcombine.high %v878_v59, %v882_v60  ;;  %v5430_v43 = vcombine.low %v878_v59, %v882_v60  ;;  %v962_v59 = vld [vmem:[#allocation8 + $0x778] sm:$0xff]  ;;  %v5390_v60 = vcombine.low %v838_v35, %v842_v40 }
 0x280   :  { %4278 = vmatpush2.bf16.msra.mxu0 %v5596_v37  ;;  %v746_v37 = vld [vmem:[#allocation8 + $0xb8] sm:$0xff] }
 0x281   :  { %4319 = vmatpush2.bf16.msra.mxu1 %v5724_v4  ;;  %4329 = vmatprep.subr.bf16.mxu0 %v5335_v38  ;;  %v870_v4 = vld [vmem:[#allocation8 + $0x498] sm:$0xff]  ;;  %v5295_v5 = vcombine.high %v742_v36, %v746_v37 }
 0x282   :  { %4370 = vmatprep.subr.bf16.mxu1 %v5463_v41  ;;  %v874_v38 = vld [vmem:[#allocation8 + $0x4b8] sm:$0xff]  ;;  %v5302_v41 = vcombine.low %v750_v57, %v754_v58 }
 0x283   :  { %v4035_v16 = vpop.f32.mrf.mxu0  ;;  %4280 = vmatmul.mubr.bf16.vlgmr.msra.gmra.mxu0 %v6355_v45  ;;  %v834_v57 = vld [vmem:[#allocation8 + $0x378] sm:$0xff] }
 0x284   :  { %v4036_v25 = vadd.f32 %v4035_v16, %v1248_v6  ;;  %v4076_v26 = vpop.f32.mrf.mxu1  ;;  %4321 = vmatmul.mubr.bf16.vlgmr.msra.gmra.mxu1 %v6353_v39  ;;  %4330 = vmatpush1.bf16.msra.mxu0 %v5334_v8  ;;  %v5423_v6 = vcombine.high %v870_v4, %v874_v38  ;;  %v734_v8 = vld [vmem:[#allocation8 + $0x58] sm:$0xff] }
 0x285   :  { %4361 = vmatprep.mubr.bf16.mxu0 %v6309_v48  ;;  %4371 = vmatpush1.bf16.msra.mxu1 %v5462_v13  ;;  %v4037_v18 = vpop.f32.mrf.mxu0  ;;  %v866_v13 = vld [vmem:[#allocation8 + $0x478] sm:$0xff]  ;;  %v5287_v22 = vcombine.high %v734_v8, %v738_v9 }
 0x286   :  { %v6400_v28 = vadd.f32 %v4076_v26, %v4036_v25  ;;  %4402 = vmatprep.mubr.bf16.mxu1 %v6313_v51  ;;  %v4038_v33 = vadd.f32 %v4037_v18, %v1252_v20  ;;  %v4078_v55 = vpop.f32.mrf.mxu1  ;;  %4331 = vmatprep.subr.bf16.mxu0 %v5327_v21  ;;  %v5311_v51 = vcombine.high %v758_v34, %v762_v46  ;;  %v726_v16 = vld [vmem:[#allocation8 + $0x18] sm:$0xff] }
 0x287   :  { %v4039_v11 = vpop.f32.mrf.mxu0  ;;  %4372 = vmatprep.subr.bf16.mxu1 %v5455_v24  ;;  %v5294_v20 = vcombine.low %v742_v36, %v746_v37  ;;  %v5422_v21 = vcombine.low %v870_v4, %v874_v38  ;;  %v5415_v23 = vcombine.high %v862_v10, %v866_v13  ;;  %v730_v24 = vld [vmem:[#allocation8 + $0x38] sm:$0xff]  ;;  %v5286_v25 = vcombine.low %v734_v8, %v738_v9 }
 0x288   :  { %v6403_v49 = vadd.f32 %v4078_v55, %v4038_v33  ;;  %v4080_v48 = vpop.f32.mrf.mxu1  ;;  %4332 = vmatpush1.bf16.msra.mxu0 %v5326_v27  ;;  %v5414_v26 = vcombine.low %v862_v10, %v866_v13  ;;  %v5279_v27 = vcombine.high %v726_v16, %v730_v24  ;;  %v5407_v18 = vcombine.high %v854_v15, %v858_v17  ;;  %v974_v33 = vld [vmem:[#allocation8 + $0x7d8] sm:$0xff] }
 0x289   :  { %4373 = vmatpush1.bf16.msra.mxu1 %v5454_v19  ;;  %v4040_v53 = vpop.f32.mrf.mxu0  ;;  %4333 = vmatprep.subr.bf16.mxu0 %v5319_v42  ;;  %v846_v19 = vld [vmem:[#allocation8 + $0x3d8] sm:$0xff]  ;;  %v5406_v34 = vcombine.low %v854_v15, %v858_v17 }
 0x28a   :  { %v4081_v56 = vpop.f32.mrf.mxu1  ;;  %4374 = vmatprep.subr.bf16.mxu1 %v5447_v30  ;;  %v850_v42 = vld [vmem:[#allocation8 + $0x3f8] sm:$0xff]  ;;  %v5278_v30 = vcombine.low %v726_v16, %v730_v24 }
 0x28b   :  { %v978_v55 = vld [vmem:[#allocation8 + $0x7f8] sm:$0xff]  ;;  %v5399_v46 = vcombine.high %v846_v19, %v850_v42  ;;  %v5398_v53 = vcombine.low %v846_v19, %v850_v42 }
 0x28c   :  { %4334 = vmatpush1.bf16.msra.mxu0 %v5318_v52  ;;  %v5527_v11 = vcombine.high %v974_v33, %v978_v55  ;;  %v966_v48 = vld [vmem:[#allocation8 + $0x798] sm:$0xff] }
 0x28d   :  { %4375 = vmatpush1.bf16.msra.mxu1 %v5446_v54  ;;  %4335 = vmatprep.subr.bf16.mxu0 %v5311_v51  ;;  %v970_v52 = vld [vmem:[#allocation8 + $0x7b8] sm:$0xff]  ;;  %v5526_v54 = vcombine.low %v974_v33, %v978_v55  ;;  %v5391_v51 = vcombine.high %v838_v35, %v842_v40 }
 0x28e   :  { %4376 = vmatprep.subr.bf16.mxu1 %v5439_v0  ;;  %v5519_v56 = vcombine.high %v966_v48, %v970_v52  ;;  %v830_v0 = vld [vmem:[#allocation8 + $0x358] sm:$0xff] }
 0x28f   :  { %v958_v58 = vld [vmem:[#allocation8 + $0x758] sm:$0xff]  ;;  %v5382_v38 = vcombine.low %v830_v0, %v834_v57 }
 0x290   :  { %4336 = vmatpush1.bf16.msra.mxu0 %v5310_v62  ;;  %v5518_v62 = vcombine.low %v966_v48, %v970_v52  ;;  %v826_v36 = vld [vmem:[#allocation8 + $0x338] sm:$0xff] }
 0x291   :  { %4377 = vmatpush1.bf16.msra.mxu1 %v5438_v1  ;;  %4337 = vmatprep.subr.bf16.mxu0 %v5303_v2  ;;  %v5383_v1 = vcombine.high %v830_v0, %v834_v57  ;;  %v5511_v2 = vcombine.high %v958_v58, %v962_v59  ;;  %v950_v37 = vld [vmem:[#allocation8 + $0x718] sm:$0xff] }
 0x292   :  { %4378 = vmatprep.subr.bf16.mxu1 %v5431_v3  ;;  %v822_v3 = vld [vmem:[#allocation8 + $0x318] sm:$0xff] }
 0x293   :  { %v954_v4 = vld [vmem:[#allocation8 + $0x738] sm:$0xff]  ;;  %v5374_v13 = vcombine.low %v822_v3, %v826_v36 }
 0x294   :  { %4338 = vmatpush1.bf16.msra.mxu0 %v5302_v41  ;;  %v5510_v41 = vcombine.low %v958_v58, %v962_v59  ;;  %v818_v8 = vld [vmem:[#allocation8 + $0x2f8] sm:$0xff] }
 0x295   :  { %4379 = vmatpush1.bf16.msra.mxu1 %v5430_v43  ;;  %4339 = vmatprep.subr.bf16.mxu0 %v5295_v5  ;;  %v5375_v43 = vcombine.high %v822_v3, %v826_v36  ;;  %v5503_v5 = vcombine.high %v950_v37, %v954_v4  ;;  %v942_v9 = vld [vmem:[#allocation8 + $0x6d8] sm:$0xff] }
 0x296   :  { %4380 = vmatprep.subr.bf16.mxu1 %v5423_v6  ;;  %v814_v6 = vld [vmem:[#allocation8 + $0x2d8] sm:$0xff] }
 0x297   :  { %v946_v10 = vld [vmem:[#allocation8 + $0x6f8] sm:$0xff]  ;;  %v5366_v17 = vcombine.low %v814_v6, %v818_v8 }
 0x298   :  { %4340 = vmatpush1.bf16.msra.mxu0 %v5294_v20  ;;  %v5502_v20 = vcombine.low %v950_v37, %v954_v4  ;;  %v810_v16 = vld [vmem:[#allocation8 + $0x2b8] sm:$0xff] }
 0x299   :  { %4381 = vmatpush1.bf16.msra.mxu1 %v5422_v21  ;;  %4341 = vmatprep.subr.bf16.mxu0 %v5287_v22  ;;  %v5367_v21 = vcombine.high %v814_v6, %v818_v8  ;;  %v5495_v22 = vcombine.high %v942_v9, %v946_v10  ;;  %v934_v24 = vld [vmem:[#allocation8 + $0x698] sm:$0xff] }
 0x29a   :  { %4382 = vmatprep.subr.bf16.mxu1 %v5415_v23  ;;  %v806_v23 = vld [vmem:[#allocation8 + $0x298] sm:$0xff] }
 0x29b   :  { %v938_v15 = vld [vmem:[#allocation8 + $0x6b8] sm:$0xff]  ;;  %v5358_v55 = vcombine.low %v806_v23, %v810_v16 }
 0x29c   :  { %4342 = vmatpush1.bf16.msra.mxu0 %v5286_v25  ;;  %v5494_v25 = vcombine.low %v942_v9, %v946_v10  ;;  %v802_v19 = vld [vmem:[#allocation8 + $0x278] sm:$0xff] }
 0x29d   :  { %4383 = vmatpush1.bf16.msra.mxu1 %v5414_v26  ;;  %4343 = vmatprep.subr.bf16.mxu0 %v5279_v27  ;;  %v5359_v26 = vcombine.high %v806_v23, %v810_v16  ;;  %v5487_v27 = vcombine.high %v934_v24, %v938_v15  ;;  %v926_v42 = vld [vmem:[#allocation8 + $0x658] sm:$0xff] }
 0x29e   :  { %4384 = vmatprep.subr.bf16.mxu1 %v5407_v18  ;;  %v798_v18 = vld [vmem:[#allocation8 + $0x258] sm:$0xff] }
 0x29f   :  { %v930_v33 = vld [vmem:[#allocation8 + $0x678] sm:$0xff]  ;;  %v5350_v52 = vcombine.low %v798_v18, %v802_v19 }
 0x2a0   :  { %4344 = vmatpush1.bf16.msra.mxu0 %v5278_v30  ;;  %v5486_v30 = vcombine.low %v934_v24, %v938_v15  ;;  %v794_v35 = vld [vmem:[#allocation8 + $0x238] sm:$0xff] }
 0x2a1   :  { %4385 = vmatpush1.bf16.msra.mxu1 %v5406_v34  ;;  %4345 = vmatprep.subr.bf16.mxu0 %v5399_v46  ;;  %v5351_v34 = vcombine.high %v798_v18, %v802_v19  ;;  %v5479_v46 = vcombine.high %v926_v42, %v930_v33  ;;  %v918_v40 = vld [vmem:[#allocation8 + $0x618] sm:$0xff] }
 0x2a2   :  { %4386 = vmatprep.subr.bf16.mxu1 %v5527_v11  ;;  %v790_v11 = vld [vmem:[#allocation8 + $0x218] sm:$0xff] }
 0x2a3   :  { %v922_v48 = vld [vmem:[#allocation8 + $0x638] sm:$0xff]  ;;  %v5342_v59 = vcombine.low %v790_v11, %v794_v35 }
 0x2a4   :  { %4346 = vmatpush2.bf16.msra.mxu0 %v5398_v53  ;;  %v5478_v53 = vcombine.low %v926_v42, %v930_v33  ;;  %v1042_v0 = vld [vmem:[#allocation8 + $0x9f8] sm:$0xff] }
 0x2a5   :  { %4387 = vmatpush2.bf16.msra.mxu1 %v5526_v54  ;;  %4347 = vmatprep.subr.bf16.mxu0 %v5391_v51  ;;  %v5343_v54 = vcombine.high %v790_v11, %v794_v35  ;;  %v5471_v51 = vcombine.high %v918_v40, %v922_v48  ;;  %v1166_v57 = vld [vmem:[#allocation8 + $0xdd8] sm:$0xff] }
 0x2a6   :  { %4388 = vmatprep.subr.bf16.mxu1 %v5519_v56  ;;  %v1038_v56 = vld [vmem:[#allocation8 + $0x9d8] sm:$0xff] }
 0x2a7   :  { %v1170_v58 = vld [vmem:[#allocation8 + $0xdf8] sm:$0xff]  ;;  %v5590_v36 = vcombine.low %v1038_v56, %v1042_v0 }
 0x2a8   :  { %4348 = vmatpush2.bf16.msra.mxu0 %v5390_v60  ;;  %v5470_v60 = vcombine.low %v918_v40, %v922_v48  ;;  %v1034_v3 = vld [vmem:[#allocation8 + $0x9b8] sm:$0xff] }
 0x2a9   :  { %4389 = vmatpush2.bf16.msra.mxu1 %v5518_v62  ;;  %4349 = vmatprep.subr.bf16.mxu0 %v5383_v1  ;;  %v5591_v62 = vcombine.high %v1038_v56, %v1042_v0  ;;  %v5719_v1 = vcombine.high %v1166_v57, %v1170_v58  ;;  %v1158_v37 = vld [vmem:[#allocation8 + $0xd98] sm:$0xff] }
 0x2aa   :  { %4390 = vmatprep.subr.bf16.mxu1 %v5511_v2  ;;  %v1030_v2 = vld [vmem:[#allocation8 + $0x998] sm:$0xff] }
 0x2ab   :  { %v1162_v4 = vld [vmem:[#allocation8 + $0xdb8] sm:$0xff] }
 0x2ac   :  { %4350 = vmatpush2.bf16.msra.mxu0 %v5382_v38  ;;  %v5718_v38 = vcombine.low %v1166_v57, %v1170_v58  ;;  %v5711_v8 = vcombine.high %v1158_v37, %v1162_v4  ;;  %v1150_v9 = vld [vmem:[#allocation8 + $0xd58] sm:$0xff]  ;;  %v5710_v23 = vcombine.low %v1158_v37, %v1162_v4 }
 0x2ad   :  { %4391 = vmatpush2.bf16.msra.mxu1 %v5510_v41  ;;  %4351 = vmatprep.subr.bf16.mxu0 %v5375_v43  ;;  %v5583_v41 = vcombine.high %v1030_v2, %v1034_v3  ;;  %v1022_v43 = vld [vmem:[#allocation8 + $0x958] sm:$0xff] }
 0x2ae   :  { %4392 = vmatprep.subr.bf16.mxu1 %v5503_v5  ;;  %v1026_v5 = vld [vmem:[#allocation8 + $0x978] sm:$0xff] }
 0x2af   :  { %v1154_v10 = vld [vmem:[#allocation8 + $0xd78] sm:$0xff]  ;;  %v5575_v16 = vcombine.high %v1022_v43, %v1026_v5 }
 0x2b0   :  { %4352 = vmatpush2.bf16.msra.mxu0 %v5374_v13  ;;  %v1014_v15 = vld [vmem:[#allocation8 + $0x918] sm:$0xff]  ;;  %v5702_v19 = vcombine.low %v1150_v9, %v1154_v10 }
 0x2b1   :  { %4393 = vmatpush2.bf16.msra.mxu1 %v5502_v20  ;;  %4353 = vmatprep.subr.bf16.mxu0 %v5367_v21  ;;  %v5582_v21 = vcombine.low %v1030_v2, %v1034_v3  ;;  %v982_v4 = vld [vmem:[#allocation8 + $0x818] sm:$0xff] }
 0x2b2   :  { %4394 = vmatprep.subr.bf16.mxu1 %v5495_v22 }
 0x2b4   :  { %4354 = vmatpush2.bf16.msra.mxu0 %v5366_v17  ;;  %v1018_v17 = vld [vmem:[#allocation8 + $0x938] sm:$0xff] }
 0x2b5   :  { %4395 = vmatpush2.bf16.msra.mxu1 %v5494_v25  ;;  %4355 = vmatprep.subr.bf16.mxu0 %v5359_v26  ;;  %v1142_v25 = vld [vmem:[#allocation8 + $0xd18] sm:$0xff]  ;;  %v5567_v42 = vcombine.high %v1014_v15, %v1018_v17  ;;  %v5566_v11 = vcombine.low %v1014_v15, %v1018_v17 }
 0x2b6   :  { %4396 = vmatprep.subr.bf16.mxu1 %v5487_v27  ;;  %v1146_v26 = vld [vmem:[#allocation8 + $0xd38] sm:$0xff]  ;;  %v5574_v27 = vcombine.low %v1022_v43, %v1026_v5 }
 0x2b7   :  { %v5694_v35 = vcombine.low %v1142_v25, %v1146_v26  ;;  %v1114_v43 = vld [vmem:[#allocation8 + $0xc38] sm:$0xff] }
 0x2b8   :  { %4356 = vmatpush2.bf16.msra.mxu0 %v5358_v55  ;;  %v1006_v55 = vld [vmem:[#allocation8 + $0x8d8] sm:$0xff] }
 0x2b9   :  { %4397 = vmatpush2.bf16.msra.mxu1 %v5486_v30  ;;  %4357 = vmatprep.subr.bf16.mxu0 %v5351_v34  ;;  %v1010_v30 = vld [vmem:[#allocation8 + $0x8f8] sm:$0xff] }
 0x2ba   :  { %4398 = vmatprep.subr.bf16.mxu1 %v5479_v46  ;;  %v1134_v34 = vld [vmem:[#allocation8 + $0xcd8] sm:$0xff]  ;;  %v5559_v40 = vcombine.high %v1006_v55, %v1010_v30  ;;  %v5558_v56 = vcombine.low %v1006_v55, %v1010_v30 }
 0x2bb   :  { %v1138_v46 = vld [vmem:[#allocation8 + $0xcf8] sm:$0xff] }
 0x2bc   :  { %4358 = vmatpush2.bf16.msra.mxu0 %v5350_v52  ;;  %v5687_v48 = vcombine.high %v1134_v34, %v1138_v46  ;;  %v998_v52 = vld [vmem:[#allocation8 + $0x898] sm:$0xff]  ;;  %v5686_v0 = vcombine.low %v1134_v34, %v1138_v46 }
 0x2bd   :  { %4399 = vmatpush2.bf16.msra.mxu1 %v5478_v53  ;;  %4359 = vmatprep.subr.bf16.mxu0 %v5343_v54  ;;  %v1002_v53 = vld [vmem:[#allocation8 + $0x8b8] sm:$0xff] }
 0x2be   :  { %4400 = vmatprep.subr.bf16.mxu1 %v5471_v51  ;;  %v1126_v54 = vld [vmem:[#allocation8 + $0xc98] sm:$0xff]  ;;  %v5551_v57 = vcombine.high %v998_v52, %v1002_v53  ;;  %v5550_v2 = vcombine.low %v998_v52, %v1002_v53 }
 0x2bf   :  { %v1130_v51 = vld [vmem:[#allocation8 + $0xcb8] sm:$0xff] }
 0x2c0   :  { %4360 = vmatpush2.bf16.msra.mxu0 %v5342_v59  ;;  %v5679_v58 = vcombine.high %v1126_v54, %v1130_v51  ;;  %v990_v59 = vld [vmem:[#allocation8 + $0x858] sm:$0xff]  ;;  %v5678_v3 = vcombine.low %v1126_v54, %v1130_v51 }
 0x2c1   :  { %4401 = vmatpush2.bf16.msra.mxu1 %v5470_v60  ;;  %4411 = vmatprep.subr.bf16.mxu0 %v5591_v62  ;;  %v994_v60 = vld [vmem:[#allocation8 + $0x878] sm:$0xff] }
 0x2c2   :  { %4452 = vmatprep.subr.bf16.mxu1 %v5719_v1  ;;  %v1118_v62 = vld [vmem:[#allocation8 + $0xc58] sm:$0xff]  ;;  %v5542_v5 = vcombine.low %v990_v59, %v994_v60 }
 0x2c3   :  { %v4117_v6 = vpop.f32.mrf.mxu0  ;;  %4362 = vmatmul.mubr.bf16.vlgmr.msra.gmra.mxu0 %v6311_v50  ;;  %v1122_v1 = vld [vmem:[#allocation8 + $0xc78] sm:$0xff] }
 0x2c4   :  { %v4118_v13 = vadd.f32 %v4117_v6, %v6400_v28  ;;  %v4158_v20 = vpop.f32.mrf.mxu1  ;;  %4403 = vmatmul.mubr.bf16.vlgmr.msra.gmra.mxu1 %v6307_v47  ;;  %4412 = vmatpush1.bf16.msra.mxu0 %v5590_v36  ;;  %v5703_v28 = vcombine.high %v1150_v9, %v1154_v10  ;;  %v5543_v36 = vcombine.high %v990_v59, %v994_v60  ;;  %v1102_v10 = vld [vmem:[#allocation8 + $0xbd8] sm:$0xff] }
 0x2c5   :  { %4443 = vmatprep.mubr.bf16.mxu0 %v6337_v7  ;;  %4453 = vmatpush1.bf16.msra.mxu1 %v5718_v38  ;;  %v6409_v22 = vpop.f32.mrf.mxu0  ;;  %v5671_v37 = vcombine.high %v1118_v62, %v1122_v1  ;;  %v986_v38 = vld [vmem:[#allocation8 + $0x838] sm:$0xff]  ;;  %v5670_v6 = vcombine.low %v1118_v62, %v1122_v1 }
 0x2c6   :  { %v6411_v24 = vadd.f32 %v4158_v20, %v4118_v13  ;;  %4484 = vmatprep.mubr.bf16.mxu1 %v6339_v12  ;;  %v6414_v50 = vpop.f32.mrf.mxu1  ;;  %4413 = vmatprep.subr.bf16.mxu0 %v5583_v41  ;;  %v5695_v12 = vcombine.high %v1142_v25, %v1146_v26  ;;  %v1110_v41 = vld [vmem:[#allocation8 + $0xc18] sm:$0xff] }
 0x2c7   :  { %v4121_v47 = vpop.f32.mrf.mxu0  ;;  %4454 = vmatprep.subr.bf16.mxu1 %v5711_v8  ;;  %v5535_v8 = vcombine.high %v982_v4, %v986_v38  ;;  %v5663_v9 = vcombine.high %v1110_v41, %v1114_v43  ;;  %v1106_v13 = vld [vmem:[#allocation8 + $0xbf8] sm:$0xff] }
 0x2c8   :  { %v4162_v7 = vpop.f32.mrf.mxu1  ;;  %4414 = vmatpush1.bf16.msra.mxu0 %v5582_v21  ;;  %v1230_v20 = vld [vmem:[#allocation8 + $0xfd8] sm:$0xff] }
 0x2c9   :  { %4455 = vmatpush1.bf16.msra.mxu1 %v5710_v23  ;;  %v4122_v18 = vpop.f32.mrf.mxu0  ;;  %4415 = vmatprep.subr.bf16.mxu0 %v5575_v16  ;;  %v1234_v21 = vld [vmem:[#allocation8 + $0xff8] sm:$0xff]  ;;  %v5534_v23 = vcombine.low %v982_v4, %v986_v38  ;;  %v5662_v16 = vcombine.low %v1110_v41, %v1114_v43  ;;  %v5654_v7 = vcombine.low %v1102_v10, %v1106_v13 }
 0x2ca   :  { %v4163_v33 = vpop.f32.mrf.mxu1  ;;  %4456 = vmatprep.subr.bf16.mxu1 %v5703_v28  ;;  %v5655_v28 = vcombine.high %v1102_v10, %v1106_v13  ;;  %v5783_v15 = vcombine.high %v1230_v20, %v1234_v21  ;;  %v1094_v17 = vld [vmem:[#allocation8 + $0xb98] sm:$0xff] }
 0x2cb   :  { %v1098_v47 = vld [vmem:[#allocation8 + $0xbb8] sm:$0xff] }
 0x2cc   :  { %4416 = vmatpush1.bf16.msra.mxu0 %v5574_v27  ;;  %v1222_v25 = vld [vmem:[#allocation8 + $0xf98] sm:$0xff]  ;;  %v5782_v27 = vcombine.low %v1230_v20, %v1234_v21  ;;  %v5647_v18 = vcombine.high %v1094_v17, %v1098_v47  ;;  %v5646_v30 = vcombine.low %v1094_v17, %v1098_v47  ;;  %v4120_v47 = vadd.f32 %v6409_v22, %v6403_v49 }
 0x2cd   :  { %4457 = vmatpush1.bf16.msra.mxu1 %v5702_v19  ;;  %4417 = vmatprep.subr.bf16.mxu0 %v5567_v42  ;;  %v1226_v26 = vld [vmem:[#allocation8 + $0xfb8] sm:$0xff]  ;;  %v4494_v49 = vmax.f32 %v6389_v44, 0.0 }
 0x2ce   :  { %4458 = vmatprep.subr.bf16.mxu1 %v5695_v12  ;;  %v5775_v19 = vcombine.high %v1222_v25, %v1226_v26  ;;  %v1086_v42 = vld [vmem:[#allocation8 + $0xb58] sm:$0xff]  ;;  %v5774_v34 = vcombine.low %v1222_v25, %v1226_v26 }
 0x2cf   :  { %v1090_v33 = vld [vmem:[#allocation8 + $0xb78] sm:$0xff] }
 0x2d0   :  { %4418 = vmatpush1.bf16.msra.mxu0 %v5566_v11  ;;  %v1214_v12 = vld [vmem:[#allocation8 + $0xf58] sm:$0xff]  ;;  %v5639_v46 = vcombine.high %v1086_v42, %v1090_v33  ;;  %v5638_v53 = vcombine.low %v1086_v42, %v1090_v33  ;;  %v5950_v33 = vld [vmem:[#allocation11 + $0x78] sm:$0xff]  }
 0x2d1   :  { %4459 = vmatpush1.bf16.msra.mxu1 %v5694_v35  ;;  %4419 = vmatprep.subr.bf16.mxu0 %v5559_v40  ;;  %v1218_v55 = vld [vmem:[#allocation8 + $0xf78] sm:$0xff] }
 0x2d2   :  { %4460 = vmatprep.subr.bf16.mxu1 %v5687_v48  ;;  %v5767_v11 = vcombine.high %v1214_v12, %v1218_v55  ;;  %v1078_v35 = vld [vmem:[#allocation8 + $0xb18] sm:$0xff]  ;;  %v5766_v54 = vcombine.low %v1214_v12, %v1218_v55  ;;  %v5951_v12 = vld [vmem:[#allocation11 + $0xf8] sm:$0xff]  }
 0x2d3   :  { %v1082_v40 = vld [vmem:[#allocation8 + $0xb38] sm:$0xff]  ;;  %v5952_v55 = vld [vmem:[#allocation11 + $0x38] sm:$0xff]  }
 0x2d4   :  { %4420 = vmatpush1.bf16.msra.mxu0 %v5558_v56  ;;  %v1206_v48 = vld [vmem:[#allocation8 + $0xf18] sm:$0xff]  ;;  %v5631_v51 = vcombine.high %v1078_v35, %v1082_v40  ;;  %v5630_v60 = vcombine.low %v1078_v35, %v1082_v40 }
 0x2d5   :  { %4461 = vmatpush1.bf16.msra.mxu1 %v5686_v0  ;;  %4421 = vmatprep.subr.bf16.mxu0 %v5551_v57  ;;  %v1210_v52 = vld [vmem:[#allocation8 + $0xf38] sm:$0xff] }
 0x2d6   :  { %4462 = vmatprep.subr.bf16.mxu1 %v5679_v58  ;;  %v5759_v56 = vcombine.high %v1206_v48, %v1210_v52  ;;  %v1070_v0 = vld [vmem:[#allocation8 + $0xad8] sm:$0xff]  ;;  %v5758_v62 = vcombine.low %v1206_v48, %v1210_v52 }
 0x2d7   :  { %v1074_v57 = vld [vmem:[#allocation8 + $0xaf8] sm:$0xff] }
 0x2d8   :  { %4422 = vmatpush1.bf16.msra.mxu0 %v5550_v2  ;;  %v1198_v58 = vld [vmem:[#allocation8 + $0xed8] sm:$0xff]  ;;  %v5623_v1 = vcombine.high %v1070_v0, %v1074_v57  ;;  %v5622_v38 = vcombine.low %v1070_v0, %v1074_v57  ;;  %v5960_v0 = vld [vmem:[#allocation11 + $0x28] sm:$0xff]  }
 0x2d9   :  { %4463 = vmatpush1.bf16.msra.mxu1 %v5678_v3  ;;  %4423 = vmatprep.subr.bf16.mxu0 %v5543_v36  ;;  %v1202_v59 = vld [vmem:[#allocation8 + $0xef8] sm:$0xff]  ;;  %v5961_v57 = vld [vmem:[#allocation11 + $0xa8] sm:$0xff]  }
 0x2da   :  { %4464 = vmatprep.subr.bf16.mxu1 %v5671_v37  ;;  %v5751_v2 = vcombine.high %v1198_v58, %v1202_v59  ;;  %v1062_v3 = vld [vmem:[#allocation8 + $0xa98] sm:$0xff]  ;;  %v5750_v41 = vcombine.low %v1198_v58, %v1202_v59  ;;  %v5962_v58 = vld [vmem:[#allocation11 + $0x60] sm:$0xff]  }
 0x2db   :  { %v1066_v36 = vld [vmem:[#allocation8 + $0xab8] sm:$0xff] }
 0x2dc   :  { %4424 = vmatpush1.bf16.msra.mxu0 %v5542_v5  ;;  %v1190_v37 = vld [vmem:[#allocation8 + $0xe98] sm:$0xff]  ;;  %v5615_v43 = vcombine.high %v1062_v3, %v1066_v36  ;;  %v5614_v13 = vcombine.low %v1062_v3, %v1066_v36  ;;  %v5967_v3 = vld [vmem:[#allocation11 + $0xd8] sm:$0xff]  }
 0x2dd   :  { %4465 = vmatpush1.bf16.msra.mxu1 %v5670_v6  ;;  %4425 = vmatprep.subr.bf16.mxu0 %v5535_v8  ;;  %v1194_v4 = vld [vmem:[#allocation8 + $0xeb8] sm:$0xff]  ;;  %v5968_v36 = vld [vmem:[#allocation11 + $0x18] sm:$0xff]  }
 0x2de   :  { %4466 = vmatprep.subr.bf16.mxu1 %v5663_v9  ;;  %v5743_v5 = vcombine.high %v1190_v37, %v1194_v4  ;;  %v1054_v6 = vld [vmem:[#allocation8 + $0xa58] sm:$0xff]  ;;  %v5742_v20 = vcombine.low %v1190_v37, %v1194_v4  ;;  %v5969_v37 = vld [vmem:[#allocation11 + $0x98] sm:$0xff]  }
 0x2df   :  { %v1058_v8 = vld [vmem:[#allocation8 + $0xa78] sm:$0xff] }
 0x2e0   :  { %4426 = vmatpush1.bf16.msra.mxu0 %v5534_v23  ;;  %v1182_v9 = vld [vmem:[#allocation8 + $0xe58] sm:$0xff]  ;;  %v5607_v21 = vcombine.high %v1054_v6, %v1058_v8  ;;  %v5606_v25 = vcombine.low %v1054_v6, %v1058_v8  ;;  %v5975_v6 = vld [vmem:[#allocation11 + $0xc8] sm:$0xff]  }
 0x2e1   :  { %4467 = vmatpush1.bf16.msra.mxu1 %v5662_v16  ;;  %4427 = vmatprep.subr.bf16.mxu0 %v5655_v28  ;;  %v1186_v10 = vld [vmem:[#allocation8 + $0xe78] sm:$0xff]  ;;  %v5976_v8 = vld [vmem:[#allocation11 + $0x8] sm:$0xff]  }
 0x2e2   :  { %4468 = vmatprep.subr.bf16.mxu1 %v5783_v15  ;;  %v5735_v23 = vcombine.high %v1182_v9, %v1186_v10  ;;  %v1046_v16 = vld [vmem:[#allocation8 + $0xa18] sm:$0xff]  ;;  %v5734_v26 = vcombine.low %v1182_v9, %v1186_v10  ;;  %v5977_v9 = vld [vmem:[#allocation11 + $0x88] sm:$0xff]   ;;  %v5978_v10 = vld [vmem:[#allocation11 + $0x40] sm:$0xff]  }
 0x2e3   :  { %v1050_v28 = vld [vmem:[#allocation8 + $0xa38] sm:$0xff] }
 0x2e4   :  { %4428 = vmatpush2.bf16.msra.mxu0 %v5654_v7  ;;  %v1174_v15 = vld [vmem:[#allocation8 + $0xe18] sm:$0xff]  ;;  %v5599_v7 = vcombine.high %v1046_v16, %v1050_v28 }
 0x2e5   :  { %4469 = vmatpush2.bf16.msra.mxu1 %v5782_v27  ;;  %4429 = vmatprep.subr.bf16.mxu0 %v5647_v18  ;;  %v1178_v17 = vld [vmem:[#allocation8 + $0xe38] sm:$0xff]  ;;  %v4161_v18 = vadd.f32 %v6414_v50, %v4120_v47 }
 0x2e6   :  { %4470 = vmatprep.subr.bf16.mxu1 %v5775_v19  ;;  %v5727_v27 = vcombine.high %v1174_v15, %v1178_v17  ;;  %v5598_v19 = vcombine.low %v1046_v16, %v1050_v28  ;;  %v5726_v42 = vcombine.low %v1174_v15, %v1178_v17  ;;  %v5956_v44 = vld [vmem:[#allocation11 + $0x30] sm:$0xff]   ;;  %v5982_v16 = vld [vmem:[#allocation11 + $0x178] sm:$0xff]   ;;  %v4495_v28 = vmax.f32 %v6411_v24, 0.0 }
 0x2e7   :  { %v4496_v22 = vmax.f32 %v4161_v18, 0.0  ;;  %v5957_v52 = vld [vmem:[#allocation11 + $0xb0] sm:$0xff]   ;;  %v5998_v15 = vld [vmem:[#allocation11 + $0x1f8] sm:$0xff]   ;;  %v5986_v18 = vld [vmem:[#allocation11 + $0x168] sm:$0xff]  }
 0x2e8   :  { %4430 = vmatpush2.bf16.msra.mxu0 %v5646_v30  ;;  %v5953_v30 = vld [vmem:[#allocation11 + $0xb8] sm:$0xff]   ;;  %v5970_v4 = vld [vmem:[#allocation11 + $0x50] sm:$0xff]  }
 0x2e9   :  { %4471 = vmatpush2.bf16.msra.mxu1 %v5774_v34  ;;  %4431 = vmatprep.subr.bf16.mxu0 %v5639_v46  ;;  %v5954_v34 = vld [vmem:[#allocation11 + $0x70] sm:$0xff]   ;;  %v4502_v46 = vpack.c.bf16 %v4494_v49, %v4494_v49  ;;  %v4504_v35 = vpack.c.bf16 %v4496_v22, %v4496_v22  ;;  %v5983_v17 = vld [vmem:[#allocation11 + $0x138] sm:$0xff]   ;;  %v6004_v49 = vld [vmem:[#allocation11 + $0x1e0] sm:$0xff]  }
 0x2ea   :  { %4472 = vmatprep.subr.bf16.mxu1 %v5767_v11  ;;  %v5955_v11 = vld [vmem:[#allocation11 + $0xf0] sm:$0xff]   ;;  %v5989_v22 = vld [vmem:[#allocation11 + $0x120] sm:$0xff]  }
 0x2eb   :  { %v6001_v24 = vld [vmem:[#allocation11 + $0x1b0] sm:$0xff]  }
 0x2ec   :  { %4432 = vmatpush2.bf16.msra.mxu0 %v5638_v53  ;;  %v5958_v53 = vld [vmem:[#allocation11 + $0x68] sm:$0xff]  }
 0x2ed   :  { %4473 = vmatpush2.bf16.msra.mxu1 %v5766_v54  ;;  %4433 = vmatprep.subr.bf16.mxu0 %v5631_v51  ;;  %v5959_v51 = vld [vmem:[#allocation11 + $0xe8] sm:$0xff]  }
 0x2ee   :  { %4474 = vmatprep.subr.bf16.mxu1 %v5759_v56 }
 0x2f0   :  { %4434 = vmatpush2.bf16.msra.mxu0 %v5630_v60  ;;  %v5963_v60 = vld [vmem:[#allocation11 + $0xe0] sm:$0xff]  }
 0x2f1   :  { %4475 = vmatpush2.bf16.msra.mxu1 %v5758_v62  ;;  %4435 = vmatprep.subr.bf16.mxu0 %v5623_v1  ;;  %v5964_v62 = vld [vmem:[#allocation11 + $0x20] sm:$0xff]  }
 0x2f2   :  { %4476 = vmatprep.subr.bf16.mxu1 %v5751_v2  ;;  %v5965_v1 = vld [vmem:[#allocation11 + $0xa0] sm:$0xff]   ;;  %v5966_v2 = vld [vmem:[#allocation11 + $0x58] sm:$0xff]  }
 0x2f4   :  { %4436 = vmatpush2.bf16.msra.mxu0 %v5622_v38  ;;  %v5971_v38 = vld [vmem:[#allocation11 + $0xd0] sm:$0xff]  }
 0x2f5   :  { %4477 = vmatpush2.bf16.msra.mxu1 %v5750_v41  ;;  %4437 = vmatprep.subr.bf16.mxu0 %v5615_v43  ;;  %v5972_v41 = vld [vmem:[#allocation11 + $0x10] sm:$0xff]  }
 0x2f6   :  { %4478 = vmatprep.subr.bf16.mxu1 %v5743_v5  ;;  %v5973_v43 = vld [vmem:[#allocation11 + $0x90] sm:$0xff]   ;;  %v5974_v5 = vld [vmem:[#allocation11 + $0x48] sm:$0xff]  }
 0x2f8   :  { %4438 = vmatpush2.bf16.msra.mxu0 %v5614_v13  ;;  %v5979_v13 = vld [vmem:[#allocation11 + $0xc0] sm:$0xff]  }
 0x2f9   :  { %4479 = vmatpush2.bf16.msra.mxu1 %v5742_v20  ;;  %4439 = vmatprep.subr.bf16.mxu0 %v5607_v21  ;;  %v5980_v20 = vld [vmem:[#allocation11] sm:$0xff]   ;;  %v4493_v21 = vmax.f32 %v6385_v31, 0.0  ;;  %v5985_v31 = vld [vmem:[#allocation11 + $0x130] sm:$0xff]  }
 0x2fa   :  { %4480 = vmatprep.subr.bf16.mxu1 %v5735_v23  ;;  %v5981_v23 = vld [vmem:[#allocation11 + $0x80] sm:$0xff]  }
 0x2fb   :  { %v4501_v47 = vpack.c.bf16 %v4493_v21, %v4493_v21 }
 0x2fc   :  { %4440 = vmatpush2.bf16.msra.mxu0 %v5606_v25  ;;  %v5984_v25 = vld [vmem:[#allocation11 + $0x170] sm:$0xff]  }
 0x2fd   :  { %4481 = vmatpush2.bf16.msra.mxu1 %v5734_v26  ;;  %4441 = vmatprep.subr.bf16.mxu0 %v5599_v7  ;;  %v5999_v26 = vld [vmem:[#allocation11 + $0x1b8] sm:$0xff]   ;;  %v4503_v7 = vpack.c.bf16 %v4495_v28, %v4495_v28 }
 0x2fe   :  { %4482 = vmatprep.subr.bf16.mxu1 %v5727_v27  ;;  %v6000_v27 = vld [vmem:[#allocation11 + $0x1f0] sm:$0xff]  }
 0x300   :  { %4442 = vmatpush2.bf16.msra.mxu0 %v5598_v19  ;;  %v6002_v19 = vld [vmem:[#allocation11 + $0x1e8] sm:$0xff]  }
 0x301   :  { %4483 = vmatpush2.bf16.msra.mxu1 %v5726_v42  ;;  %5849 = vmatprep.subr.bf16.mxu0 %v5950_v33  ;;  %v5987_v42 = vld [vmem:[#allocation11 + $0x128] sm:$0xff]   ;;  %v5988_v33 = vld [vmem:[#allocation11 + $0x160] sm:$0xff]  }
 0x302   :  { %5871 = vmatprep.subr.bf16.mxu1 %v5951_v12  ;;  %v6003_v12 = vld [vmem:[#allocation11 + $0x1a8] sm:$0xff]  }
 0x303   :  { %v6420_v50 = vpop.f32.mrf.mxu0  ;;  %4444 = vmatmul.mubr.bf16.vlgmr.msra.gmra.mxu0 %v6355_v45 }
 0x304   :  { %v6423_v40 = vpop.f32.mrf.mxu1  ;;  %4485 = vmatmul.mubr.bf16.vlgmr.msra.gmra.mxu1 %v6353_v39  ;;  %5850 = vmatpush3.bf16.msra.mxu0 %v5952_v55  ;;  %v5990_v55 = vld [vmem:[#allocation11 + $0x158] sm:$0xff]  }
 0x305   :  { %5060 = vmatprep.mubr.bf16.mxu0 %v4502_v46  ;;  %5872 = vmatpush3.bf16.msra.mxu1 %v5953_v30  ;;  %v6426_v48 = vpop.f32.mrf.mxu0  ;;  %v6005_v30 = vld [vmem:[#allocation11 + $0x1a0] sm:$0xff]   ;;  %v5991_v46 = vld [vmem:[#allocation11 + $0x118] sm:$0xff]  }
 0x306   :  { %5100 = vmatprep.mubr.bf16.mxu1 %v4504_v35  ;;  %v6428_v54 = vpop.f32.mrf.mxu1  ;;  %5851 = vmatprep.subr.bf16.mxu0 %v5954_v34  ;;  %v6006_v34 = vld [vmem:[#allocation11 + $0x1d8] sm:$0xff]  }
 0x307   :  { %v4203_v45 = vpop.f32.mrf.mxu0  ;;  %5873 = vmatprep.subr.bf16.mxu1 %v5955_v11  ;;  %v5992_v11 = vld [vmem:[#allocation11 + $0x150] sm:$0xff]   ;;  %v6007_v35 = vld [vmem:[#allocation11 + $0x198] sm:$0xff]  }
 0x308   :  { %v4244_v56 = vpop.f32.mrf.mxu1  ;;  %5852 = vmatpush3.bf16.msra.mxu0 %v5956_v44  ;;  %v5993_v44 = vld [vmem:[#allocation11 + $0x110] sm:$0xff]   ;;  %v6016_v45 = vld [vmem:[#allocation10] sm:$0xff] }
 0x309   :  { %5874 = vmatpush3.bf16.msra.mxu1 %v5957_v52  ;;  %v4204_v39 = vpop.f32.mrf.mxu0  ;;  %5853 = vmatprep.subr.bf16.mxu0 %v5958_v53  ;;  %v5994_v52 = vld [vmem:[#allocation11 + $0x148] sm:$0xff]   ;;  %v1256_v56 = vrot.slane %v6016_v45, %v201_v63  ;;  %v6009_v63 = vld [vmem:[#allocation11 + $0x190] sm:$0xff]  }
 0x30a   :  { %v4245_v59 = vpop.f32.mrf.mxu1  ;;  %5875 = vmatprep.subr.bf16.mxu1 %v5959_v51  ;;  %v5995_v53 = vld [vmem:[#allocation11 + $0x108] sm:$0xff]   ;;  %v5996_v51 = vld [vmem:[#allocation11 + $0x140] sm:$0xff]  }
 0x30b   :  { %v5997_v39 = vld [vmem:[#allocation11 + $0x100] sm:$0xff]  }
 0x30c   :  { %5854 = vmatpush3.bf16.msra.mxu0 %v5960_v0  ;;  %v1260_v0 = vrot.slane %v6016_v45, %v205_v29 }
 0x30d   :  { %5876 = vmatpush3.bf16.msra.mxu1 %v5961_v57  ;;  %5855 = vmatprep.subr.bf16.mxu0 %v5962_v58  ;;  %v4200_v57 = vadd.f32 %v6420_v50, %v1256_v56  ;;  %v6010_v50 = vld [vmem:[#allocation11 + $0x1c8] sm:$0xff]  }
 0x30e   :  { %5877 = vmatprep.subr.bf16.mxu1 %v5963_v60  ;;  %v4202_v58 = vadd.f32 %v6426_v48, %v1260_v0 }
 0x30f   :  { %v4241_v59 = vadd.f32 %v6423_v40, %v4200_v57 }
 0x310   :  { %5856 = vmatpush3.bf16.msra.mxu0 %v5964_v62  ;;  %v6008_v62 = vld [vmem:[#allocation11 + $0x1d0] sm:$0xff]  }
 0x311   :  { %5878 = vmatpush3.bf16.msra.mxu1 %v5965_v1  ;;  %5857 = vmatprep.subr.bf16.mxu0 %v5966_v2  ;;  %v4243_v1 = vadd.f32 %v6428_v54, %v4202_v58  ;;  %v6012_v54 = vld [vmem:[#allocation11 + $0x1c0] sm:$0xff]  }
 0x312   :  { %5879 = vmatprep.subr.bf16.mxu1 %v5967_v3 }
 0x314   :  { %5858 = vmatpush3.bf16.msra.mxu0 %v5968_v36 }
 0x315   :  { %5880 = vmatpush3.bf16.msra.mxu1 %v5969_v37  ;;  %5859 = vmatprep.subr.bf16.mxu0 %v5970_v4 }
 0x316   :  { %5881 = vmatprep.subr.bf16.mxu1 %v5971_v38 }
 0x318   :  { %5860 = vmatpush3.bf16.msra.mxu0 %v5972_v41 }
 0x319   :  { %5882 = vmatpush3.bf16.msra.mxu1 %v5973_v43  ;;  %5861 = vmatprep.subr.bf16.mxu0 %v5974_v5  ;;  %v6011_v43 = vld [vmem:[#allocation11 + $0x188] sm:$0xff]  }
 0x31a   :  { %5883 = vmatprep.subr.bf16.mxu1 %v5975_v6 }
 0x31c   :  { %5862 = vmatpush3.bf16.msra.mxu0 %v5976_v8 }
 0x31d   :  { %5884 = vmatpush3.bf16.msra.mxu1 %v5977_v9  ;;  %5863 = vmatprep.subr.bf16.mxu0 %v5978_v10  ;;  %v6013_v10 = vld [vmem:[#allocation11 + $0x180] sm:$0xff]  }
 0x31e   :  { %5885 = vmatprep.subr.bf16.mxu1 %v5979_v13 }
 0x320   :  { %5864 = vmatpush3.bf16.msra.mxu0 %v5980_v20 }
 0x321   :  { %5886 = vmatpush3.bf16.msra.mxu1 %v5981_v23  ;;  %5893 = vmatprep.subr.bf16.mxu0 %v5982_v16 }
 0x322   :  { %5915 = vmatprep.subr.bf16.mxu1 %v5998_v15 }
 0x323   :  { %5061 = vmatmul.mubr.bf16.vlgmr.msra.gmra.mxu0 %v4501_v47 }
 0x324   :  { %5101 = vmatmul.mubr.bf16.vlgmr.msra.gmra.mxu1 %v4503_v7  ;;  %5894 = vmatpush3.bf16.msra.mxu0 %v5983_v17 }
 0x325   :  { %5895 = vmatprep.subr.bf16.mxu0 %v5984_v25  ;;  %5916 = vmatpush3.bf16.msra.mxu1 %v5999_v26  ;;  %v1264_v25 = vrot.slane %v6016_v45, %v209_v61  ;;  %v1268_v26 = vrot.slane %v6016_v45, %v213_v32 }
 0x326   :  { %5917 = vmatprep.subr.bf16.mxu1 %v6000_v27 }
 0x328   :  { %5896 = vmatpush3.bf16.msra.mxu0 %v5985_v31 }
 0x329   :  { %5897 = vmatprep.subr.bf16.mxu0 %v5986_v18  ;;  %5918 = vmatpush3.bf16.msra.mxu1 %v6001_v24 }
 0x32a   :  { %5919 = vmatprep.subr.bf16.mxu1 %v6002_v19 }
 0x32c   :  { %5898 = vmatpush3.bf16.msra.mxu0 %v5987_v42 }
 0x32d   :  { %5899 = vmatprep.subr.bf16.mxu0 %v5988_v33  ;;  %5920 = vmatpush3.bf16.msra.mxu1 %v6003_v12 }
 0x32e   :  { %5921 = vmatprep.subr.bf16.mxu1 %v6004_v49 }
 0x330   :  { %5900 = vmatpush3.bf16.msra.mxu0 %v5989_v22 }
 0x331   :  { %5901 = vmatprep.subr.bf16.mxu0 %v5990_v55  ;;  %5922 = vmatpush3.bf16.msra.mxu1 %v6005_v30 }
 0x332   :  { %5923 = vmatprep.subr.bf16.mxu1 %v6006_v34 }
 0x334   :  { %5902 = vmatpush3.bf16.msra.mxu0 %v5991_v46 }
 0x335   :  { %5903 = vmatprep.subr.bf16.mxu0 %v5992_v11  ;;  %5924 = vmatpush3.bf16.msra.mxu1 %v6007_v35 }
 0x336   :  { %5925 = vmatprep.subr.bf16.mxu1 %v6008_v62 }
 0x338   :  { %5904 = vmatpush3.bf16.msra.mxu0 %v5993_v44 }
 0x339   :  { %5905 = vmatprep.subr.bf16.mxu0 %v5994_v52  ;;  %5926 = vmatpush3.bf16.msra.mxu1 %v6009_v63 }
 0x33a   :  { %5927 = vmatprep.subr.bf16.mxu1 %v6010_v50 }
 0x33c   :  { %5906 = vmatpush3.bf16.msra.mxu0 %v5995_v53  ;;  %v5784_v53 = vld [vmem:[#allocation13] ss:$0 sm:$0xff] }
 0x33d   :  { %5907 = vmatprep.subr.bf16.mxu0 %v5996_v51  ;;  %5928 = vmatpush3.bf16.msra.mxu1 %v6011_v43 }
 0x33e   :  { %5929 = vmatprep.subr.bf16.mxu1 %v6012_v54 }
 0x340   :  { %5908 = vmatpush3.bf16.msra.mxu0 %v5997_v39 }
 0x341   :  { %5930 = vmatpush3.bf16.msra.mxu1 %v6013_v10 }
 0x343   :  { %v4281_v60 = vpop.f32.mrf.mxu0 }
 0x344   :  { %v4282_v2 = vadd.f32 %v4281_v60, %v4241_v59  ;;  %v4322_v3 = vpop.f32.mrf.mxu1 }
 0x345   :  { %v4283_v36 = vpop.f32.mrf.mxu0 }
 0x346   :  { %v4323_v29 = vadd.f32 %v4322_v3, %v4282_v2  ;;  %v4284_v37 = vadd.f32 %v4283_v36, %v4243_v1  ;;  %v4324_v4 = vpop.f32.mrf.mxu1 }
 0x347   :  { %v4285_v38 = vpop.f32.mrf.mxu0 }
 0x348   :  { %v4325_v41 = vadd.f32 %v4324_v4, %v4284_v37  ;;  %v4326_v48 = vpop.f32.mrf.mxu1  ;;  %v4497_v5 = vmax.f32 %v4323_v29, 0.0 }
 0x349   :  { %v4286_v40 = vpop.f32.mrf.mxu0 }
 0x34a   :  { %v4498_v6 = vmax.f32 %v4325_v41, 0.0  ;;  %v4327_v8 = vpop.f32.mrf.mxu1  ;;  %v4505_v13 = vpack.c.bf16 %v4497_v5, %v4497_v5 }
 0x34c   :  { %v4506_v9 = vpack.c.bf16 %v4498_v6, %v4498_v6 }
 0x34e   :  { %5140 = vmatprep.mubr.bf16.mxu0 %v4506_v9 }
 0x34f   :  { %5141 = vmatmul.mubr.bf16.vlgmr.msra.gmra.mxu0 %v4505_v13 }
 0x383   :  { %v4363_v20 = vpop.f32.mrf.mxu0 }
 0x384   :  { %v4404_v21 = vpop.f32.mrf.mxu1  ;;  %v4364_v7 = vadd.f32 %v4363_v20, %v1264_v25 }
 0x385   :  { %v4365_v23 = vpop.f32.mrf.mxu0 }
 0x386   :  { %v4406_v16 = vpop.f32.mrf.mxu1  ;;  %v4366_v27 = vadd.f32 %v4365_v23, %v1268_v26  ;;  %v4405_v31 = vadd.f32 %v4404_v21, %v4364_v7 }
 0x387   :  { %v4367_v28 = vpop.f32.mrf.mxu0 }
 0x388   :  { %v4408_v15 = vpop.f32.mrf.mxu1  ;;  %v4407_v24 = vadd.f32 %v4406_v16, %v4366_v27 }
 0x389   :  { %v4368_v17 = vpop.f32.mrf.mxu0 }
 0x38a   :  { %v4409_v47 = vpop.f32.mrf.mxu1 }
 0x3c3   :  { %v4445_v18 = vpop.f32.mrf.mxu0 }
 0x3c4   :  { %v4446_v19 = vadd.f32 %v4445_v18, %v4405_v31  ;;  %v4486_v42 = vpop.f32.mrf.mxu1 }
 0x3c5   :  { %v4447_v33 = vpop.f32.mrf.mxu0 }
 0x3c6   :  { %v4487_v12 = vadd.f32 %v4486_v42, %v4446_v19  ;;  %v4448_v49 = vadd.f32 %v4447_v33, %v4407_v24  ;;  %v4488_v22 = vpop.f32.mrf.mxu1 }
 0x3c7   :  { %v4449_v55 = vpop.f32.mrf.mxu0 }
 0x3c8   :  { %v4489_v30 = vadd.f32 %v4488_v22, %v4448_v49  ;;  %v4490_v34 = vpop.f32.mrf.mxu1  ;;  %v4499_v46 = vmax.f32 %v4487_v12, 0.0 }
 0x3c9   :  { %v4450_v11 = vpop.f32.mrf.mxu0 }
 0x3ca   :  { %v4500_v61 = vmax.f32 %v4489_v30, 0.0  ;;  %v4491_v35 = vpop.f32.mrf.mxu1  ;;  %v4507_v32 = vpack.c.bf16 %v4499_v46, %v4499_v46 }
 0x3cc   :  { %v4508_v14 = vpack.c.bf16 %v4500_v61, %v4500_v61 }
 0x3ce   :  { %5180 = vmatprep.mubr.bf16.mxu1 %v4508_v14 }
 0x3cf   :  { %5181 = vmatmul.mubr.bf16.vlgmr.msra.gmra.mxu1 %v4507_v32 }
 0x3e3   :  { %v5865_v44 = vpop.f32.mrf.mxu0 }
 0x3e4   :  { %v5887_v52 = vpop.f32.mrf.mxu1 }
 0x3e5   :  { %v5866_v51 = vpop.f32.mrf.mxu0 }
 0x3e6   :  { %v5867_v45 = vadd.f32 %v5866_v51, %v5865_v44  ;;  %v5888_v56 = vpop.f32.mrf.mxu1 }
 0x3e7   :  { %v5889_v0 = vadd.f32 %v5888_v56, %v5887_v52  ;;  %v5868_v39 = vpop.f32.mrf.mxu0 }
 0x3e8   :  { %v5063_v57 = vadd.f32 %v5867_v45, %v5784_v53  ;;  %v5890_v58 = vpop.f32.mrf.mxu1 }
 0x3e9   :  { %v5869_v59 = vpop.f32.mrf.mxu0 }
 0x3ea   :  { %v5103_v60 = vadd.f32 %v5889_v0, %v5063_v57  ;;  %v5891_v62 = vpop.f32.mrf.mxu1 }
 0x40f   :  { %v5909_v1 = vpop.f32.mrf.mxu0 }
 0x411   :  { %v5910_v2 = vpop.f32.mrf.mxu0 }
 0x412   :  { %v5911_v3 = vadd.f32 %v5910_v2, %v5909_v1 }
 0x413   :  { %v5912_v63 = vpop.f32.mrf.mxu0 }
 0x414   :  { %v5143_v36 = vadd.f32 %v5911_v3, %v5103_v60 }
 0x415   :  { %v5913_v29 = vpop.f32.mrf.mxu0 }
 0x48f   :  { %v5931_v37 = vpop.f32.mrf.mxu1 }
 0x491   :  { %v5932_v4 = vpop.f32.mrf.mxu1 }
 0x492   :  { %v5933_v38 = vadd.f32 %v5932_v4, %v5931_v37 }
 0x493   :  { %v5934_v50 = vpop.f32.mrf.mxu1 }
 0x494   :  { %v5183_v41 = vadd.f32 %v5933_v38, %v5143_v36 }
 0x495   :  { %v5935_v48 = vpop.f32.mrf.mxu1 }
 0x496   :  { %6014 = vtanh.f32 %v5183_v41 }
 0x4a3   :  { %v6015_v43 = vpop.eup %6014 }
 0x4a4   :  { %5189 = vst [vmem:[#allocation14] sm:$0xff] %v6015_v43 }
 0x4a5   :  { %6168 = shalt.err (!%p6165_p11)
}
 0x4a6   :  { %5199 = dma.vmem_to_hbm [thread:$0]  %s5197_s6, 128, %s6454_s7, [#allocation4]  }
 0x4a7   :  { %6185 = dma.done.wait [#allocation4], 128  }
 0x4a8   :  { %6186 = vsyncadd [#allocation4], 4294967168 }
 0x4a9   :  { %5203 = vsyncpa [#allocation3], 1 }
 0x4aa   :  { %5204 = vsyncpa [#allocation6], 1 }
 0x4ab   :  { %5205 = vsyncpa [#allocation9], 1 }
 0x4ac   :  { %5206 = vsyncpa [#allocation12], 1 }
 0x4ad   :  { %5207 = vsyncpa [#allocation4], 1 }

</bundles_post_ra>
